<compile_context>
chip_gen: v7x
topology: tpu7x:2x2x1
jax: 0.10.0
libtpu: 0.0.40
codegen_flags: <defaults>
</compile_context>

<pallas_src>
import jax
import jax.numpy as jnp
from jax.experimental import pallas as pl
from jax.experimental.pallas import tpu as pltpu

IN_Z, IN_Y = 100, 10
IN_PACKED = 128            # [z | y] padded to one full lane width
HIDDEN = 1200              # 200 + 1000
OUT = 28 * 28              # 784
OUT_PAD = 896              # 7 * 128 -> lane-dense output stores


def _round_up(x, m):
    return (x + m - 1) // m * m


def _generator_kernel(seed_ref,                       # SMEM (scalar prefetch), (1,) int32
                      x_ref,                          # (bt, 128)    bf16
                      w1_ref, b1_ref,                 # (128, 1200)  bf16, (1, 1200) f32
                      wl_ref, bl_ref,                 # (1200, 896)  bf16, (1, 896)  f32
                      out_ref):                       # (bt, 896)    f32
    bt = out_ref.shape[0]

    # Fused input projections: [z|y] @ blockdiag(Wz, Wy) + [bz|by] -> (bt, 1200)
    h = jnp.dot(x_ref[...], w1_ref[...],
                preferred_element_type=jnp.float32) + b1_ref[...]

    # Dropout(p=0.5), training mode.  Counter-based hash PRNG (murmur-style
    # finalizer) keyed by (seed, global row, column) so every batch tile (and
    # every core on v7x) draws a distinct mask.  Mask differs from torch's RNG.
    row0 = pl.program_id(0) * bt
    rows = jax.lax.broadcasted_iota(jnp.int32, h.shape, 0) + row0
    cols = jax.lax.broadcasted_iota(jnp.int32, h.shape, 1)
    ctr = (rows * HIDDEN + cols).astype(jnp.uint32)
    seed_u32 = seed_ref[0].astype(jnp.uint32)
    st = ctr * jnp.uint32(0x9E3779B9) + seed_u32
    st = st ^ jax.lax.shift_right_logical(st, jnp.uint32(16))
    st = st * jnp.uint32(0x7FEB352D)
    st = st ^ jax.lax.shift_right_logical(st, jnp.uint32(15))
    st = st * jnp.uint32(0x846CA68B)
    st = st ^ jax.lax.shift_right_logical(st, jnp.uint32(16))
    keep = (st & jnp.uint32(0x80000000)) != jnp.uint32(0)    # Bernoulli(0.5), high bit
    # The 1/(1-p) = 2 scale is folded into wl at parameter-prep time.
    hd = jnp.where(keep, h, 0.0).astype(jnp.bfloat16)

    # Final linear + sigmoid (f32 accumulation on the MXU).
    logits = jnp.dot(hd, wl_ref[...],
                     preferred_element_type=jnp.float32) + bl_ref[...]
    out_ref[...] = jax.nn.sigmoid(logits)


def prepare_params(params):
    """One-time parameter prep (hoisted out of the per-call path):
    fuse the two input projections into a block-diagonal weight, fold the
    dropout scale into the final weight, pad output features to 896, and
    cast matmul operands to bf16 (biases stay f32)."""
    wz, bz = params["wz"], params["bz"]          # (100, 200), (1, 200)
    wy, by = params["wy"], params["by"]          # (10, 1000), (1, 1000)
    wl, bl = params["wl"], params["bl"]          # (1200, 784), (1, 784)

    w1 = jnp.zeros((IN_PACKED, HIDDEN), jnp.float32)
    w1 = w1.at[:IN_Z, :200].set(wz)
    w1 = w1.at[IN_Z:IN_Z + IN_Y, 200:].set(wy)
    b1 = jnp.concatenate([bz, by], axis=1)                                  # (1, 1200)

    wl_p = jnp.zeros((HIDDEN, OUT_PAD), jnp.float32).at[:, :OUT].set(2.0 * wl)
    bl_p = jnp.zeros((1, OUT_PAD), jnp.float32).at[:, :OUT].set(bl)

    return dict(w1=w1.astype(jnp.bfloat16), b1=b1,
                wl=wl_p.astype(jnp.bfloat16), bl=bl_p)


def generator_forward(z, y, prepared, seed=0, batch_tile=256):
    """z: (B, 100) f32, y: (B, 10) f32 -> (B, 784) f32."""
    B = z.shape[0]
    assert batch_tile % 8 == 0
    bt = min(batch_tile, _round_up(B, 8))
    Bp = _round_up(B, bt)

    # Pack [z | y] and pad: rows to the batch tile, lanes to 128.
    x = jnp.concatenate([z, y], axis=1)                                     # (B, 110)
    x = jnp.pad(x, ((0, Bp - B), (0, IN_PACKED - (IN_Z + IN_Y))))
    x = x.astype(jnp.bfloat16)

    seed_arr = jnp.asarray([seed], dtype=jnp.int32)
    w1, b1, wl, bl = (prepared["w1"], prepared["b1"],
                      prepared["wl"], prepared["bl"])

    grid_spec = pltpu.PrefetchScalarGridSpec(
        num_scalar_prefetch=1,
        grid=(Bp // bt,),
        in_specs=[
            pl.BlockSpec((bt, IN_PACKED), lambda i, s: (i, 0)),       # x
            pl.BlockSpec((IN_PACKED, HIDDEN), lambda i, s: (0, 0)),   # w1 (resident)
            pl.BlockSpec((1, HIDDEN), lambda i, s: (0, 0)),           # b1
            pl.BlockSpec((HIDDEN, OUT_PAD), lambda i, s: (0, 0)),     # wl (resident)
            pl.BlockSpec((1, OUT_PAD), lambda i, s: (0, 0)),          # bl
        ],
        out_specs=pl.BlockSpec((bt, OUT_PAD), lambda i, s: (i, 0)),
    )

    out = pl.pallas_call(
        _generator_kernel,
        out_shape=jax.ShapeDtypeStruct((Bp, OUT_PAD), jnp.float32),
        grid_spec=grid_spec,
        compiler_params=pltpu.CompilerParams(
            dimension_semantics=("parallel",),
            vmem_limit_bytes=32 * 1024 * 1024),
    )(seed_arr, x, w1, b1, wl, bl)

    return out[:B, :OUT]


def init_params(key):
    """Deterministic synthetic parameters (shapes match the PyTorch module).
    Weights stored as (in_features, out_features); biases as (1, out_features)."""
    ks = jax.random.split(key, 6)

    def lin(kw, kb, fan_in, fan_out):
        bound = 1.0 / jnp.sqrt(fan_in)
        w = jax.random.uniform(kw, (fan_in, fan_out), jnp.float32, -bound, bound)
        b = jax.random.uniform(kb, (1, fan_out), jnp.float32, -bound, bound)
        return w, b

    wz, bz = lin(ks[0], ks[1], 100, 200)
    wy, by = lin(ks[2], ks[3], 10, 1000)
    wl, bl = lin(ks[4], ks[5], 1200, 28 * 28)
    return dict(wz=wz, bz=bz, wy=wy, by=by, wl=wl, bl=bl)


if __name__ == "__main__":
    key = jax.random.PRNGKey(0)
    kp, kz, ky = jax.random.split(key, 3)

    params = init_params(kp)
    prepared = prepare_params(params)            # weight prep hoisted out of the hot path

    B = 2
    z = jax.random.normal(kz, (B, 100), dtype=jnp.float32)
    y = jax.nn.one_hot(jax.random.randint(ky, (B,), 0, 10), 10, dtype=jnp.float32)

    out = generator_forward(z, y, prepared, seed=1234)
    out = jax.block_until_ready(out)

    assert out.shape == (B, 28 * 28)
    assert out.dtype == jnp.float32
    assert bool(jnp.all(jnp.isfinite(out)))
    assert bool(jnp.all((out >= 0.0) & (out <= 1.0)))   # sigmoid range
    print("KERNEL_OK")
</pallas_src>

<mosaic_0001>
module attributes {stable_mosaic.version = 11 : i64} {
  func.func @_generator_kernel(%arg0: i32, %arg1: memref<1xi32, #tpu.memory_space<smem>>, %arg2: memref<8x128xbf16, #tpu.memory_space<vmem>>, %arg3: memref<128x1200xbf16, #tpu.memory_space<vmem>>, %arg4: memref<1x1200xf32, #tpu.memory_space<vmem>>, %arg5: memref<1200x896xbf16, #tpu.memory_space<vmem>>, %arg6: memref<1x896xf32, #tpu.memory_space<vmem>>, %arg7: memref<8x896xf32, #tpu.memory_space<vmem>>) attributes {dimension_semantics = [#tpu.dimension_semantics<parallel>], iteration_bounds = array<i64: 1>, scalar_prefetch = 1 : i64, scratch_operands = 0 : i64, tpu.core_type = #tpu.core_type<tc>, window_params = [{transform_indices = @transform_0, window_bounds = array<i64: 8, 128>}, {pipeline_mode = #tpu.pipeline_mode<synchronous>, transform_indices = @transform_1, window_bounds = array<i64: 128, 1200>}, {pipeline_mode = #tpu.pipeline_mode<synchronous>, transform_indices = @transform_2, window_bounds = array<i64: 1, 1200>}, {pipeline_mode = #tpu.pipeline_mode<synchronous>, transform_indices = @transform_3, window_bounds = array<i64: 1200, 896>}, {pipeline_mode = #tpu.pipeline_mode<synchronous>, transform_indices = @transform_4, window_bounds = array<i64: 1, 896>}, {transform_indices = @transform_5, window_bounds = array<i64: 8, 896>}]} {
    %c0 = arith.constant 0 : index
    %c0_0 = arith.constant 0 : index
    %0 = vector.load %arg2[%c0, %c0_0] : memref<8x128xbf16, #tpu.memory_space<vmem>>, vector<8x128xbf16>
    %c0_1 = arith.constant 0 : index
    %c0_2 = arith.constant 0 : index
    %1 = vector.load %arg3[%c0_1, %c0_2] : memref<128x1200xbf16, #tpu.memory_space<vmem>>, vector<128x1200xbf16>
    %cst = arith.constant dense<0.000000e+00> : vector<8x1200xf32>
    %2 = tpu.matmul %0, %1, %cst {dimension_numbers = #tpu.dot_dimension_numbers<[1], [0], [0], [1], [0, 0, 1, 1], [], []>} : vector<8x128xbf16>, vector<128x1200xbf16>, vector<8x1200xf32> -> vector<8x1200xf32>
    %c0_3 = arith.constant 0 : index
    %c0_4 = arith.constant 0 : index
    %3 = vector.load %arg4[%c0_3, %c0_4] : memref<1x1200xf32, #tpu.memory_space<vmem>>, vector<1x1200xf32>
    %4 = vector.broadcast %3 : vector<1x1200xf32> to vector<8x1200xf32>
    %5 = arith.addf %2, %4 : vector<8x1200xf32>
    %c8_i32 = arith.constant 8 : i32
    %6 = arith.muli %arg0, %c8_i32 : i32
    %7 = tpu.iota {dimensions = array<i32: 0>} : vector<8x1200xi32>
    %8 = vector.broadcast %6 : i32 to vector<8x1200xi32>
    %9 = arith.addi %7, %8 : vector<8x1200xi32>
    %10 = tpu.iota {dimensions = array<i32: 1>} : vector<8x1200xi32>
    %c1200_i32 = arith.constant 1200 : i32
    %11 = vector.broadcast %c1200_i32 : i32 to vector<8x1200xi32>
    %12 = arith.muli %9, %11 : vector<8x1200xi32>
    %13 = arith.addi %12, %10 : vector<8x1200xi32>
    %c0_5 = arith.constant 0 : index
    %14 = memref.load %arg1[%c0_5] : memref<1xi32, #tpu.memory_space<smem>>
    %c-1640531527_i32 = arith.constant -1640531527 : i32
    %15 = vector.broadcast %c-1640531527_i32 : i32 to vector<8x1200xi32>
    %16 = arith.muli %13, %15 : vector<8x1200xi32>
    %17 = vector.broadcast %14 : i32 to vector<8x1200xi32>
    %18 = arith.addi %16, %17 : vector<8x1200xi32>
    %c16_i32 = arith.constant 16 : i32
    %19 = vector.broadcast %c16_i32 : i32 to vector<8x1200xi32>
    %20 = arith.shrui %18, %19 : vector<8x1200xi32>
    %21 = arith.xori %18, %20 : vector<8x1200xi32>
    %c2146121005_i32 = arith.constant 2146121005 : i32
    %22 = vector.broadcast %c2146121005_i32 : i32 to vector<8x1200xi32>
    %23 = arith.muli %21, %22 : vector<8x1200xi32>
    %c15_i32 = arith.constant 15 : i32
    %24 = vector.broadcast %c15_i32 : i32 to vector<8x1200xi32>
    %25 = arith.shrui %23, %24 : vector<8x1200xi32>
    %26 = arith.xori %23, %25 : vector<8x1200xi32>
    %c-2073254261_i32 = arith.constant -2073254261 : i32
    %27 = vector.broadcast %c-2073254261_i32 : i32 to vector<8x1200xi32>
    %28 = arith.muli %26, %27 : vector<8x1200xi32>
    %c16_i32_6 = arith.constant 16 : i32
    %29 = vector.broadcast %c16_i32_6 : i32 to vector<8x1200xi32>
    %30 = arith.shrui %28, %29 : vector<8x1200xi32>
    %31 = arith.xori %28, %30 : vector<8x1200xi32>
    %c-2147483648_i32 = arith.constant -2147483648 : i32
    %32 = vector.broadcast %c-2147483648_i32 : i32 to vector<8x1200xi32>
    %33 = arith.andi %31, %32 : vector<8x1200xi32>
    %c0_i32 = arith.constant 0 : i32
    %34 = vector.broadcast %c0_i32 : i32 to vector<8x1200xi32>
    %35 = arith.cmpi ne, %33, %34 : vector<8x1200xi32>
    %cst_7 = arith.constant 0.000000e+00 : f32
    %36 = vector.broadcast %cst_7 : f32 to vector<8x1200xf32>
    %37 = arith.select %35, %5, %36 : vector<8x1200xi1>, vector<8x1200xf32>
    %38 = arith.truncf %37 : vector<8x1200xf32> to vector<8x1200xbf16>
    %c0_8 = arith.constant 0 : index
    %c0_9 = arith.constant 0 : index
    %39 = vector.load %arg5[%c0_8, %c0_9] : memref<1200x896xbf16, #tpu.memory_space<vmem>>, vector<1200x896xbf16>
    %cst_10 = arith.constant dense<0.000000e+00> : vector<8x896xf32>
    %40 = tpu.matmul %38, %39, %cst_10 {dimension_numbers = #tpu.dot_dimension_numbers<[1], [0], [0], [1], [0, 0, 1, 1], [], []>} : vector<8x1200xbf16>, vector<1200x896xbf16>, vector<8x896xf32> -> vector<8x896xf32>
    %c0_11 = arith.constant 0 : index
    %c0_12 = arith.constant 0 : index
    %41 = vector.load %arg6[%c0_11, %c0_12] : memref<1x896xf32, #tpu.memory_space<vmem>>, vector<1x896xf32>
    %42 = vector.broadcast %41 : vector<1x896xf32> to vector<8x896xf32>
    %43 = arith.addf %40, %42 : vector<8x896xf32>
    %44 = arith.negf %43 : vector<8x896xf32>
    %45 = math.exp %44 : vector<8x896xf32>
    %cst_13 = arith.constant 1.000000e+00 : f32
    %46 = vector.broadcast %cst_13 : f32 to vector<8x896xf32>
    %47 = arith.addf %46, %45 : vector<8x896xf32>
    %48 = arith.divf %46, %47 : vector<8x896xf32>
    %c0_14 = arith.constant 0 : index
    %c0_15 = arith.constant 0 : index
    %49 = vector.load %arg7[%c0_14, %c0_15] : memref<8x896xf32, #tpu.memory_space<vmem>>, vector<8x896xf32>
    tpu.vector_store %arg7[%c0_14, %c0_15], %48 {strides = array<i32>} : memref<8x896xf32, #tpu.memory_space<vmem>>, vector<8x896xf32>,
    return
  }
  func.func @transform_0(%arg0: i32, %arg1: memref<1xi32, #tpu.memory_space<smem>>) -> (i32, i32) {
    %c0_i32 = arith.constant 0 : i32
    %c0_i32_0 = arith.constant 0 : i32
    return %arg0, %c0_i32 : i32, i32
  }
  func.func @transform_1(%arg0: i32, %arg1: memref<1xi32, #tpu.memory_space<smem>>) -> (i32, i32) {
    %c0_i32 = arith.constant 0 : i32
    %c0_i32_0 = arith.constant 0 : i32
    %c0_i32_1 = arith.constant 0 : i32
    return %c0_i32, %c0_i32_0 : i32, i32
  }
  func.func @transform_2(%arg0: i32, %arg1: memref<1xi32, #tpu.memory_space<smem>>) -> (i32, i32) {
    %c0_i32 = arith.constant 0 : i32
    %c0_i32_0 = arith.constant 0 : i32
    %c0_i32_1 = arith.constant 0 : i32
    return %c0_i32, %c0_i32_0 : i32, i32
  }
  func.func @transform_3(%arg0: i32, %arg1: memref<1xi32, #tpu.memory_space<smem>>) -> (i32, i32) {
    %c0_i32 = arith.constant 0 : i32
    %c0_i32_0 = arith.constant 0 : i32
    %c0_i32_1 = arith.constant 0 : i32
    return %c0_i32, %c0_i32_0 : i32, i32
  }
  func.func @transform_4(%arg0: i32, %arg1: memref<1xi32, #tpu.memory_space<smem>>) -> (i32, i32) {
    %c0_i32 = arith.constant 0 : i32
    %c0_i32_0 = arith.constant 0 : i32
    %c0_i32_1 = arith.constant 0 : i32
    return %c0_i32, %c0_i32_0 : i32, i32
  }
  func.func @transform_5(%arg0: i32, %arg1: memref<1xi32, #tpu.memory_space<smem>>) -> (i32, i32) {
    %c0_i32 = arith.constant 0 : i32
    %c0_i32_0 = arith.constant 0 : i32
    return %arg0, %c0_i32 : i32, i32
  }
}

</mosaic_0001>

<bundles_post_ra>
// kernel: tpu_custom_call.1
= control target key start
LH: loop header
LB: loop body
LE: loop exit
PB: predicated region body
PF: predicated region fallthrough
CT: control target
= control target key end

     0   :  { %12 = vsyncpa [#allocation5], 0  ;;  %s7766_s0 = inlined_call_operand.<no memory space> [shape: s32[1], index: 0, kind: input, shape index: {}]   ;;  %s7767_s1 = inlined_call_operand.hbm [shape: bf16[8,128], index: 1, kind: input, shape index: {}]   ;;  %s7768_s2 = inlined_call_operand.vmem [shape: bf16[128,1200], index: 2, kind: input, shape index: {}]   ;;  %s7769_s3 = inlined_call_operand.hbm [shape: f32[1,1200], index: 3, kind: input, shape index: {}]   ;;  %s7770_s4 = inlined_call_operand.hbm [shape: bf16[1200,896], index: 4, kind: input, shape index: {}]   ;;  %s7771_s5 = inlined_call_operand.hbm [shape: f32[1,896], index: 5, kind: input, shape index: {}]   ;;  %s7772_s6 = inlined_call_operand.hbm [shape: f32[8,896], index: 6, kind: output, shape index: {}]  }
   0x1   :  { %13 = vsyncpa [#allocation8], 0 }
   0x2   :  { %14 = vsyncpa [#allocation11], 0 }
   0x3   :  { %15 = vsyncpa [#allocation6], 0  ;;  %s7093_s21 = smov [#allocation7]   ;;  %s7094_s23 = smov [#allocation4]  }
   0x4   :  { %s34_s22 = sshll.u32 %s7093_s21, 4  ;;  %s22_s24 = sshll.u32 %s7094_s23, 4  ;;  %s35_s22 = int_to_ptr.vmem [resolvable:$true] %s34_s22  ;;  %s23_s24 = int_to_ptr.vmem [resolvable:$true] %s22_s24 }
   0x5   :  { %s6975_s27 = scalar_lea.hbm %s7769_s3, 160 }
   0x6   :  { %p6976_p0 = scmp.ne.s32.totalorder %s7769_s3, %s6975_s27  ;;  %p6979_p1 = scmp.lt.u32.totalorder %s6975_s27, %s7769_s3 }
   0x8   :  { %p6981_p2 = pnand %p6979_p1, %p6976_p0 }
   0xa   :  { %6984 = shalt.err (!%p6981_p2)
}
   0xb   :  { %s6985_s8 = scalar_lea.vmem %s35_s22, 160  ;;  %p6990_p4 = scmp.lt.s32.totalorder %s35_s22, %s35_s22 }
   0xc   :  { %p6986_p3 = scmp.ne.s32.totalorder %s35_s22, %s6985_s8  ;;  %p6991_p5 = scmp.lt.s32.totalorder %s6985_s8, %s6985_s8 }
   0xe   :  { %p6992_p6 = por %p6991_p5, %p6990_p4 }
  0x10   :  { %p6993_p7 = pnand %p6992_p6, %p6986_p3 }
  0x12   :  { %6996 = shalt.err (!%p6993_p7)
}
  0x13   :  { %37 = dma.hbm_to_vmem [thread:$0]  %s7769_s3, 160, %s35_s22, [#allocation8]  }
  0x14   :  { %s6997_s13 = scalar_lea.hbm %s7767_s1, 64 }
  0x15   :  { %p6998_p8 = scmp.ne.s32.totalorder %s7767_s1, %s6997_s13  ;;  %p7001_p9 = scmp.lt.u32.totalorder %s6997_s13, %s7767_s1 }
  0x17   :  { %p7003_p10 = pnand %p7001_p9, %p6998_p8 }
  0x19   :  { %7006 = shalt.err (!%p7003_p10)
}
  0x1a   :  { %s7007_s18 = scalar_lea.vmem %s23_s24, 64  ;;  %p7012_p12 = scmp.lt.s32.totalorder %s23_s24, %s23_s24 }
  0x1b   :  { %p7008_p11 = scmp.ne.s32.totalorder %s23_s24, %s7007_s18  ;;  %p7013_p13 = scmp.lt.s32.totalorder %s7007_s18, %s7007_s18 }
  0x1d   :  { %p7014_p0 = por %p7013_p13, %p7012_p12 }
  0x1f   :  { %p7015_p1 = pnand %p7014_p0, %p7008_p11 }
  0x21   :  { %7018 = shalt.err (!%p7015_p1)
}
  0x22   :  { %25 = dma.hbm_to_vmem [thread:$0]  %s7767_s1, 64, %s23_s24, [#allocation5]  }
  0x23   :  { %s7095_s20 = smov [#allocation9]   ;;  %s7019_s25 = scalar_lea.hbm %s7770_s4, 67200 }
  0x24   :  { %s43_s21 = sshll.u32 %s7095_s20, 4  ;;  %p7020_p2 = scmp.ne.s32.totalorder %s7770_s4, %s7019_s25  ;;  %s44_s21 = int_to_ptr.vmem [resolvable:$true] %s43_s21 }
  0x25   :  { %p7023_p3 = scmp.lt.u32.totalorder %s7019_s25, %s7770_s4 }
  0x27   :  { %p7025_p4 = pnand %p7023_p3, %p7020_p2 }
  0x29   :  { %7028 = shalt.err (!%p7025_p4)
}
  0x2a   :  { %s7029_s30 = scalar_lea.vmem %s44_s21, 67200  ;;  %p7034_p6 = scmp.lt.s32.totalorder %s44_s21, %s44_s21 }
  0x2b   :  { %p7030_p5 = scmp.ne.s32.totalorder %s44_s21, %s7029_s30  ;;  %p7035_p7 = scmp.lt.s32.totalorder %s7029_s30, %s7029_s30 }
  0x2d   :  { %p7036_p8 = por %p7035_p7, %p7034_p6 }
  0x2f   :  { %p7037_p9 = pnand %p7036_p8, %p7030_p5 }
  0x31   :  { %7040 = shalt.err (!%p7037_p9)
}
  0x32   :  { %s7096_s1 = smov 448   ;;  %s7097_s24 = smov 28  }
  0x33   :  { %49 = dma.hbm_to_vmem [thread:$0]  %s7770_s4, 67200, %s44_s21, [#allocation8], %s7096_s1, %s7096_s1, %s7097_s24  }
  0x34   :  { %s7098_s9 = smov [#allocation10]   ;;  %s7041_s13 = scalar_lea.hbm %s7771_s5, 112 }
  0x35   :  { %s56_s10 = sshll.u32 %s7098_s9, 4  ;;  %p7042_p10 = scmp.ne.s32.totalorder %s7771_s5, %s7041_s13  ;;  %s57_s10 = int_to_ptr.vmem [resolvable:$true] %s56_s10 }
  0x36   :  { %p7045_p11 = scmp.lt.u32.totalorder %s7041_s13, %s7771_s5 }
  0x38   :  { %p7047_p12 = pnand %p7045_p11, %p7042_p10 }
  0x3a   :  { %7050 = shalt.err (!%p7047_p12)
}
  0x3b   :  { %s7051_s18 = scalar_lea.vmem %s57_s10, 112  ;;  %s7055_s4 = scalar_lea.vmem %s57_s10, 128 }
  0x3c   :  { %p7052_p13 = scmp.ne.s32.totalorder %s57_s10, %s7051_s18  ;;  %p7056_p0 = scmp.lt.s32.totalorder %s57_s10, %s57_s10 }
  0x3d   :  { %p7057_p1 = scmp.lt.s32.totalorder %s7055_s4, %s7051_s18 }
  0x3f   :  { %p7058_p2 = por %p7057_p1, %p7056_p0 }
  0x41   :  { %p7059_p3 = pnand %p7058_p2, %p7052_p13 }
  0x43   :  { %7062 = shalt.err (!%p7059_p3)
}
  0x44   :  { %59 = dma.hbm_to_vmem [thread:$0]  %s7771_s5, 112, %s57_s10, [#allocation11]  }
  0x45   :  { %7085 = dma.done.wait [#allocation5], 64  }
  0x46   :  { %7086 = vsyncadd [#allocation5], 4294967232 }
  0x47   :  { %7087 = dma.done.wait [#allocation8], 67360  }
  0x48   :  { %7088 = vsyncadd [#allocation8], 4294899936 }
  0x49   :  { %7089 = dma.done.wait [#allocation11], 112  }
  0x4a   :  { %7090 = vsyncadd [#allocation11], 4294967184  ;;  %v7099_v0 = vmov 0   ;;  %v6076_v1 = vld [vmem:[%s7768_s2 + $0x4] ss:$40 sps:$4 sm:$0xff]   ;;  %vm4319_vm12 = vcmask 392192  }
  0x4b   :  { %640 = vmatprep.mubr.bf16.mxu0 %v7099_v0  ;;  %681 = vmatprep.mubr.bf16.mxu1 %v7099_v0  ;;  %v6078_v2 = vld [vmem:[%s7768_s2] ss:$40 sps:$4 sm:$0xff]   ;;  %v6079_v3 = vld [vmem:[%s7768_s2 + $0x54] ss:$40 sps:$4 sm:$0xff]   ;;  %v6081_v4 = vld [vmem:[%s7768_s2 + $0x50] ss:$40 sps:$4 sm:$0xff]  }
  0x4c   :  { %608 = vmatprep.subr.bf16.mxu0 %v6076_v1  ;;  %v6082_v5 = vld [vmem:[%s7768_s2 + $0xa4] ss:$40 sps:$4 sm:$0xff]   ;;  %v6084_v6 = vld [vmem:[%s7768_s2 + $0xa0] ss:$40 sps:$4 sm:$0xff]   ;;  %v6085_v7 = vld [vmem:[%s7768_s2 + $0xf4] ss:$40 sps:$4 sm:$0xff]  }
  0x4d   :  { %609 = vmatpush1.bf16.msra.mxu0 %v6078_v2  ;;  %v6087_v8 = vld [vmem:[%s7768_s2 + $0xf0] ss:$40 sps:$4 sm:$0xff]   ;;  %v6088_v9 = vld [vmem:[%s7768_s2 + $0x144] ss:$40 sps:$4 sm:$0xff]   ;;  %v6090_v10 = vld [vmem:[%s7768_s2 + $0x140] ss:$40 sps:$4 sm:$0xff]  }
  0x4e   :  { %610 = vmatprep.subr.bf16.mxu0 %v6079_v3  ;;  %v6091_v11 = vld [vmem:[%s7768_s2 + $0x194] ss:$40 sps:$4 sm:$0xff]   ;;  %v6093_v12 = vld [vmem:[%s7768_s2 + $0x190] ss:$40 sps:$4 sm:$0xff]   ;;  %v6094_v13 = vld [vmem:[%s7768_s2 + $0x1e4] ss:$40 sps:$4 sm:$0xff]  }
  0x4f   :  { %v6124_v14 = vld [vmem:[%s7768_s2 + $0xc] ss:$40 sps:$4 sm:$0xff]   ;;  %v6126_v15 = vld [vmem:[%s7768_s2 + $0x8] ss:$40 sps:$4 sm:$0xff]   ;;  %v6130_v18 = vld [vmem:[%s7768_s2 + $0x5c] ss:$40 sps:$4 sm:$0xff]  }
  0x50   :  { %v6096_v16 = vld [vmem:[%s7768_s2 + $0x1e0] ss:$40 sps:$4 sm:$0xff]   ;;  %v6097_v17 = vld [vmem:[%s7768_s2 + $0x234] ss:$40 sps:$4 sm:$0xff]   ;;  %649 = vmatprep.subr.bf16.mxu1 %v6124_v14  ;;  %v6099_v20 = vld [vmem:[%s7768_s2 + $0x230] ss:$40 sps:$4 sm:$0xff]  }
  0x51   :  { %611 = vmatpush1.bf16.msra.mxu0 %v6081_v4  ;;  %650 = vmatpush1.bf16.msra.mxu1 %v6126_v15  ;;  %v6132_v19 = vld [vmem:[%s7768_s2 + $0x58] ss:$40 sps:$4 sm:$0xff]   ;;  %v6136_v21 = vld [vmem:[%s7768_s2 + $0xac] ss:$40 sps:$4 sm:$0xff]   ;;  %v6138_v23 = vld [vmem:[%s7768_s2 + $0xa8] ss:$40 sps:$4 sm:$0xff]  }
  0x52   :  { %612 = vmatprep.subr.bf16.mxu0 %v6082_v5  ;;  %651 = vmatprep.subr.bf16.mxu1 %v6130_v18  ;;  %v6102_v22 = vld [vmem:[%s7768_s2 + $0x14] ss:$40 sps:$4 sm:$0xff]   ;;  %v7255_v24 = vld [vmem:[#allocation4] sm:$0xf]  ;;  %v6100_v26 = vld [vmem:[%s7768_s2 + $0x10] ss:$40 sps:$4 sm:$0xff]  }
  0x53   :  { %v6142_v25 = vld [vmem:[%s7768_s2 + $0xfc] ss:$40 sps:$4 sm:$0xff]   ;;  %v6144_v28 = vld [vmem:[%s7768_s2 + $0xf8] ss:$40 sps:$4 sm:$0xff]   ;;  %v6148_v29 = vld [vmem:[%s7768_s2 + $0x14c] ss:$40 sps:$4 sm:$0xff]  }
  0x54   :  { %v6105_v27 = vld [vmem:[%s7768_s2 + $0x64] ss:$40 sps:$4 sm:$0xff]   ;;  %v6103_v30 = vld [vmem:[%s7768_s2 + $0x60] ss:$40 sps:$4 sm:$0xff]   ;;  %v6108_v31 = vld [vmem:[%s7768_s2 + $0xb4] ss:$40 sps:$4 sm:$0xff]  }
  0x55   :  { %613 = vmatpush1.bf16.msra.mxu0 %v6084_v6  ;;  %652 = vmatpush1.bf16.msra.mxu1 %v6132_v19  ;;  %v6150_v32 = vld [vmem:[%s7768_s2 + $0x148] ss:$40 sps:$4 sm:$0xff]   ;;  %v6154_v33 = vld [vmem:[%s7768_s2 + $0x19c] ss:$40 sps:$4 sm:$0xff]   ;;  %v6156_v36 = vld [vmem:[%s7768_s2 + $0x198] ss:$40 sps:$4 sm:$0xff]  }
  0x56   :  { %614 = vmatprep.subr.bf16.mxu0 %v6085_v7  ;;  %653 = vmatprep.subr.bf16.mxu1 %v6136_v21  ;;  %v6106_v34 = vld [vmem:[%s7768_s2 + $0xb0] ss:$40 sps:$4 sm:$0xff]   ;;  %v6111_v35 = vld [vmem:[%s7768_s2 + $0x104] ss:$40 sps:$4 sm:$0xff]   ;;  %v6109_v38 = vld [vmem:[%s7768_s2 + $0x100] ss:$40 sps:$4 sm:$0xff]  }
  0x57   :  { %v6160_v37 = vld [vmem:[%s7768_s2 + $0x1ec] ss:$40 sps:$4 sm:$0xff]   ;;  %v6162_v40 = vld [vmem:[%s7768_s2 + $0x1e8] ss:$40 sps:$4 sm:$0xff]   ;;  %v6166_v41 = vld [vmem:[%s7768_s2 + $0x23c] ss:$40 sps:$4 sm:$0xff]  }
  0x58   :  { %v6114_v39 = vld [vmem:[%s7768_s2 + $0x154] ss:$40 sps:$4 sm:$0xff]   ;;  %v6112_v42 = vld [vmem:[%s7768_s2 + $0x150] ss:$40 sps:$4 sm:$0xff]   ;;  %v6117_v43 = vld [vmem:[%s7768_s2 + $0x1a4] ss:$40 sps:$4 sm:$0xff]  }
  0x59   :  { %615 = vmatpush1.bf16.msra.mxu0 %v6087_v8  ;;  %654 = vmatpush1.bf16.msra.mxu1 %v6138_v23  ;;  %v6168_v44 = vld [vmem:[%s7768_s2 + $0x238] ss:$40 sps:$4 sm:$0xff]   ;;  %v6174_v45 = vld [vmem:[%s7768_s2 + $0x1c] ss:$40 sps:$4 sm:$0xff]   ;;  %v6177_v49 = vld [vmem:[%s7768_s2 + $0x6c] ss:$40 sps:$4 sm:$0xff]  }
  0x5a   :  { %616 = vmatprep.subr.bf16.mxu0 %v6088_v9  ;;  %655 = vmatprep.subr.bf16.mxu1 %v6142_v25  ;;  %v6115_v46 = vld [vmem:[%s7768_s2 + $0x1a0] ss:$40 sps:$4 sm:$0xff]   ;;  %v6120_v47 = vld [vmem:[%s7768_s2 + $0x1f4] ss:$40 sps:$4 sm:$0xff]   ;;  %v6118_v50 = vld [vmem:[%s7768_s2 + $0x1f0] ss:$40 sps:$4 sm:$0xff]  }
  0x5b   :  { %v6172_v48 = vld [vmem:[%s7768_s2 + $0x18] ss:$40 sps:$4 sm:$0xff]   ;;  %v6123_v51 = vld [vmem:[%s7768_s2 + $0x244] ss:$40 sps:$4 sm:$0xff]   ;;  %v6175_v52 = vld [vmem:[%s7768_s2 + $0x68] ss:$40 sps:$4 sm:$0xff]  }
  0x5c   :  { %v6180_v53 = vld [vmem:[%s7768_s2 + $0xbc] ss:$40 sps:$4 sm:$0xff]   ;;  %v6121_v54 = vld [vmem:[%s7768_s2 + $0x240] ss:$40 sps:$4 sm:$0xff]   ;;  %v6183_v57 = vld [vmem:[%s7768_s2 + $0x10c] ss:$40 sps:$4 sm:$0xff]  }
  0x5d   :  { %617 = vmatpush1.bf16.msra.mxu0 %v6090_v10  ;;  %656 = vmatpush1.bf16.msra.mxu1 %v6144_v28  ;;  %v6129_v55 = vld [vmem:[%s7768_s2 + $0x24] ss:$40 sps:$4 sm:$0xff]   ;;  %v6178_v56 = vld [vmem:[%s7768_s2 + $0xb8] ss:$40 sps:$4 sm:$0xff]   ;;  %v6135_v59 = vld [vmem:[%s7768_s2 + $0x74] ss:$40 sps:$4 sm:$0xff]  }
  0x5e   :  { %618 = vmatprep.subr.bf16.mxu0 %v6091_v11  ;;  %657 = vmatprep.subr.bf16.mxu1 %v6148_v29  ;;  %v6127_v58 = vld [vmem:[%s7768_s2 + $0x20] ss:$40 sps:$4 sm:$0xff]   ;;  %v6186_v61 = vld [vmem:[%s7768_s2 + $0x15c] ss:$40 sps:$4 sm:$0xff]   ;;  %v6133_v62 = vld [vmem:[%s7768_s2 + $0x70] ss:$40 sps:$4 sm:$0xff]  }
  0x5f   :  { %v6181_v60 = vld [vmem:[%s7768_s2 + $0x108] ss:$40 sps:$4 sm:$0xff]   ;;  %v6141_v63 = vld [vmem:[%s7768_s2 + $0xc4] ss:$40 sps:$4 sm:$0xff]   ;;  %v6184_v1 = vld [vmem:[%s7768_s2 + $0x158] ss:$40 sps:$4 sm:$0xff]  }
  0x60   :  { %v6189_v2 = vld [vmem:[%s7768_s2 + $0x1ac] ss:$40 sps:$4 sm:$0xff]   ;;  %v6139_v3 = vld [vmem:[%s7768_s2 + $0xc0] ss:$40 sps:$4 sm:$0xff]   ;;  %v6145_v5 = vld [vmem:[%s7768_s2 + $0x110] ss:$40 sps:$4 sm:$0xff]  }
  0x61   :  { %619 = vmatpush1.bf16.msra.mxu0 %v6093_v12  ;;  %658 = vmatpush1.bf16.msra.mxu1 %v6150_v32  ;;  %v6147_v4 = vld [vmem:[%s7768_s2 + $0x114] ss:$40 sps:$4 sm:$0xff]   ;;  %v6187_v6 = vld [vmem:[%s7768_s2 + $0x1a8] ss:$40 sps:$4 sm:$0xff]   ;;  %v6153_v8 = vld [vmem:[%s7768_s2 + $0x164] ss:$40 sps:$4 sm:$0xff]  }
  0x62   :  { %620 = vmatprep.subr.bf16.mxu0 %v6094_v13  ;;  %659 = vmatprep.subr.bf16.mxu1 %v6154_v33  ;;  %v6192_v7 = vld [vmem:[%s7768_s2 + $0x1fc] ss:$40 sps:$4 sm:$0xff]   ;;  %v6190_v9 = vld [vmem:[%s7768_s2 + $0x1f8] ss:$40 sps:$4 sm:$0xff]   ;;  %v6195_v10 = vld [vmem:[%s7768_s2 + $0x24c] ss:$40 sps:$4 sm:$0xff]  }
  0x63   :  { %v6151_v11 = vld [vmem:[%s7768_s2 + $0x160] ss:$40 sps:$4 sm:$0xff]   ;;  %v6159_v12 = vld [vmem:[%s7768_s2 + $0x1b4] ss:$40 sps:$4 sm:$0xff]   ;;  %v6157_v15 = vld [vmem:[%s7768_s2 + $0x1b0] ss:$40 sps:$4 sm:$0xff]  }
  0x64   :  { %v6193_v13 = vld [vmem:[%s7768_s2 + $0x248] ss:$40 sps:$4 sm:$0xff]   ;;  %v6202_v25 = vld [vmem:[#allocation9 + $0x70] ss:$28 sps:$4 sm:$0xff]  }
  0x65   :  { %621 = vmatpush1.bf16.msra.mxu0 %v6096_v16  ;;  %660 = vmatpush1.bf16.msra.mxu1 %v6156_v36  ;;  %v6198_v14 = vld [vmem:[#allocation9 + $0x4] ss:$28 sps:$4 sm:$0xff]   ;;  %v6201_v18 = vld [vmem:[#allocation9 + $0x3c] ss:$28 sps:$4 sm:$0xff]   ;;  %v6216_v32 = vld [vmem:[#allocation9 + $0x154] ss:$28 sps:$4 sm:$0xff]  }
  0x66   :  { %622 = vmatprep.subr.bf16.mxu0 %v6097_v17  ;;  %661 = vmatprep.subr.bf16.mxu1 %v6160_v37  ;;  %v6165_v16 = vld [vmem:[%s7768_s2 + $0x204] ss:$40 sps:$4 sm:$0xff]   ;;  %v6163_v19 = vld [vmem:[%s7768_s2 + $0x200] ss:$40 sps:$4 sm:$0xff]   ;;  %v6169_v23 = vld [vmem:[%s7768_s2 + $0x250] ss:$40 sps:$4 sm:$0xff]  }
  0x67   :  { %v6196_v17 = vld [vmem:[#allocation9] ss:$28 sps:$4 sm:$0xff]   ;;  %v6199_v21 = vld [vmem:[#allocation9 + $0x38] ss:$28 sps:$4 sm:$0xff]   ;;  %v6214_v33 = vld [vmem:[#allocation9 + $0x150] ss:$28 sps:$4 sm:$0xff]  }
  0x68   :  { %v6210_v28 = vld [vmem:[#allocation9 + $0xe4] ss:$28 sps:$4 sm:$0xff]  }
  0x69   :  { %623 = vmatpush1.bf16.msra.mxu0 %v6099_v20  ;;  %662 = vmatpush1.bf16.msra.mxu1 %v6162_v40  ;;  %v6171_v20 = vld [vmem:[%s7768_s2 + $0x254] ss:$40 sps:$4 sm:$0xff]   ;;  %v6208_v29 = vld [vmem:[#allocation9 + $0xe0] ss:$28 sps:$4 sm:$0xff]  }
  0x6a   :  { %690 = vmatprep.subr.bf16.mxu0 %v6102_v22  ;;  %663 = vmatprep.subr.bf16.mxu1 %v6166_v41  ;;  %v6204_v22 = vld [vmem:[#allocation9 + $0x74] ss:$28 sps:$4 sm:$0xff]   ;;  %v6222_v36 = vld [vmem:[#allocation9 + $0x1c4] ss:$28 sps:$4 sm:$0xff]   ;;  %v6231_v41 = vld [vmem:[#allocation9 + $0x26c] ss:$28 sps:$4 sm:$0xff]  }
  0x6b   :  { %v6220_v37 = vld [vmem:[#allocation9 + $0x1c0] ss:$28 sps:$4 sm:$0xff]   ;;  %v6226_v40 = vld [vmem:[#allocation9 + $0x230] ss:$28 sps:$4 sm:$0xff]  }
  0x6c   :  { %641 = vmatmul.mubr.bf16.vlgmr.msra.gmra.mrb[0].mxu0 %v7255_v24 }
  0x6d   :  { %691 = vmatpush1.bf16.msra.mxu0 %v6100_v26  ;;  %722 = vmatprep.mubr.bf16.mxu0 %v7099_v0  ;;  %v6207_v26 = vld [vmem:[#allocation9 + $0xac] ss:$28 sps:$4 sm:$0xff]  }
  0x6e   :  { %692 = vmatprep.subr.bf16.mxu0 %v6105_v27  ;;  %664 = vmatpush1.bf16.msra.mxu1 %v6168_v44  ;;  %v6205_v27 = vld [vmem:[#allocation9 + $0xa8] ss:$28 sps:$4 sm:$0xff]   ;;  %v6232_v44 = vld [vmem:[#allocation9 + $0x2a0] ss:$28 sps:$4 sm:$0xff]  }
  0x6f   :  { %731 = vmatprep.subr.bf16.mxu1 %v6174_v45  ;;  %v6237_v45 = vld [vmem:[#allocation9 + $0x2dc] ss:$28 sps:$4 sm:$0xff]  }
  0x71   :  { %693 = vmatpush1.bf16.msra.mxu0 %v6103_v30  ;;  %682 = vmatmul.mubr.bf16.vlgmr.msra.gmra.mrb[0].mxu1 %v7255_v24  ;;  %v6213_v30 = vld [vmem:[#allocation9 + $0x11c] ss:$28 sps:$4 sm:$0xff]  }
  0x72   :  { %694 = vmatprep.subr.bf16.mxu0 %v6108_v31  ;;  %732 = vmatpush1.bf16.msra.mxu1 %v6172_v48  ;;  %v6211_v31 = vld [vmem:[#allocation9 + $0x118] ss:$28 sps:$4 sm:$0xff]   ;;  %v6238_v48 = vld [vmem:[#allocation9 + $0x310] ss:$28 sps:$4 sm:$0xff]  }
  0x73   :  { %763 = vmatprep.mubr.bf16.mxu1 %v7099_v0  ;;  %733 = vmatprep.subr.bf16.mxu1 %v6177_v49  ;;  %v6243_v49 = vld [vmem:[#allocation9 + $0x34c] ss:$28 sps:$4 sm:$0xff]  }
  0x75   :  { %695 = vmatpush1.bf16.msra.mxu0 %v6106_v34  ;;  %v6219_v34 = vld [vmem:[#allocation9 + $0x18c] ss:$28 sps:$4 sm:$0xff]  }
  0x76   :  { %696 = vmatprep.subr.bf16.mxu0 %v6111_v35  ;;  %734 = vmatpush1.bf16.msra.mxu1 %v6175_v52  ;;  %v6217_v35 = vld [vmem:[#allocation9 + $0x188] ss:$28 sps:$4 sm:$0xff]  }
  0x77   :  { %735 = vmatprep.subr.bf16.mxu1 %v6180_v53  ;;  %v6241_v52 = vld [vmem:[#allocation9 + $0x348] ss:$28 sps:$4 sm:$0xff]  }
  0x78   :  { %v6246_v53 = vld [vmem:[#allocation9 + $0x384] ss:$28 sps:$4 sm:$0xff]  }
  0x79   :  { %697 = vmatpush1.bf16.msra.mxu0 %v6109_v38  ;;  %v6223_v38 = vld [vmem:[#allocation9 + $0x1f8] ss:$28 sps:$4 sm:$0xff]  }
  0x7a   :  { %698 = vmatprep.subr.bf16.mxu0 %v6114_v39  ;;  %736 = vmatpush1.bf16.msra.mxu1 %v6178_v56  ;;  %v6228_v39 = vld [vmem:[#allocation9 + $0x234] ss:$28 sps:$4 sm:$0xff]  }
  0x7b   :  { %737 = vmatprep.subr.bf16.mxu1 %v6183_v57  ;;  %v6276_v56 = vld [vmem:[#allocation9 + $0xe74] ss:$28 sps:$4 sm:$0xff]  }
  0x7c   :  { %v6274_v57 = vld [vmem:[#allocation9 + $0xe70] ss:$28 sps:$4 sm:$0xff]  }
  0x7d   :  { %699 = vmatpush1.bf16.msra.mxu0 %v6112_v42  ;;  %v6229_v42 = vld [vmem:[#allocation9 + $0x268] ss:$28 sps:$4 sm:$0xff]  }
  0x7e   :  { %700 = vmatprep.subr.bf16.mxu0 %v6117_v43  ;;  %738 = vmatpush1.bf16.msra.mxu1 %v6181_v60  ;;  %v6234_v43 = vld [vmem:[#allocation9 + $0x2a4] ss:$28 sps:$4 sm:$0xff]  }
  0x7f   :  { %739 = vmatprep.subr.bf16.mxu1 %v6186_v61  ;;  %v6288_v60 = vld [vmem:[#allocation9 + $0xee4] ss:$28 sps:$4 sm:$0xff]  }
  0x80   :  { %v6286_v61 = vld [vmem:[#allocation9 + $0xee0] ss:$28 sps:$4 sm:$0xff]  }
  0x81   :  { %701 = vmatpush1.bf16.msra.mxu0 %v6115_v46  ;;  %v6235_v46 = vld [vmem:[#allocation9 + $0x2d8] ss:$28 sps:$4 sm:$0xff]  }
  0x82   :  { %702 = vmatprep.subr.bf16.mxu0 %v6120_v47  ;;  %740 = vmatpush1.bf16.msra.mxu1 %v6184_v1  ;;  %v6240_v47 = vld [vmem:[#allocation9 + $0x314] ss:$28 sps:$4 sm:$0xff]  }
  0x83   :  { %741 = vmatprep.subr.bf16.mxu1 %v6189_v2  ;;  %v6300_v1 = vld [vmem:[#allocation9 + $0xf54] ss:$28 sps:$4 sm:$0xff]  }
  0x84   :  { %v6298_v2 = vld [vmem:[#allocation9 + $0xf50] ss:$28 sps:$4 sm:$0xff]  }
  0x85   :  { %703 = vmatpush1.bf16.msra.mxu0 %v6118_v50  ;;  %v6264_v50 = vld [vmem:[#allocation9 + $0xe04] ss:$28 sps:$4 sm:$0xff]  }
  0x86   :  { %704 = vmatprep.subr.bf16.mxu0 %v6123_v51  ;;  %742 = vmatpush1.bf16.msra.mxu1 %v6187_v6  ;;  %v6262_v51 = vld [vmem:[#allocation9 + $0xe00] ss:$28 sps:$4 sm:$0xff]  }
  0x87   :  { %743 = vmatprep.subr.bf16.mxu1 %v6192_v7  ;;  %v6310_v6 = vld [vmem:[#allocation9 + $0xfc0] ss:$28 sps:$4 sm:$0xff]  }
  0x88   :  { %v6318_v7 = vld [vmem:[#allocation9 + $0xffc] ss:$28 sps:$4 sm:$0xff]  }
  0x89   :  { %705 = vmatpush1.bf16.msra.mxu0 %v6121_v54  ;;  %v6270_v54 = vld [vmem:[#allocation9 + $0xe3c] ss:$28 sps:$4 sm:$0xff]  }
  0x8a   :  { %772 = vmatprep.subr.bf16.mxu0 %v6129_v55  ;;  %744 = vmatpush1.bf16.msra.mxu1 %v6190_v9  ;;  %v6268_v55 = vld [vmem:[#allocation9 + $0xe38] ss:$28 sps:$4 sm:$0xff]  }
  0x8b   :  { %745 = vmatprep.subr.bf16.mxu1 %v6195_v10  ;;  %v6324_v9 = vld [vmem:[#allocation9 + $0x1034] ss:$28 sps:$4 sm:$0xff]   ;;  %v158_v10 = vlaneseq }
  0x8c   :  { %723 = vmatmul.mubr.bf16.vlgmr.msra.gmra.mrb[4].mxu0 %v7255_v24 }
  0x8d   :  { %773 = vmatpush1.bf16.msra.mxu0 %v6127_v58  ;;  %804 = vmatprep.mubr.bf16.mxu0 %v7099_v0  ;;  %v6282_v58 = vld [vmem:[#allocation9 + $0xeac] ss:$28 sps:$4 sm:$0xff]  }
  0x8e   :  { %774 = vmatprep.subr.bf16.mxu0 %v6135_v59  ;;  %746 = vmatpush1.bf16.msra.mxu1 %v6193_v13  ;;  %v6280_v59 = vld [vmem:[#allocation9 + $0xea8] ss:$28 sps:$4 sm:$0xff]   ;;  %v7436_v13 = vshrl.u32 %v158_v10, 7 }
  0x8f   :  { %4323 = vmatprep.subr.bf16.mxu1 %v6198_v14  ;;  %v7438_v14 = vand.u32 127, %v158_v10 }
  0x91   :  { %775 = vmatpush1.bf16.msra.mxu0 %v6133_v62  ;;  %764 = vmatmul.mubr.bf16.vlgmr.msra.gmra.mrb[4].mxu1 %v7255_v24  ;;  %v6294_v62 = vld [vmem:[#allocation9 + $0xf1c] ss:$28 sps:$4 sm:$0xff]   ;;  %v828_v10 = vadd.s32 1152, %v7438_v14 }
  0x92   :  { %776 = vmatprep.subr.bf16.mxu0 %v6141_v63  ;;  %4324 = vmatpush1.bf16.msra.mxu1 %v6196_v17  ;;  %v6292_v63 = vld [vmem:[#allocation9 + $0xf18] ss:$28 sps:$4 sm:$0xff]  }
  0x93   :  { %4325 = vmatprep.subr.bf16.mxu1 %v6201_v18 }
  0x95   :  { %777 = vmatpush1.bf16.msra.mxu0 %v6139_v3  ;;  %v6306_v3 = vld [vmem:[#allocation9 + $0xf8c] ss:$28 sps:$4 sm:$0xff]  }
  0x96   :  { %778 = vmatprep.subr.bf16.mxu0 %v6147_v4  ;;  %4326 = vmatpush1.bf16.msra.mxu1 %v6199_v21  ;;  %v6304_v4 = vld [vmem:[#allocation9 + $0xf88] ss:$28 sps:$4 sm:$0xff]  }
  0x97   :  { %4327 = vmatprep.subr.bf16.mxu1 %v6204_v22 }
  0x99   :  { %779 = vmatpush1.bf16.msra.mxu0 %v6145_v5  ;;  %v6312_v5 = vld [vmem:[#allocation9 + $0xfc4] ss:$28 sps:$4 sm:$0xff]  }
  0x9a   :  { %780 = vmatprep.subr.bf16.mxu0 %v6153_v8  ;;  %4328 = vmatpush1.bf16.msra.mxu1 %v6202_v25  ;;  %v6316_v8 = vld [vmem:[#allocation9 + $0xff8] ss:$28 sps:$4 sm:$0xff]  }
  0x9b   :  { %4329 = vmatprep.subr.bf16.mxu1 %v6207_v26 }
  0x9d   :  { %781 = vmatpush1.bf16.msra.mxu0 %v6151_v11  ;;  %v6322_v11 = vld [vmem:[#allocation9 + $0x1030] ss:$28 sps:$4 sm:$0xff]  }
  0x9e   :  { %782 = vmatprep.subr.bf16.mxu0 %v6159_v12  ;;  %4330 = vmatpush1.bf16.msra.mxu1 %v6205_v27  ;;  %v6330_v12 = vld [vmem:[#allocation9 + $0xc] ss:$28 sps:$4 sm:$0xff]  }
  0x9f   :  { %4331 = vmatprep.subr.bf16.mxu1 %v6210_v28 }
  0xa1   :  { %783 = vmatpush1.bf16.msra.mxu0 %v6157_v15  ;;  %v820_v15 = vadd.s32 128, %v7438_v14 }
  0xa2   :  { %784 = vmatprep.subr.bf16.mxu0 %v6165_v16  ;;  %4332 = vmatpush1.bf16.msra.mxu1 %v6208_v29  ;;  %v7442_v16 = vmul.u32 1200, %v7436_v13  ;;  %v822_v29 = vadd.s32 384, %v7438_v14 }
  0xa3   :  { %4333 = vmatprep.subr.bf16.mxu1 %v6213_v30 }
  0xa4   :  { %v831_v17 = vadd.s32 %v7442_v16, %v820_v15  ;;  %v830_v18 = vadd.s32 %v7442_v16, %v7438_v14  ;;  %v824_v15 = vadd.s32 640, %v7438_v14 }
  0xa5   :  { %785 = vmatpush1.bf16.msra.mxu0 %v6163_v19 }
  0xa6   :  { %786 = vmatprep.subr.bf16.mxu0 %v6171_v20  ;;  %4334 = vmatpush1.bf16.msra.mxu1 %v6211_v31  ;;  %v842_v19 = vmul.u32 2654435769, %v831_v17  ;;  %v7450_v20 = vstv %s7766_s0  ;;  %v841_v21 = vmul.u32 2654435769, %v830_v18  ;;  %v6253_v18 = vld [vmem:[#allocation9 + $0x428] ss:$28 sps:$4 sm:$0xff]  }
  0xa7   :  { %4335 = vmatprep.subr.bf16.mxu1 %v6216_v32  ;;  %v833_v32 = vadd.s32 %v7442_v16, %v822_v29  ;;  %s7100_s0 = smov [#allocation12]  }
  0xa8   :  { %v853_v22 = vadd.s32 %v7450_v20, %v842_v19  ;;  %v839_v19 = vadd.s32 %v7442_v16, %v828_v10  ;;  %s5193_s15 = sshll.u32 %s7100_s0, 4  ;;  %s5194_s15 = int_to_ptr.vmem [resolvable:$true] %s5193_s15 }
  0xa9   :  { %787 = vmatpush1.bf16.msra.mxu0 %v6169_v23  ;;  %v852_v23 = vadd.s32 %v7450_v20, %v841_v21  ;;  %v6258_v21 = vld [vmem:[#allocation9 + $0x464] ss:$28 sps:$4 sm:$0xff]   ;;  %s7063_s16 = scalar_lea.vmem %s5194_s15, 896  ;;  %p7068_p5 = scmp.lt.s32.totalorder %s5194_s15, %s5194_s15 }
  0xaa   :  { %4336 = vmatpush1.bf16.msra.mxu1 %v6214_v33  ;;  %4487 = vmatprep.subr.bf16.mxu0 %v6264_v50  ;;  %v863_v25 = vshrl.u32 %v853_v22, 16  ;;  %v850_v29 = vmul.u32 2654435769, %v839_v19  ;;  %p7064_p4 = scmp.ne.s32.totalorder %s5194_s15, %s7063_s16  ;;  %p7069_p6 = scmp.lt.s32.totalorder %s7063_s16, %s7063_s16 }
  0xab   :  { %4337 = vmatprep.subr.bf16.mxu1 %v6219_v34  ;;  %v862_v26 = vshrl.u32 %v852_v23, 16 }
  0xac   :  { %805 = vmatmul.mubr.bf16.vlgmr.msra.gmra.mrb[8].mxu0 %v7255_v24  ;;  %v6225_v24 = vld [vmem:[#allocation9 + $0x1fc] ss:$28 sps:$4 sm:$0xff]   ;;  %v873_v27 = vxor.u32 %v863_v25, %v853_v22  ;;  %v172_v25 = vsub.s32 3, %v7436_v13  ;;  %p7070_p7 = por %p7069_p6, %p7068_p5 }
  0xad   :  { %4488 = vmatpush1.bf16.msra.mxu0 %v6262_v51  ;;  %v872_v28 = vxor.u32 %v862_v26, %v852_v23  ;;  %v827_v23 = vadd.s32 1024, %v7438_v14  ;;  %v835_v26 = vadd.s32 %v7442_v16, %v824_v15  ;;  %v6283_v15 = vld [vmem:[#allocation9 + $0x578] ss:$28 sps:$4 sm:$0xff]  }
  0xae   :  { %4338 = vmatpush1.bf16.msra.mxu1 %v6217_v35  ;;  %4489 = vmatprep.subr.bf16.mxu0 %v6270_v54  ;;  %v883_v30 = vmul.u32 2146121005, %v873_v27  ;;  %v844_v35 = vmul.u32 2654435769, %v833_v32  ;;  %p7071_p8 = pnand %p7070_p7, %p7064_p4 }
  0xaf   :  { %4339 = vmatprep.subr.bf16.mxu1 %v6222_v36  ;;  %v882_v31 = vmul.u32 2146121005, %v872_v28  ;;  %v6256_v28 = vld [vmem:[#allocation9 + $0x460] ss:$28 sps:$4 sm:$0xff]   ;;  %v838_v32 = vadd.s32 %v7442_v16, %v827_v23 }
  0xb0   :  { %v893_v33 = vshrl.u32 %v883_v30, 15 }
  0xb1   :  { %4490 = vmatpush1.bf16.msra.mxu0 %v6268_v55  ;;  %v892_v34 = vshrl.u32 %v882_v31, 15 }
  0xb2   :  { %4340 = vmatpush1.bf16.msra.mxu1 %v6220_v37  ;;  %4491 = vmatprep.subr.bf16.mxu0 %v6276_v56  ;;  %v903_v36 = vxor.u32 %v893_v33, %v883_v30  ;;  %v6261_v30 = vld [vmem:[#allocation9 + $0x49c] ss:$28 sps:$4 sm:$0xff]  }
  0xb3   :  { %4341 = vmatprep.subr.bf16.mxu1 %v6225_v24  ;;  %v902_v37 = vxor.u32 %v892_v34, %v882_v31  ;;  %v855_v24 = vadd.s32 %v7450_v20, %v844_v35  ;;  %v846_v34 = vmul.u32 2654435769, %v835_v26  ;;  %v6259_v35 = vld [vmem:[#allocation9 + $0x498] ss:$28 sps:$4 sm:$0xff]   ;;  %v6289_v26 = vld [vmem:[#allocation9 + $0x5b0] ss:$28 sps:$4 sm:$0xff]  }
  0xb5   :  { %4492 = vmatpush1.bf16.msra.mxu0 %v6274_v57 }
  0xb6   :  { %4342 = vmatpush1.bf16.msra.mxu1 %v6223_v38  ;;  %4493 = vmatprep.subr.bf16.mxu0 %v6282_v58  ;;  %v913_v38 = vmul.u32 2221713035, %v903_v36 }
  0xb7   :  { %4343 = vmatprep.subr.bf16.mxu1 %v6228_v39  ;;  %v912_v39 = vmul.u32 2221713035, %v902_v37  ;;  %v861_v37 = vadd.s32 %v7450_v20, %v850_v29  ;;  %v6297_v29 = vld [vmem:[#allocation9 + $0x5ec] ss:$28 sps:$4 sm:$0xff]  }
  0xb9   :  { %4494 = vmatpush1.bf16.msra.mxu0 %v6280_v59 }
  0xba   :  { %4344 = vmatpush1.bf16.msra.mxu1 %v6226_v40  ;;  %4495 = vmatprep.subr.bf16.mxu0 %v6288_v60  ;;  %v865_v40 = vshrl.u32 %v855_v24, 16 }
  0xbb   :  { %4345 = vmatprep.subr.bf16.mxu1 %v6231_v41  ;;  %v923_v41 = vshrl.u32 %v913_v38, 16 }
  0xbd   :  { %4496 = vmatpush1.bf16.msra.mxu0 %v6286_v61  ;;  %v6798_v61 = vld [vmem:[#allocation9 + $0x2b8] ss:$28 sps:$4 sm:$0xff]  }
  0xbe   :  { %4346 = vmatpush1.bf16.msra.mxu1 %v6229_v42  ;;  %4497 = vmatprep.subr.bf16.mxu0 %v6294_v62  ;;  %v922_v42 = vshrl.u32 %v912_v39, 16  ;;  %v6244_v62 = vld [vmem:[#allocation9 + $0x380] ss:$28 sps:$4 sm:$0xff]  }
  0xbf   :  { %4347 = vmatprep.subr.bf16.mxu1 %v6234_v43  ;;  %v875_v43 = vxor.u32 %v865_v40, %v855_v24  ;;  %v6267_v24 = vld [vmem:[#allocation9 + $0x4d4] ss:$28 sps:$4 sm:$0xff]   ;;  %v849_v40 = vmul.u32 2654435769, %v838_v32  ;;  %v6295_v32 = vld [vmem:[#allocation9 + $0x5e8] ss:$28 sps:$4 sm:$0xff]  }
  0xc1   :  { %4498 = vmatpush1.bf16.msra.mxu0 %v6292_v63 }
  0xc2   :  { %4348 = vmatpush1.bf16.msra.mxu1 %v6232_v44  ;;  %4499 = vmatprep.subr.bf16.mxu0 %v6300_v1  ;;  %v933_v44 = vxor.u32 %v923_v41, %v913_v38 }
  0xc3   :  { %4349 = vmatprep.subr.bf16.mxu1 %v6237_v45  ;;  %v932_v45 = vxor.u32 %v922_v42, %v912_v39  ;;  %v6833_v42 = vld [vmem:[#allocation9 + $0x600] ss:$28 sps:$4 sm:$0xff]  }
  0xc4   :  { %v943_v50 = vand.u32 2147483648, %v933_v44 }
  0xc5   :  { %4500 = vmatpush1.bf16.msra.mxu0 %v6298_v2  ;;  %v942_v51 = vand.u32 2147483648, %v932_v45  ;;  %v6249_v2 = vld [vmem:[#allocation9 + $0x3bc] ss:$28 sps:$4 sm:$0xff]  }
  0xc6   :  { %4350 = vmatpush1.bf16.msra.mxu1 %v6235_v46  ;;  %4501 = vmatprep.subr.bf16.mxu0 %v6306_v3  ;;  %v885_v46 = vmul.u32 2146121005, %v875_v43  ;;  %vm953_vm0 = vcmp.ne.s32.totalorder %v943_v50, 0  ;;  %v857_v43 = vadd.s32 %v7450_v20, %v846_v34 }
  0xc7   :  { %4351 = vmatprep.subr.bf16.mxu1 %v6240_v47  ;;  %v7458_v47 = vsub.s32 0, %v7436_v13  ;;  %vm952_vm1 = vcmp.ne.s32.totalorder %v942_v51, 0  ;;  %vm7469_vm2 = vmpackc.low %vm953_vm0, %vm953_vm0  ;;  %v871_v51 = vshrl.u32 %v861_v37, 16 }
  0xc8   :  { %vm7477_vm3 = vmpackc.low %vm952_vm1, %vm952_vm1 }
  0xc9   :  { %4502 = vmatpush1.bf16.msra.mxu0 %v6304_v4 }
  0xca   :  { %4352 = vmatpush1.bf16.msra.mxu1 %v6238_v48  ;;  %4503 = vmatprep.subr.bf16.mxu0 %v6312_v5  ;;  %v7460_v48 = vld [vmem:[#allocation7] sm:$0xff] }
  0xcb   :  { %4353 = vmatprep.subr.bf16.mxu1 %v6243_v49  ;;  %v7463_v49 = vsub.s32 1, %v7436_v13  ;;  %v173_v33 = vrot.slane %v7460_v48, %v172_v25 }
  0xcd   :  { %4504 = vmatpush1.bf16.msra.mxu0 %v6310_v6  ;;  %v165_v54 = vrot.slane %v7460_v48, %v7463_v49  ;;  %v6247_v6 = vld [vmem:[#allocation9 + $0x3b8] ss:$28 sps:$4 sm:$0xff]  }
  0xce   :  { %4354 = vmatpush1.bf16.msra.mxu1 %v6241_v52  ;;  %4505 = vmatprep.subr.bf16.mxu0 %v6318_v7  ;;  %v895_v52 = vshrl.u32 %v885_v46, 15  ;;  %v6252_v7 = vld [vmem:[#allocation9 + $0x3f4] ss:$28 sps:$4 sm:$0xff]  }
  0xcf   :  { %4364 = vmatprep.subr.bf16.mxu1 %v6246_v53  ;;  %v161_v53 = vrot.slane %v7460_v48, %v7458_v47 }
  0xd0   :  { %v905_v56 = vxor.u32 %v895_v52, %v885_v46  ;;  %v6265_v46 = vld [vmem:[#allocation9 + $0x4d0] ss:$28 sps:$4 sm:$0xff]  }
  0xd1   :  { %4506 = vmatpush1.bf16.msra.mxu0 %v6316_v8  ;;  %v6273_v52 = vld [vmem:[#allocation9 + $0x50c] ss:$28 sps:$4 sm:$0xff]  }
  0xd2   :  { %4507 = vmatprep.subr.bf16.mxu0 %v6324_v9  ;;  %v915_v5 = vmul.u32 2221713035, %v905_v56  ;;  %v6250_v9 = vld [vmem:[#allocation9 + $0x3f0] ss:$28 sps:$4 sm:$0xff]   ;;  %v6271_v56 = vld [vmem:[#allocation9 + $0x508] ss:$28 sps:$4 sm:$0xff]  }
  0xd4   :  { %v925_v8 = vshrl.u32 %v915_v5, 16 }
  0xd5   :  { %4508 = vmatpush1.bf16.msra.mxu0 %v6322_v11  ;;  %v821_v11 = vadd.s32 256, %v7438_v14 }
  0xd6   :  { %4528 = vmatprep.subr.bf16.mxu0 %v6330_v12  ;;  %v6255_v12 = vld [vmem:[#allocation9 + $0x42c] ss:$28 sps:$4 sm:$0xff]   ;;  %v935_v17 = vxor.u32 %v925_v8, %v915_v5 }
  0xd7   :  { %v832_v22 = vadd.s32 %v7442_v16, %v821_v11 }
  0xd8   :  { %v945_v27 = vand.u32 2147483648, %v935_v17 }
  0xd9   :  { %v843_v31 = vmul.u32 2654435769, %v832_v22 }
  0xda   :  { %vm955_vm4 = vcmp.ne.s32.totalorder %v945_v27, 0 }
  0xdb   :  { %v854_v39 = vadd.s32 %v7450_v20, %v843_v31  ;;  %vm7503_vm5 = vmpackc.low %vm955_vm4, %vm955_vm4 }
 0x13f   :  { %v642_v55 = vpop.f32.mrb[0].mxu0 }
 0x140   :  { %v643_v57 = vadd.f32 %v642_v55, %v161_v53  ;;  %v644_v58 = vpop.f32.mrb[1].mxu0  ;;  %v864_v53 = vshrl.u32 %v854_v39, 16  ;;  %v867_v55 = vshrl.u32 %v857_v43, 16 }
 0x141   :  { %v645_v59 = vadd.f32 %v644_v58, %v165_v54  ;;  %v646_v60 = vpop.f32.mrb[2].mxu0  ;;  %v860_v54 = vadd.s32 %v7450_v20, %v849_v40 }
 0x142   :  { %v7473_v63 = vpack.c.bf16 %v643_v57, %v643_v57  ;;  %v647_v1 = vpop.f32.mrb[3].mxu0  ;;  %v881_v57 = vxor.u32 %v871_v51, %v861_v37  ;;  %v874_v58 = vxor.u32 %v864_v53, %v854_v39  ;;  %v6315_v53 = vld [vmem:[#allocation9 + $0x694] ss:$28 sps:$4 sm:$0xff]  }
 0x143   :  { %v7475_v3 = vpack.c.bf16 %v645_v59, %v645_v59  ;;  %v870_v59 = vshrl.u32 %v860_v54, 16  ;;  %v877_v1 = vxor.u32 %v867_v55, %v857_v43  ;;  %v180_v55 = vsub.s32 5, %v7436_v13 }
 0x144   :  { %v7499_v36 = vpop.f32.mrb[0].mxu1  ;;  %v884_v10 = vmul.u32 2146121005, %v874_v58 }
 0x145   :  { %5811 = vmatprep.mubr.msk.bf16.mxu1 %vm7469_vm2, %v7475_v3  ;;  %v685_v38 = vpop.f32.mrb[1].mxu1  ;;  %v880_v11 = vxor.u32 %v870_v59, %v860_v54 }
 0x146   :  { %5814 = vmatmul.mubr.msk.bf16.vlgmr.msra.gmra.mrb[8].mxu1 %vm7477_vm3, %v7473_v63  ;;  %v686_v41 = vadd.f32 %v685_v38, %v173_v33  ;;  %v687_v44 = vpop.f32.mrb[2].mxu1  ;;  %v894_v19 = vshrl.u32 %v884_v10, 15 }
 0x147   :  { %4365 = vmatpush1.bf16.msra.mxu1 %v6244_v62  ;;  %v688_v45 = vpop.f32.mrb[3].mxu1  ;;  %v6279_v62 = vld [vmem:[#allocation9 + $0x544] ss:$28 sps:$4 sm:$0xff]   ;;  %v168_v44 = vsub.s32 2, %v7436_v13 }
 0x148   :  { %4366 = vmatprep.subr.bf16.mxu1 %v6249_v2  ;;  %v7508_v50 = vpack.c.bf16 %v686_v41, %v686_v41  ;;  %v904_v27 = vxor.u32 %v894_v19, %v884_v10  ;;  %v6309_v41 = vld [vmem:[#allocation9 + $0x65c] ss:$28 sps:$4 sm:$0xff]   ;;  %v6327_v19 = vld [vmem:[#allocation9 + $0x704] ss:$28 sps:$4 sm:$0xff]  }
 0x149   :  { %v169_v58 = vrot.slane %v7460_v48, %v168_v44 }
 0x14a   :  { %5817 = vmatprep.mubr.msk.bf16.mxu1 %vm7503_vm5, %v7508_v50  ;;  %v914_v33 = vmul.u32 2221713035, %v904_v27 }
 0x14b   :  { %4367 = vmatpush1.bf16.msra.mxu1 %v6247_v6  ;;  %v6277_v6 = vld [vmem:[#allocation9 + $0x540] ss:$28 sps:$4 sm:$0xff]  }
 0x14c   :  { %4368 = vmatprep.subr.bf16.mxu1 %v6252_v7  ;;  %v891_v7 = vmul.u32 2146121005, %v881_v57  ;;  %v924_v39 = vshrl.u32 %v914_v33, 16  ;;  %v155_v57 = vld [vmem:[#allocation7 + $0x8] sm:$0x3] }
 0x14e   :  { %v901_v17 = vshrl.u32 %v891_v7, 15 }
 0x14f   :  { %4369 = vmatpush1.bf16.msra.mxu1 %v6250_v9  ;;  %v6285_v9 = vld [vmem:[#allocation9 + $0x57c] ss:$28 sps:$4 sm:$0xff]  }
 0x150   :  { %4370 = vmatprep.subr.bf16.mxu1 %v6255_v12  ;;  %v887_v12 = vmul.u32 2146121005, %v877_v1  ;;  %v911_v23 = vxor.u32 %v901_v17, %v891_v7  ;;  %v181_v7 = vrot.slane %v7460_v48, %v180_v55  ;;  %v6360_v17 = vld [vmem:[#allocation9 + $0x124] ss:$28 sps:$4 sm:$0xff]  }
 0x152   :  { %v897_v22 = vshrl.u32 %v887_v12, 15  ;;  %v921_v31 = vmul.u32 2221713035, %v911_v23 }
 0x153   :  { %4371 = vmatpush1.bf16.msra.mxu1 %v6253_v18  ;;  %v6291_v18 = vld [vmem:[#allocation9 + $0x5b4] ss:$28 sps:$4 sm:$0xff]  }
 0x154   :  { %4372 = vmatprep.subr.bf16.mxu1 %v6258_v21  ;;  %v890_v21 = vmul.u32 2146121005, %v880_v11  ;;  %v931_v38 = vshrl.u32 %v921_v31, 16  ;;  %v684_v11 = vadd.f32 %v7499_v36, %v169_v58  ;;  %v6348_v58 = vld [vmem:[#allocation9 + $0xb4] ss:$28 sps:$4 sm:$0xff]  }
 0x156   :  { %v941_v45 = vxor.u32 %v931_v38, %v921_v31  ;;  %v6328_v38 = vld [vmem:[#allocation9 + $0x8] ss:$28 sps:$4 sm:$0xff]  }
 0x157   :  { %4373 = vmatpush1.bf16.msra.mxu1 %v6256_v28  ;;  %v900_v28 = vshrl.u32 %v890_v21, 15 }
 0x158   :  { %4374 = vmatprep.subr.bf16.mxu1 %v6261_v30  ;;  %v907_v30 = vxor.u32 %v897_v22, %v887_v12  ;;  %v951_v59 = vand.u32 2147483648, %v941_v45  ;;  %v6339_v45 = vld [vmem:[#allocation9 + $0x774] ss:$28 sps:$4 sm:$0xff]   ;;  %v6352_v12 = vld [vmem:[#allocation9 + $0xe8] ss:$28 sps:$4 sm:$0xff]  }
 0x159   :  { %v910_v34 = vxor.u32 %v900_v28, %v890_v21 }
 0x15a   :  { %v917_v37 = vmul.u32 2221713035, %v907_v30  ;;  %vm7531_vm6 = vcmp.ne.s32.totalorder %v951_v59, 0  ;;  %v826_v59 = vadd.s32 896, %v7438_v14 }
 0x15b   :  { %4375 = vmatpush1.bf16.msra.mxu1 %v6259_v35  ;;  %v6303_v35 = vld [vmem:[#allocation9 + $0x624] ss:$28 sps:$4 sm:$0xff]   ;;  %v920_v40 = vmul.u32 2221713035, %v910_v34 }
 0x15c   :  { %4376 = vmatprep.subr.bf16.mxu1 %v6267_v24  ;;  %v6301_v24 = vld [vmem:[#allocation9 + $0x620] ss:$28 sps:$4 sm:$0xff]   ;;  %v927_v43 = vshrl.u32 %v917_v37, 16 }
 0x15d   :  { %v930_v51 = vshrl.u32 %v920_v40, 16 }
 0x15e   :  { %v937_v54 = vxor.u32 %v927_v43, %v917_v37  ;;  %v6333_v37 = vld [vmem:[#allocation9 + $0x73c] ss:$28 sps:$4 sm:$0xff]  }
 0x15f   :  { %4377 = vmatpush1.bf16.msra.mxu1 %v6265_v46  ;;  %v7514_v60 = vpop.f32.mrb[4].mxu0  ;;  %v934_v46 = vxor.u32 %v924_v39, %v914_v33  ;;  %v940_v1 = vxor.u32 %v930_v51, %v920_v40  ;;  %v6325_v33 = vld [vmem:[#allocation9 + $0x700] ss:$28 sps:$4 sm:$0xff]   ;;  %v6331_v43 = vld [vmem:[#allocation9 + $0x738] ss:$28 sps:$4 sm:$0xff]  }
 0x160   :  { %v7516_v2 = vpop.f32.mrb[5].mxu0  ;;  %4378 = vmatprep.subr.bf16.mxu1 %v6273_v52  ;;  %v6307_v52 = vld [vmem:[#allocation9 + $0x658] ss:$28 sps:$4 sm:$0xff]   ;;  %v6337_v51 = vld [vmem:[#allocation9 + $0x770] ss:$28 sps:$4 sm:$0xff]  }
 0x161   :  { %v728_v5 = vpop.f32.mrb[6].mxu0  ;;  %v727_v36 = vadd.f32 %v7516_v2, %v181_v7  ;;  %v6354_v7 = vld [vmem:[#allocation9 + $0xec] ss:$28 sps:$4 sm:$0xff]   ;;  %v6877_v2 = vld [vmem:[#allocation9 + $0xddc] ss:$28 sps:$4 sm:$0xff]  }
 0x162   :  { %v729_v8 = vpop.f32.mrb[7].mxu0  ;;  %v6321_v5 = vld [vmem:[#allocation9 + $0x6cc] ss:$28 sps:$4 sm:$0xff]  }
 0x163   :  { %4379 = vmatpush1.bf16.msra.mxu1 %v6271_v56  ;;  %v6313_v56 = vld [vmem:[#allocation9 + $0x690] ss:$28 sps:$4 sm:$0xff]   ;;  %v193_v8 = vrot.slane %v155_v57, %v7458_v47 }
 0x164   :  { %4380 = vmatprep.subr.bf16.mxu1 %v6279_v62  ;;  %v944_v62 = vand.u32 2147483648, %v934_v46  ;;  %v7528_v10 = vpop.f32.mrb[4].mxu1  ;;  %v6334_v46 = vld [vmem:[#allocation9 + $0x40] ss:$28 sps:$4 sm:$0xff]  }
 0x165   :  { %v7539_v21 = vpop.f32.mrb[5].mxu1 }
 0x166   :  { %vm7535_vm7 = vcmp.ne.s32.totalorder %v944_v62, 0  ;;  %v769_v23 = vpop.f32.mrb[6].mxu1  ;;  %v6351_v62 = vld [vmem:[#allocation9 + $0x7e4] ss:$28 sps:$4 sm:$0xff]  }
 0x167   :  { %4381 = vmatpush1.bf16.msra.mxu1 %v6277_v6  ;;  %v947_v6 = vand.u32 2147483648, %v937_v54  ;;  %v770_v28 = vpop.f32.mrb[7].mxu1  ;;  %vm7547_vm9 = vmpackc.low %vm7535_vm7, %vm7535_vm7  ;;  %v823_v54 = vadd.s32 512, %v7438_v14  ;;  %v6361_v23 = vld [vmem:[#allocation9 + $0x850] ss:$28 sps:$4 sm:$0xff]  }
 0x168   :  { %4382 = vmatprep.subr.bf16.mxu1 %v6285_v9  ;;  %v197_v9 = vrot.slane %v155_v57, %v7463_v49  ;;  %v6343_v57 = vld [vmem:[#allocation9 + $0x7a8] ss:$28 sps:$4 sm:$0xff]  }
 0x169   :  { %vm957_vm8 = vcmp.ne.s32.totalorder %v947_v6, 0  ;;  %v6349_v6 = vld [vmem:[#allocation9 + $0x7e0] ss:$28 sps:$4 sm:$0xff]  }
 0x16a   :  { %vm7553_vm11 = vmpackc.low %vm957_vm8, %vm957_vm8 }
 0x16b   :  { %4383 = vmatpush1.bf16.msra.mxu1 %v6283_v15  ;;  %v6319_v15 = vld [vmem:[#allocation9 + $0x6c8] ss:$28 sps:$4 sm:$0xff]  }
 0x16c   :  { %4384 = vmatprep.subr.bf16.mxu1 %v6291_v18  ;;  %v950_v18 = vand.u32 2147483648, %v940_v1  ;;  %v834_v1 = vadd.s32 %v7442_v16, %v823_v54 }
 0x16e   :  { %vm960_vm10 = vcmp.ne.s32.totalorder %v950_v18, 0 }
 0x16f   :  { %4385 = vmatpush1.bf16.msra.mxu1 %v6289_v26  ;;  %vm7561_vm13 = vmpackc.low %vm960_vm10, %vm960_vm10 }
 0x170   :  { %4386 = vmatprep.subr.bf16.mxu1 %v6297_v29  ;;  %v7542_v29 = vpack.c.bf16 %v684_v11, %v684_v11  ;;  %v845_v11 = vmul.u32 2654435769, %v834_v1 }
 0x173   :  { %4387 = vmatpush1.bf16.msra.mxu1 %v6295_v32  ;;  %v6873_v32 = vld [vmem:[#allocation9 + $0x980] ss:$28 sps:$4 sm:$0xff]  }
 0x174   :  { %4388 = vmatprep.subr.bf16.mxu1 %v6303_v35 }
 0x177   :  { %4389 = vmatpush1.bf16.msra.mxu1 %v6301_v24  ;;  %v7559_v24 = vpack.c.bf16 %v727_v36, %v727_v36  ;;  %v6366_v36 = vld [vmem:[#allocation9 + $0x15c] ss:$28 sps:$4 sm:$0xff]  }
 0x178   :  { %4390 = vmatprep.subr.bf16.mxu1 %v6309_v41  ;;  %v6336_v41 = vld [vmem:[#allocation9 + $0x44] ss:$28 sps:$4 sm:$0xff]  }
 0x17b   :  { %4391 = vmatpush1.bf16.msra.mxu1 %v6307_v52  ;;  %v6342_v52 = vld [vmem:[#allocation9 + $0x7c] ss:$28 sps:$4 sm:$0xff]  }
 0x17c   :  { %4392 = vmatprep.subr.bf16.mxu1 %v6315_v53  ;;  %v6345_v53 = vld [vmem:[#allocation9 + $0x7ac] ss:$28 sps:$4 sm:$0xff]  }
 0x17f   :  { %4393 = vmatpush1.bf16.msra.mxu1 %v6313_v56  ;;  %v806_v48 = vpop.f32.mrb[8].mxu0  ;;  %v6340_v56 = vld [vmem:[#allocation9 + $0x78] ss:$28 sps:$4 sm:$0xff]  }
 0x180   :  { %v808_v22 = vpop.f32.mrb[9].mxu0  ;;  %4394 = vmatprep.subr.bf16.mxu1 %v6321_v5  ;;  %v807_v30 = vadd.f32 %v806_v48, %v193_v8  ;;  %v6346_v5 = vld [vmem:[#allocation9 + $0xb0] ss:$28 sps:$4 sm:$0xff]   ;;  %v837_v8 = vadd.s32 %v7442_v16, %v826_v59 }
 0x181   :  { %v809_v26 = vadd.f32 %v808_v22, %v197_v9  ;;  %v810_v27 = vpop.f32.mrb[10].mxu0  ;;  %v6357_v9 = vld [vmem:[#allocation9 + $0x81c] ss:$28 sps:$4 sm:$0xff]   ;;  %v6363_v48 = vld [vmem:[#allocation9 + $0x854] ss:$28 sps:$4 sm:$0xff]  }
 0x182   :  { %v811_v31 = vpop.f32.mrb[11].mxu0  ;;  %v7565_v40 = vpack.c.bf16 %v807_v30, %v807_v30  ;;  %v848_v18 = vmul.u32 2654435769, %v837_v8  ;;  %v6358_v22 = vld [vmem:[#allocation9 + $0x120] ss:$28 sps:$4 sm:$0xff]  }
 0x183   :  { %v971_v34 = vsel %vm7531_vm6, %v809_v26, 0.0  ;;  %4395 = vmatpush1.bf16.msra.mxu1 %v6319_v15  ;;  %v6355_v15 = vld [vmem:[#allocation9 + $0x818] ss:$28 sps:$4 sm:$0xff]   ;;  %v6369_v27 = vld [vmem:[#allocation9 + $0x88c] ss:$28 sps:$4 sm:$0xff]  }
 0x184   :  { %v7557_v35 = vpack.c.bf16 %v971_v34, %v971_v34  ;;  %4405 = vmatprep.subr.bf16.mxu1 %v6327_v19  ;;  %v856_v19 = vadd.s32 %v7450_v20, %v845_v11  ;;  %v859_v26 = vadd.s32 %v7450_v20, %v848_v18  ;;  %v6364_v30 = vld [vmem:[#allocation9 + $0x158] ss:$28 sps:$4 sm:$0xff]   ;;  %v6367_v31 = vld [vmem:[#allocation9 + $0x888] ss:$28 sps:$4 sm:$0xff]  }
 0x186   :  { %5820 = vmatmul.mubr.msk.bf16.vlgmr.msra.gmra.mrb[8].mxu1 %vm7547_vm9, %v7542_v29  ;;  %5833 = vmatprep.mubr.msk.bf16.mxu0 %vm4319_vm12, %v7557_v35  ;;  %v866_v28 = vshrl.u32 %v856_v19, 16  ;;  %v869_v34 = vshrl.u32 %v859_v26, 16 }
 0x187   :  { %4406 = vmatpush1.bf16.msra.mxu1 %v6325_v33  ;;  %5823 = vmatprep.mubr.msk.bf16.mxu1 %vm7553_vm11, %v7559_v24  ;;  %v6372_v33 = vld [vmem:[#allocation9 + $0x194] ss:$28 sps:$4 sm:$0xff]  }
 0x188   :  { %5836 = vmatmul.mubr.msk.bf16.vlgmr.msra.gmra.mrb[12].mxu0 %vm7561_vm13, %v7565_v40  ;;  %4407 = vmatprep.subr.bf16.mxu1 %v6333_v37  ;;  %v6375_v37 = vld [vmem:[#allocation9 + $0x8c4] ss:$28 sps:$4 sm:$0xff]  }
 0x189   :  { %4529 = vmatpush1.bf16.msra.mxu0 %v6328_v38  ;;  %5839 = vmatprep.mubr.msk.bf16.mxu0 %vm7469_vm2, %v7475_v3  ;;  %v876_v38 = vxor.u32 %v866_v28, %v856_v19 }
 0x18a   :  { %4530 = vmatprep.subr.bf16.mxu0 %v6336_v41  ;;  %v6370_v41 = vld [vmem:[#allocation9 + $0x190] ss:$28 sps:$4 sm:$0xff]  }
 0x18b   :  { %4408 = vmatpush1.bf16.msra.mxu1 %v6331_v43  ;;  %v6373_v43 = vld [vmem:[#allocation9 + $0x8c0] ss:$28 sps:$4 sm:$0xff]  }
 0x18c   :  { %4409 = vmatprep.subr.bf16.mxu1 %v6339_v45  ;;  %v6378_v45 = vld [vmem:[#allocation9 + $0x1cc] ss:$28 sps:$4 sm:$0xff]  }
 0x18d   :  { %4531 = vmatpush1.bf16.msra.mxu0 %v6334_v46  ;;  %v879_v46 = vxor.u32 %v869_v34, %v859_v26  ;;  %v176_v34 = vsub.s32 4, %v7436_v13 }
 0x18e   :  { %4532 = vmatprep.subr.bf16.mxu0 %v6342_v52  ;;  %v886_v52 = vmul.u32 2146121005, %v876_v38 }
 0x18f   :  { %4410 = vmatpush1.bf16.msra.mxu1 %v6337_v51  ;;  %v6381_v51 = vld [vmem:[#allocation9 + $0x8fc] ss:$28 sps:$4 sm:$0xff]   ;;  %v889_v54 = vmul.u32 2146121005, %v879_v46  ;;  %v6409_v46 = vld [vmem:[#allocation9 + $0xa10] ss:$28 sps:$4 sm:$0xff]  }
 0x190   :  { %4411 = vmatprep.subr.bf16.mxu1 %v6345_v53  ;;  %v6376_v53 = vld [vmem:[#allocation9 + $0x1c8] ss:$28 sps:$4 sm:$0xff]   ;;  %v896_v59 = vshrl.u32 %v886_v52, 15 }
 0x191   :  { %4533 = vmatpush1.bf16.msra.mxu0 %v6340_v56  ;;  %v6384_v56 = vld [vmem:[#allocation9 + $0x204] ss:$28 sps:$4 sm:$0xff]   ;;  %v899_v1 = vshrl.u32 %v889_v54, 15 }
 0x192   :  { %4534 = vmatprep.subr.bf16.mxu0 %v6348_v58  ;;  %v6387_v58 = vld [vmem:[#allocation9 + $0x934] ss:$28 sps:$4 sm:$0xff]   ;;  %v906_v8 = vxor.u32 %v896_v59, %v886_v52 }
 0x193   :  { %4412 = vmatpush1.bf16.msra.mxu1 %v6343_v57  ;;  %v6379_v57 = vld [vmem:[#allocation9 + $0x8f8] ss:$28 sps:$4 sm:$0xff]   ;;  %v909_v11 = vxor.u32 %v899_v1, %v889_v54  ;;  %v6417_v54 = vld [vmem:[#allocation9 + $0xa4c] ss:$28 sps:$4 sm:$0xff]  }
 0x194   :  { %4413 = vmatprep.subr.bf16.mxu1 %v6351_v62  ;;  %v6382_v62 = vld [vmem:[#allocation9 + $0x200] ss:$28 sps:$4 sm:$0xff]   ;;  %v916_v18 = vmul.u32 2221713035, %v906_v8  ;;  %v6420_v59 = vld [vmem:[#allocation9 + $0x354] ss:$28 sps:$4 sm:$0xff]  }
 0x195   :  { %4535 = vmatpush1.bf16.msra.mxu0 %v6346_v5  ;;  %v6390_v5 = vld [vmem:[#allocation9 + $0x23c] ss:$28 sps:$4 sm:$0xff]   ;;  %v919_v19 = vmul.u32 2221713035, %v909_v11  ;;  %v6426_v8 = vld [vmem:[#allocation9 + $0x38c] ss:$28 sps:$4 sm:$0xff]  }
 0x196   :  { %4536 = vmatprep.subr.bf16.mxu0 %v6354_v7  ;;  %v6393_v7 = vld [vmem:[#allocation9 + $0x96c] ss:$28 sps:$4 sm:$0xff]   ;;  %v926_v26 = vshrl.u32 %v916_v18, 16  ;;  %v6421_v11 = vld [vmem:[#allocation9 + $0xa80] ss:$28 sps:$4 sm:$0xff]  }
 0x197   :  { %4414 = vmatpush1.bf16.msra.mxu1 %v6349_v6  ;;  %v6385_v6 = vld [vmem:[#allocation9 + $0x930] ss:$28 sps:$4 sm:$0xff]   ;;  %v929_v28 = vshrl.u32 %v919_v19, 16 }
 0x198   :  { %4415 = vmatprep.subr.bf16.mxu1 %v6357_v9  ;;  %v6388_v9 = vld [vmem:[#allocation9 + $0x238] ss:$28 sps:$4 sm:$0xff]   ;;  %v936_v38 = vxor.u32 %v926_v26, %v916_v18  ;;  %v6432_v18 = vld [vmem:[#allocation9 + $0x3c4] ss:$28 sps:$4 sm:$0xff]   ;;  %v6441_v26 = vld [vmem:[#allocation9 + $0xb2c] ss:$28 sps:$4 sm:$0xff]  }
 0x199   :  { %4537 = vmatpush1.bf16.msra.mxu0 %v6352_v12  ;;  %v6396_v12 = vld [vmem:[#allocation9 + $0x274] ss:$28 sps:$4 sm:$0xff]  }
 0x19a   :  { %4538 = vmatprep.subr.bf16.mxu0 %v6360_v17  ;;  %v6399_v17 = vld [vmem:[#allocation9 + $0x9a4] ss:$28 sps:$4 sm:$0xff]  }
 0x19b   :  { %4416 = vmatpush1.bf16.msra.mxu1 %v6355_v15  ;;  %v6391_v15 = vld [vmem:[#allocation9 + $0x968] ss:$28 sps:$4 sm:$0xff]  }
 0x19c   :  { %4417 = vmatprep.subr.bf16.mxu1 %v6363_v48  ;;  %v6394_v48 = vld [vmem:[#allocation9 + $0x270] ss:$28 sps:$4 sm:$0xff]  }
 0x19d   :  { %4539 = vmatpush1.bf16.msra.mxu0 %v6358_v22  ;;  %v6402_v22 = vld [vmem:[#allocation9 + $0x2ac] ss:$28 sps:$4 sm:$0xff]  }
 0x19e   :  { %4540 = vmatprep.subr.bf16.mxu0 %v6366_v36  ;;  %v6405_v36 = vld [vmem:[#allocation9 + $0x9dc] ss:$28 sps:$4 sm:$0xff]  }
 0x19f   :  { %4418 = vmatpush1.bf16.msra.mxu1 %v6361_v23  ;;  %v6397_v23 = vld [vmem:[#allocation9 + $0x9a0] ss:$28 sps:$4 sm:$0xff]  }
 0x1a0   :  { %4419 = vmatprep.subr.bf16.mxu1 %v6369_v27  ;;  %v6400_v27 = vld [vmem:[#allocation9 + $0x2a8] ss:$28 sps:$4 sm:$0xff]  }
 0x1a1   :  { %4541 = vmatpush1.bf16.msra.mxu0 %v6364_v30  ;;  %v6408_v30 = vld [vmem:[#allocation9 + $0x2e4] ss:$28 sps:$4 sm:$0xff]  }
 0x1a2   :  { %4542 = vmatprep.subr.bf16.mxu0 %v6372_v33  ;;  %v188_v33 = vsub.s32 7, %v7436_v13 }
 0x1a3   :  { %4420 = vmatpush1.bf16.msra.mxu1 %v6367_v31  ;;  %v6403_v31 = vld [vmem:[#allocation9 + $0x9d8] ss:$28 sps:$4 sm:$0xff]  }
 0x1a4   :  { %4421 = vmatprep.subr.bf16.mxu1 %v6375_v37  ;;  %v6411_v37 = vld [vmem:[#allocation9 + $0xa14] ss:$28 sps:$4 sm:$0xff]  }
 0x1a5   :  { %4543 = vmatpush1.bf16.msra.mxu0 %v6370_v41  ;;  %v6406_v41 = vld [vmem:[#allocation9 + $0x2e0] ss:$28 sps:$4 sm:$0xff]  }
 0x1a6   :  { %4544 = vmatprep.subr.bf16.mxu0 %v6378_v45  ;;  %v6414_v45 = vld [vmem:[#allocation9 + $0x31c] ss:$28 sps:$4 sm:$0xff]  }
 0x1a7   :  { %4422 = vmatpush1.bf16.msra.mxu1 %v6373_v43  ;;  %v939_v43 = vxor.u32 %v929_v28, %v919_v19  ;;  %v6435_v19 = vld [vmem:[#allocation9 + $0xaf4] ss:$28 sps:$4 sm:$0xff]  }
 0x1a8   :  { %4423 = vmatprep.subr.bf16.mxu1 %v6381_v51  ;;  %v7589_v51 = vld [vmem:[#allocation7] sm:$0xff] }
 0x1a9   :  { %4545 = vmatpush1.bf16.msra.mxu0 %v6376_v53  ;;  %v189_v52 = vrot.slane %v7589_v51, %v188_v33  ;;  %v177_v53 = vrot.slane %v7589_v51, %v176_v34  ;;  %v6436_v28 = vld [vmem:[#allocation9 + $0x3f8] ss:$28 sps:$4 sm:$0xff]   ;;  %v6447_v33 = vld [vmem:[#allocation9 + $0xb64] ss:$28 sps:$4 sm:$0xff]  }
 0x1aa   :  { %4546 = vmatprep.subr.bf16.mxu0 %v6384_v56  ;;  %v946_v56 = vand.u32 2147483648, %v936_v38  ;;  %v6442_v38 = vld [vmem:[#allocation9 + $0x430] ss:$28 sps:$4 sm:$0xff]  }
 0x1ab   :  { %4424 = vmatpush1.bf16.msra.mxu1 %v6379_v57  ;;  %v6412_v57 = vld [vmem:[#allocation9 + $0x318] ss:$28 sps:$4 sm:$0xff]   ;;  %v768_v1 = vadd.f32 %v7539_v21, %v189_v52  ;;  %v6456_v52 = vld [vmem:[#allocation9 + $0x4a4] ss:$28 sps:$4 sm:$0xff]  }
 0x1ac   :  { %4425 = vmatprep.subr.bf16.mxu1 %v6387_v58  ;;  %v949_v58 = vand.u32 2147483648, %v939_v43  ;;  %vm956_vm14 = vcmp.ne.s32.totalorder %v946_v56, 0  ;;  %v6445_v43 = vld [vmem:[#allocation9 + $0xb60] ss:$28 sps:$4 sm:$0xff]   ;;  %v6918_v21 = vld [vmem:[#allocation9 + $0xd38] ss:$28 sps:$4 sm:$0xff]  }
 0x1ad   :  { %4547 = vmatpush1.bf16.msra.mxu0 %v6382_v62  ;;  %v6415_v62 = vld [vmem:[#allocation9 + $0xa48] ss:$28 sps:$4 sm:$0xff]   ;;  %vm7597_vm0 = vmpackc.low %vm956_vm14, %vm956_vm14 }
 0x1ae   :  { %4548 = vmatprep.subr.bf16.mxu0 %v6390_v5  ;;  %v725_v5 = vadd.f32 %v7514_v60, %v177_v53  ;;  %vm959_vm15 = vcmp.ne.s32.totalorder %v949_v58, 0  ;;  %v6429_v60 = vld [vmem:[#allocation9 + $0xabc] ss:$28 sps:$4 sm:$0xff]   ;;  %v6457_v58 = vld [vmem:[#allocation9 + $0xbd0] ss:$28 sps:$4 sm:$0xff]  }
 0x1af   :  { %4426 = vmatpush1.bf16.msra.mxu1 %v6385_v6  ;;  %v6423_v6 = vld [vmem:[#allocation9 + $0xa84] ss:$28 sps:$4 sm:$0xff]   ;;  %vm7605_vm1 = vmpackc.low %vm959_vm15, %vm959_vm15  ;;  %v6451_v53 = vld [vmem:[#allocation9 + $0xb98] ss:$28 sps:$4 sm:$0xff]  }
 0x1b0   :  { %4427 = vmatprep.subr.bf16.mxu1 %v6393_v7  ;;  %v6418_v7 = vld [vmem:[#allocation9 + $0x350] ss:$28 sps:$4 sm:$0xff]  }
 0x1b1   :  { %4549 = vmatpush1.bf16.msra.mxu0 %v6388_v9  ;;  %v6910_v9 = vld [vmem:[#allocation9 + $0xf60] ss:$28 sps:$4 sm:$0xff]  }
 0x1b2   :  { %4550 = vmatprep.subr.bf16.mxu0 %v6396_v12  ;;  %v7601_v12 = vpack.c.bf16 %v768_v1, %v768_v1  ;;  %v6460_v1 = vld [vmem:[#allocation9 + $0x4d8] ss:$28 sps:$4 sm:$0xff]  }
 0x1b3   :  { %4428 = vmatpush1.bf16.msra.mxu1 %v6391_v15  ;;  %v7603_v15 = vpack.c.bf16 %v725_v5, %v725_v5  ;;  %v6468_v5 = vld [vmem:[#allocation9 + $0x514] ss:$28 sps:$4 sm:$0xff]  }
 0x1b4   :  { %4429 = vmatprep.subr.bf16.mxu1 %v6399_v17  ;;  %v6424_v17 = vld [vmem:[#allocation9 + $0x388] ss:$28 sps:$4 sm:$0xff]  }
 0x1b5   :  { %4551 = vmatpush1.bf16.msra.mxu0 %v6394_v48  ;;  %v6427_v48 = vld [vmem:[#allocation9 + $0xab8] ss:$28 sps:$4 sm:$0xff]  }
 0x1b6   :  { %4552 = vmatprep.subr.bf16.mxu0 %v6402_v22  ;;  %v6430_v22 = vld [vmem:[#allocation9 + $0x3c0] ss:$28 sps:$4 sm:$0xff]  }
 0x1b7   :  { %4430 = vmatpush1.bf16.msra.mxu1 %v6397_v23  ;;  %v6438_v23 = vld [vmem:[#allocation9 + $0x3fc] ss:$28 sps:$4 sm:$0xff]  }
 0x1b8   :  { %4431 = vmatprep.subr.bf16.mxu1 %v6405_v36  ;;  %v6433_v36 = vld [vmem:[#allocation9 + $0xaf0] ss:$28 sps:$4 sm:$0xff]  }
 0x1b9   :  { %4553 = vmatpush1.bf16.msra.mxu0 %v6400_v27  ;;  %v825_v27 = vadd.s32 768, %v7438_v14  ;;  %v6448_v14 = vld [vmem:[#allocation9 + $0x468] ss:$28 sps:$4 sm:$0xff]  }
 0x1ba   :  { %4554 = vmatprep.subr.bf16.mxu0 %v6408_v30  ;;  %v6444_v30 = vld [vmem:[#allocation9 + $0x434] ss:$28 sps:$4 sm:$0xff]  }
 0x1bb   :  { %4432 = vmatpush1.bf16.msra.mxu1 %v6403_v31  ;;  %v6439_v31 = vld [vmem:[#allocation9 + $0xb28] ss:$28 sps:$4 sm:$0xff]  }
 0x1bc   :  { %4433 = vmatprep.subr.bf16.mxu1 %v6411_v37  ;;  %v836_v37 = vadd.s32 %v7442_v16, %v825_v27  ;;  %v6454_v16 = vld [vmem:[#allocation9 + $0x4a0] ss:$28 sps:$4 sm:$0xff]  }
 0x1bd   :  { %4555 = vmatpush1.bf16.msra.mxu0 %v6406_v41  ;;  %v6450_v41 = vld [vmem:[#allocation9 + $0x46c] ss:$28 sps:$4 sm:$0xff]   ;;  %v6486_v27 = vld [vmem:[#allocation9 + $0x5bc] ss:$28 sps:$4 sm:$0xff]  }
 0x1be   :  { %4556 = vmatprep.subr.bf16.mxu0 %v6414_v45  ;;  %v6453_v45 = vld [vmem:[#allocation9 + $0xb9c] ss:$28 sps:$4 sm:$0xff]  }
 0x1bf   :  { %4434 = vmatpush1.bf16.msra.mxu1 %v6409_v46  ;;  %v847_v46 = vmul.u32 2654435769, %v836_v37  ;;  %v6492_v37 = vld [vmem:[#allocation9 + $0x5f4] ss:$28 sps:$4 sm:$0xff]  }
 0x1c0   :  { %4435 = vmatprep.subr.bf16.mxu1 %v6417_v54  ;;  %v6459_v54 = vld [vmem:[#allocation9 + $0xbd4] ss:$28 sps:$4 sm:$0xff]  }
 0x1c1   :  { %4557 = vmatpush1.bf16.msra.mxu0 %v6412_v57  ;;  %v858_v56 = vadd.s32 %v7450_v20, %v847_v46  ;;  %v6462_v57 = vld [vmem:[#allocation9 + $0x4dc] ss:$28 sps:$4 sm:$0xff]   ;;  %v6466_v20 = vld [vmem:[#allocation9 + $0x510] ss:$28 sps:$4 sm:$0xff]  }
 0x1c2   :  { %4558 = vmatprep.subr.bf16.mxu0 %v6420_v59  ;;  %v6465_v59 = vld [vmem:[#allocation9 + $0xc0c] ss:$28 sps:$4 sm:$0xff]  }
 0x1c3   :  { %4436 = vmatpush1.bf16.msra.mxu1 %v6415_v62  ;;  %v868_v62 = vshrl.u32 %v858_v56, 16  ;;  %v6498_v46 = vld [vmem:[#allocation9 + $0x62c] ss:$28 sps:$4 sm:$0xff]  }
 0x1c4   :  { %4446 = vmatprep.subr.bf16.mxu1 %v6423_v6  ;;  %v6463_v6 = vld [vmem:[#allocation9 + $0xc08] ss:$28 sps:$4 sm:$0xff]  }
 0x1c5   :  { %4559 = vmatpush1.bf16.msra.mxu0 %v6418_v7  ;;  %v6471_v7 = vld [vmem:[#allocation9 + $0xc44] ss:$28 sps:$4 sm:$0xff]  }
 0x1c6   :  { %5826 = vmatmul.mubr.msk.bf16.vlgmr.msra.gmra.mrb[8].mxu1 %vm7597_vm0, %v7603_v15  ;;  %4569 = vmatprep.subr.bf16.mxu0 %v6426_v8  ;;  %v878_v8 = vxor.u32 %v868_v62, %v858_v56  ;;  %v6504_v56 = vld [vmem:[#allocation9 + $0x664] ss:$28 sps:$4 sm:$0xff]  }
 0x1c7   :  { %4447 = vmatpush1.bf16.msra.mxu1 %v6421_v11  ;;  %5829 = vmatprep.mubr.msk.bf16.mxu1 %vm7605_vm1, %v7601_v12  ;;  %v6474_v11 = vld [vmem:[#allocation9 + $0x54c] ss:$28 sps:$4 sm:$0xff]   ;;  %v6502_v62 = vld [vmem:[#allocation9 + $0x660] ss:$28 sps:$4 sm:$0xff]  }
 0x1c8   :  { %5842 = vmatmul.mubr.msk.bf16.vlgmr.msra.gmra.mrb[16].mxu0 %vm7477_vm3, %v7473_v63  ;;  %4448 = vmatprep.subr.bf16.mxu1 %v6429_v60  ;;  %v6469_v60 = vld [vmem:[#allocation9 + $0xc40] ss:$28 sps:$4 sm:$0xff]  }
 0x1c9   :  { %4570 = vmatpush1.bf16.msra.mxu0 %v6424_v17  ;;  %5845 = vmatprep.mubr.msk.bf16.mxu0 %vm7503_vm5, %v7508_v50  ;;  %v6477_v17 = vld [vmem:[#allocation9 + $0xc7c] ss:$28 sps:$4 sm:$0xff]  }
 0x1ca   :  { %4571 = vmatprep.subr.bf16.mxu0 %v6432_v18  ;;  %v888_v18 = vmul.u32 2146121005, %v878_v8 }
 0x1cb   :  { %4449 = vmatpush1.bf16.msra.mxu1 %v6427_v48  ;;  %v6472_v48 = vld [vmem:[#allocation9 + $0x548] ss:$28 sps:$4 sm:$0xff]  }
 0x1cc   :  { %4450 = vmatprep.subr.bf16.mxu1 %v6435_v19  ;;  %v6480_v19 = vld [vmem:[#allocation9 + $0x584] ss:$28 sps:$4 sm:$0xff]  }
 0x1cd   :  { %4572 = vmatpush1.bf16.msra.mxu0 %v6430_v22  ;;  %v6475_v22 = vld [vmem:[#allocation9 + $0xc78] ss:$28 sps:$4 sm:$0xff]  }
 0x1ce   :  { %4573 = vmatprep.subr.bf16.mxu0 %v6438_v23  ;;  %v6483_v23 = vld [vmem:[#allocation9 + $0xcb4] ss:$28 sps:$4 sm:$0xff]  }
 0x1cf   :  { %4451 = vmatpush1.bf16.msra.mxu1 %v6433_v36  ;;  %v898_v36 = vshrl.u32 %v888_v18, 15 }
 0x1d0   :  { %4452 = vmatprep.subr.bf16.mxu1 %v6441_v26  ;;  %v6478_v26 = vld [vmem:[#allocation9 + $0x580] ss:$28 sps:$4 sm:$0xff]  }
 0x1d1   :  { %4574 = vmatpush1.bf16.msra.mxu0 %v6436_v28  ;;  %v6481_v28 = vld [vmem:[#allocation9 + $0xcb0] ss:$28 sps:$4 sm:$0xff]  }
 0x1d2   :  { %4575 = vmatprep.subr.bf16.mxu0 %v6444_v30  ;;  %v6489_v30 = vld [vmem:[#allocation9 + $0xcec] ss:$28 sps:$4 sm:$0xff]  }
 0x1d3   :  { %4453 = vmatpush1.bf16.msra.mxu1 %v6439_v31  ;;  %v908_v31 = vxor.u32 %v898_v36, %v888_v18  ;;  %v6519_v18 = vld [vmem:[#allocation9 + $0x14] ss:$28 sps:$4 sm:$0xff]   ;;  %v6520_v36 = vld [vmem:[#allocation9 + $0x708] ss:$28 sps:$4 sm:$0xff]  }
 0x1d4   :  { %4454 = vmatprep.subr.bf16.mxu1 %v6447_v33  ;;  %v6484_v33 = vld [vmem:[#allocation9 + $0x5b8] ss:$28 sps:$4 sm:$0xff]  }
 0x1d5   :  { %4576 = vmatpush1.bf16.msra.mxu0 %v6442_v38  ;;  %v6487_v38 = vld [vmem:[#allocation9 + $0xce8] ss:$28 sps:$4 sm:$0xff]  }
 0x1d6   :  { %4577 = vmatprep.subr.bf16.mxu0 %v6450_v41  ;;  %v6495_v41 = vld [vmem:[#allocation9 + $0xd24] ss:$28 sps:$4 sm:$0xff]  }
 0x1d7   :  { %4455 = vmatpush1.bf16.msra.mxu1 %v6445_v43  ;;  %v918_v43 = vmul.u32 2221713035, %v908_v31  ;;  %v6534_v31 = vld [vmem:[#allocation9 + $0x77c] ss:$28 sps:$4 sm:$0xff]  }
 0x1d8   :  { %4456 = vmatprep.subr.bf16.mxu1 %v6453_v45  ;;  %v6490_v45 = vld [vmem:[#allocation9 + $0x5f0] ss:$28 sps:$4 sm:$0xff]  }
 0x1d9   :  { %4578 = vmatpush1.bf16.msra.mxu0 %v6448_v14  ;;  %v6493_v14 = vld [vmem:[#allocation9 + $0xd20] ss:$28 sps:$4 sm:$0xff]  }
 0x1da   :  { %4579 = vmatprep.subr.bf16.mxu0 %v6456_v52  ;;  %v6501_v52 = vld [vmem:[#allocation9 + $0xd5c] ss:$28 sps:$4 sm:$0xff]  }
 0x1db   :  { %4457 = vmatpush1.bf16.msra.mxu1 %v6451_v53  ;;  %v928_v53 = vshrl.u32 %v918_v43, 16 }
 0x1dc   :  { %4458 = vmatprep.subr.bf16.mxu1 %v6459_v54  ;;  %v6496_v54 = vld [vmem:[#allocation9 + $0x628] ss:$28 sps:$4 sm:$0xff]  }
 0x1dd   :  { %4580 = vmatpush1.bf16.msra.mxu0 %v6454_v16  ;;  %v184_v16 = vsub.s32 6, %v7436_v13 }
 0x1de   :  { %4581 = vmatprep.subr.bf16.mxu0 %v6462_v57  ;;  %v6499_v57 = vld [vmem:[#allocation9 + $0xd58] ss:$28 sps:$4 sm:$0xff]  }
 0x1df   :  { %4459 = vmatpush1.bf16.msra.mxu1 %v6457_v58  ;;  %v6507_v58 = vld [vmem:[#allocation9 + $0xd94] ss:$28 sps:$4 sm:$0xff]  }
 0x1e0   :  { %4460 = vmatprep.subr.bf16.mxu1 %v6465_v59  ;;  %v938_v59 = vxor.u32 %v928_v53, %v918_v43  ;;  %v6535_v43 = vld [vmem:[#allocation9 + $0xb8] ss:$28 sps:$4 sm:$0xff]   ;;  %v6549_v53 = vld [vmem:[#allocation9 + $0x12c] ss:$28 sps:$4 sm:$0xff]  }
 0x1e1   :  { %4582 = vmatpush1.bf16.msra.mxu0 %v6460_v1  ;;  %v185_v1 = vrot.slane %v7589_v51, %v184_v16 }
 0x1e2   :  { %4583 = vmatprep.subr.bf16.mxu0 %v6468_v5  ;;  %v6510_v5 = vld [vmem:[#allocation9 + $0x69c] ss:$28 sps:$4 sm:$0xff]   ;;  %v948_v8 = vand.u32 2147483648, %v938_v59 }
 0x1e3   :  { %4461 = vmatpush1.bf16.msra.mxu1 %v6463_v6  ;;  %v6505_v6 = vld [vmem:[#allocation9 + $0xd90] ss:$28 sps:$4 sm:$0xff]   ;;  %v6550_v59 = vld [vmem:[#allocation9 + $0x820] ss:$28 sps:$4 sm:$0xff]  }
 0x1e4   :  { %4462 = vmatprep.subr.bf16.mxu1 %v6471_v7  ;;  %v6513_v7 = vld [vmem:[#allocation9 + $0xdcc] ss:$28 sps:$4 sm:$0xff]   ;;  %vm958_vm4 = vcmp.ne.s32.totalorder %v948_v8, 0  ;;  %v6559_v8 = vld [vmem:[#allocation9 + $0x198] ss:$28 sps:$4 sm:$0xff]  }
 0x1e5   :  { %4584 = vmatpush1.bf16.msra.mxu0 %v6466_v20  ;;  %v6508_v20 = vld [vmem:[#allocation9 + $0x698] ss:$28 sps:$4 sm:$0xff]   ;;  %vm7631_vm6 = vmpackc.low %vm958_vm4, %vm958_vm4 }
 0x1e6   :  { %4585 = vmatprep.subr.bf16.mxu0 %v6474_v11  ;;  %v766_v11 = vadd.f32 %v7528_v10, %v185_v1  ;;  %v6525_v10 = vld [vmem:[#allocation9 + $0x4c] ss:$28 sps:$4 sm:$0xff]   ;;  %v6553_v1 = vld [vmem:[#allocation9 + $0x160] ss:$28 sps:$4 sm:$0xff]  }
 0x1e7   :  { %4463 = vmatpush1.bf16.msra.mxu1 %v6469_v60  ;;  %v6516_v60 = vld [vmem:[#allocation9 + $0x6d4] ss:$28 sps:$4 sm:$0xff]  }
 0x1e8   :  { %4464 = vmatprep.subr.bf16.mxu1 %v6477_v17  ;;  %v6511_v17 = vld [vmem:[#allocation9 + $0xdc8] ss:$28 sps:$4 sm:$0xff]   ;;  %v7629_v51 = vpack.c.bf16 %v766_v11, %v766_v11  ;;  %v6562_v11 = vld [vmem:[#allocation9 + $0x890] ss:$28 sps:$4 sm:$0xff]  }
 0x1e9   :  { %4586 = vmatpush1.bf16.msra.mxu0 %v6472_v48  ;;  %v6514_v48 = vld [vmem:[#allocation9 + $0x6d0] ss:$28 sps:$4 sm:$0xff]  }
 0x1ea   :  { %4587 = vmatprep.subr.bf16.mxu0 %v6480_v19  ;;  %v6522_v19 = vld [vmem:[#allocation9 + $0x70c] ss:$28 sps:$4 sm:$0xff]  }
 0x1eb   :  { %4465 = vmatpush1.bf16.msra.mxu1 %v6475_v22  ;;  %v6942_v22 = vld [vmem:[#allocation9 + $0xfa0] ss:$28 sps:$4 sm:$0xff]  }
 0x1ec   :  { %4466 = vmatprep.subr.bf16.mxu1 %v6483_v23  ;;  %v6517_v23 = vld [vmem:[#allocation9 + $0x10] ss:$28 sps:$4 sm:$0xff]  }
 0x1ed   :  { %4588 = vmatpush1.bf16.msra.mxu0 %v6478_v26  ;;  %v6528_v26 = vld [vmem:[#allocation9 + $0x744] ss:$28 sps:$4 sm:$0xff]  }
 0x1ee   :  { %4589 = vmatprep.subr.bf16.mxu0 %v6486_v27  ;;  %v6523_v27 = vld [vmem:[#allocation9 + $0x48] ss:$28 sps:$4 sm:$0xff]  }
 0x1ef   :  { %4467 = vmatpush1.bf16.msra.mxu1 %v6481_v28  ;;  %v6531_v28 = vld [vmem:[#allocation9 + $0x84] ss:$28 sps:$4 sm:$0xff]  }
 0x1f0   :  { %4468 = vmatprep.subr.bf16.mxu1 %v6489_v30  ;;  %v6526_v30 = vld [vmem:[#allocation9 + $0x740] ss:$28 sps:$4 sm:$0xff]  }
 0x1f1   :  { %4590 = vmatpush1.bf16.msra.mxu0 %v6484_v33  ;;  %v6529_v33 = vld [vmem:[#allocation9 + $0x80] ss:$28 sps:$4 sm:$0xff]  }
 0x1f2   :  { %4591 = vmatprep.subr.bf16.mxu0 %v6492_v37  ;;  %v6537_v37 = vld [vmem:[#allocation9 + $0xbc] ss:$28 sps:$4 sm:$0xff]  }
 0x1f3   :  { %4469 = vmatpush1.bf16.msra.mxu1 %v6487_v38  ;;  %v6532_v38 = vld [vmem:[#allocation9 + $0x778] ss:$28 sps:$4 sm:$0xff]  }
 0x1f4   :  { %4470 = vmatprep.subr.bf16.mxu1 %v6495_v41  ;;  %v6540_v41 = vld [vmem:[#allocation9 + $0x7b4] ss:$28 sps:$4 sm:$0xff]  }
 0x1f5   :  { %4592 = vmatpush1.bf16.msra.mxu0 %v6490_v45  ;;  %v6543_v45 = vld [vmem:[#allocation9 + $0xf4] ss:$28 sps:$4 sm:$0xff]  }
 0x1f6   :  { %4593 = vmatprep.subr.bf16.mxu0 %v6498_v46  ;;  %v6538_v46 = vld [vmem:[#allocation9 + $0x7b0] ss:$28 sps:$4 sm:$0xff]  }
 0x1f7   :  { %4471 = vmatpush1.bf16.msra.mxu1 %v6493_v14  ;;  %v6546_v14 = vld [vmem:[#allocation9 + $0x7ec] ss:$28 sps:$4 sm:$0xff]  }
 0x1f8   :  { %4472 = vmatprep.subr.bf16.mxu1 %v6501_v52  ;;  %v6541_v52 = vld [vmem:[#allocation9 + $0xf0] ss:$28 sps:$4 sm:$0xff]  }
 0x1f9   :  { %4594 = vmatpush1.bf16.msra.mxu0 %v6496_v54  ;;  %v6544_v54 = vld [vmem:[#allocation9 + $0x7e8] ss:$28 sps:$4 sm:$0xff]  }
 0x1fa   :  { %4595 = vmatprep.subr.bf16.mxu0 %v6504_v56  ;;  %v6552_v56 = vld [vmem:[#allocation9 + $0x824] ss:$28 sps:$4 sm:$0xff]  }
 0x1fb   :  { %4473 = vmatpush1.bf16.msra.mxu1 %v6499_v57  ;;  %v6547_v57 = vld [vmem:[#allocation9 + $0x128] ss:$28 sps:$4 sm:$0xff]  }
 0x1fc   :  { %4474 = vmatprep.subr.bf16.mxu1 %v6507_v58  ;;  %v6555_v58 = vld [vmem:[#allocation9 + $0x164] ss:$28 sps:$4 sm:$0xff]  }
 0x1fd   :  { %4596 = vmatpush1.bf16.msra.mxu0 %v6502_v62  ;;  %v6558_v62 = vld [vmem:[#allocation9 + $0x85c] ss:$28 sps:$4 sm:$0xff]  }
 0x1fe   :  { %4597 = vmatprep.subr.bf16.mxu0 %v6510_v5  ;;  %v6561_v5 = vld [vmem:[#allocation9 + $0x19c] ss:$28 sps:$4 sm:$0xff]  }
 0x1ff   :  { %4475 = vmatpush1.bf16.msra.mxu1 %v6505_v6  ;;  %v6556_v6 = vld [vmem:[#allocation9 + $0x858] ss:$28 sps:$4 sm:$0xff]  }
 0x200   :  { %4476 = vmatprep.subr.bf16.mxu1 %v6513_v7  ;;  %v6564_v7 = vld [vmem:[#allocation9 + $0x894] ss:$28 sps:$4 sm:$0xff]  }
 0x201   :  { %4598 = vmatpush1.bf16.msra.mxu0 %v6508_v20  ;;  %v6567_v20 = vld [vmem:[#allocation9 + $0x1d4] ss:$28 sps:$4 sm:$0xff]  }
 0x202   :  { %4599 = vmatprep.subr.bf16.mxu0 %v6516_v60  ;;  %v6570_v60 = vld [vmem:[#allocation9 + $0x8cc] ss:$28 sps:$4 sm:$0xff]  }
 0x203   :  { %4477 = vmatpush1.bf16.msra.mxu1 %v6511_v17  ;;  %v6565_v17 = vld [vmem:[#allocation9 + $0x1d0] ss:$28 sps:$4 sm:$0xff]  }
 0x204   :  { %4733 = vmatprep.subr.bf16.mxu1 %v6519_v18  ;;  %v6573_v18 = vld [vmem:[#allocation9 + $0x20c] ss:$28 sps:$4 sm:$0xff]  }
 0x205   :  { %4600 = vmatpush1.bf16.msra.mxu0 %v6514_v48  ;;  %v6568_v48 = vld [vmem:[#allocation9 + $0x8c8] ss:$28 sps:$4 sm:$0xff]  }
 0x206   :  { %5832 = vmatmul.mubr.msk.bf16.vlgmr.msra.gmra.mrb[8].mxu1 %vm7631_vm6, %v7629_v51  ;;  %4610 = vmatprep.subr.bf16.mxu0 %v6522_v19  ;;  %v6576_v19 = vld [vmem:[#allocation9 + $0x904] ss:$28 sps:$4 sm:$0xff]  }
 0x207   :  { %4734 = vmatpush1.bf16.msra.mxu1 %v6517_v23  ;;  %5867 = vmatprep.mubr.msk.bf16.mxu1 %vm7469_vm2, %v7475_v3  ;;  %v6571_v23 = vld [vmem:[#allocation9 + $0x208] ss:$28 sps:$4 sm:$0xff]  }
 0x208   :  { %5848 = vmatmul.mubr.msk.bf16.vlgmr.msra.gmra.mrb[16].mxu0 %vm7547_vm9, %v7542_v29  ;;  %4735 = vmatprep.subr.bf16.mxu1 %v6525_v10  ;;  %v6579_v10 = vld [vmem:[#allocation9 + $0x244] ss:$28 sps:$4 sm:$0xff]  }
 0x209   :  { %4611 = vmatpush1.bf16.msra.mxu0 %v6520_v36  ;;  %5851 = vmatprep.mubr.msk.bf16.mxu0 %vm7553_vm11, %v7559_v24  ;;  %v6574_v36 = vld [vmem:[#allocation9 + $0x900] ss:$28 sps:$4 sm:$0xff]  }
 0x20a   :  { %4612 = vmatprep.subr.bf16.mxu0 %v6528_v26  ;;  %v6582_v26 = vld [vmem:[#allocation9 + $0x93c] ss:$28 sps:$4 sm:$0xff]  }
 0x20b   :  { %4736 = vmatpush1.bf16.msra.mxu1 %v6523_v27  ;;  %v6577_v27 = vld [vmem:[#allocation9 + $0x240] ss:$28 sps:$4 sm:$0xff]  }
 0x20c   :  { %4737 = vmatprep.subr.bf16.mxu1 %v6531_v28  ;;  %v6585_v28 = vld [vmem:[#allocation9 + $0x27c] ss:$28 sps:$4 sm:$0xff]  }
 0x20d   :  { %4613 = vmatpush1.bf16.msra.mxu0 %v6526_v30  ;;  %v6580_v30 = vld [vmem:[#allocation9 + $0x938] ss:$28 sps:$4 sm:$0xff]  }
 0x20e   :  { %4614 = vmatprep.subr.bf16.mxu0 %v6534_v31  ;;  %v6588_v31 = vld [vmem:[#allocation9 + $0x974] ss:$28 sps:$4 sm:$0xff]  }
 0x20f   :  { %4738 = vmatpush1.bf16.msra.mxu1 %v6529_v33  ;;  %v6583_v33 = vld [vmem:[#allocation9 + $0x278] ss:$28 sps:$4 sm:$0xff]  }
 0x210   :  { %4739 = vmatprep.subr.bf16.mxu1 %v6537_v37  ;;  %v6591_v37 = vld [vmem:[#allocation9 + $0x2b4] ss:$28 sps:$4 sm:$0xff]  }
 0x211   :  { %4615 = vmatpush1.bf16.msra.mxu0 %v6532_v38  ;;  %v6586_v38 = vld [vmem:[#allocation9 + $0x970] ss:$28 sps:$4 sm:$0xff]  }
 0x212   :  { %4616 = vmatprep.subr.bf16.mxu0 %v6540_v41  ;;  %v6594_v41 = vld [vmem:[#allocation9 + $0x9ac] ss:$28 sps:$4 sm:$0xff]  }
 0x213   :  { %4740 = vmatpush1.bf16.msra.mxu1 %v6535_v43  ;;  %v6589_v43 = vld [vmem:[#allocation9 + $0x2b0] ss:$28 sps:$4 sm:$0xff]  }
 0x214   :  { %4741 = vmatprep.subr.bf16.mxu1 %v6543_v45  ;;  %v6597_v45 = vld [vmem:[#allocation9 + $0x2ec] ss:$28 sps:$4 sm:$0xff]  }
 0x215   :  { %4617 = vmatpush1.bf16.msra.mxu0 %v6538_v46  ;;  %v6592_v46 = vld [vmem:[#allocation9 + $0x9a8] ss:$28 sps:$4 sm:$0xff]  }
 0x216   :  { %4618 = vmatprep.subr.bf16.mxu0 %v6546_v14  ;;  %v6600_v14 = vld [vmem:[#allocation9 + $0x9e4] ss:$28 sps:$4 sm:$0xff]  }
 0x217   :  { %4742 = vmatpush1.bf16.msra.mxu1 %v6541_v52  ;;  %v6595_v52 = vld [vmem:[#allocation9 + $0x2e8] ss:$28 sps:$4 sm:$0xff]  }
 0x218   :  { %4743 = vmatprep.subr.bf16.mxu1 %v6549_v53  ;;  %v6603_v53 = vld [vmem:[#allocation9 + $0x324] ss:$28 sps:$4 sm:$0xff]  }
 0x219   :  { %4619 = vmatpush1.bf16.msra.mxu0 %v6544_v54  ;;  %v6598_v54 = vld [vmem:[#allocation9 + $0x9e0] ss:$28 sps:$4 sm:$0xff]  }
 0x21a   :  { %4620 = vmatprep.subr.bf16.mxu0 %v6552_v56  ;;  %v6606_v56 = vld [vmem:[#allocation9 + $0xa1c] ss:$28 sps:$4 sm:$0xff]  }
 0x21b   :  { %4744 = vmatpush1.bf16.msra.mxu1 %v6547_v57  ;;  %v6601_v57 = vld [vmem:[#allocation9 + $0x320] ss:$28 sps:$4 sm:$0xff]  }
 0x21c   :  { %4745 = vmatprep.subr.bf16.mxu1 %v6555_v58  ;;  %v6609_v58 = vld [vmem:[#allocation9 + $0x35c] ss:$28 sps:$4 sm:$0xff]  }
 0x21d   :  { %4621 = vmatpush1.bf16.msra.mxu0 %v6550_v59  ;;  %v6604_v59 = vld [vmem:[#allocation9 + $0xa18] ss:$28 sps:$4 sm:$0xff]  }
 0x21e   :  { %4622 = vmatprep.subr.bf16.mxu0 %v6558_v62  ;;  %v6612_v62 = vld [vmem:[#allocation9 + $0xa54] ss:$28 sps:$4 sm:$0xff]  }
 0x21f   :  { %4746 = vmatpush1.bf16.msra.mxu1 %v6553_v1  ;;  %v6607_v1 = vld [vmem:[#allocation9 + $0x358] ss:$28 sps:$4 sm:$0xff]  }
 0x220   :  { %4747 = vmatprep.subr.bf16.mxu1 %v6561_v5  ;;  %v6615_v5 = vld [vmem:[#allocation9 + $0x394] ss:$28 sps:$4 sm:$0xff]  }
 0x221   :  { %4623 = vmatpush1.bf16.msra.mxu0 %v6556_v6  ;;  %v6610_v6 = vld [vmem:[#allocation9 + $0xa50] ss:$28 sps:$4 sm:$0xff]  }
 0x222   :  { %4624 = vmatprep.subr.bf16.mxu0 %v6564_v7  ;;  %v6618_v7 = vld [vmem:[#allocation9 + $0xa8c] ss:$28 sps:$4 sm:$0xff]  }
 0x223   :  { %4748 = vmatpush1.bf16.msra.mxu1 %v6559_v8  ;;  %v6613_v8 = vld [vmem:[#allocation9 + $0x390] ss:$28 sps:$4 sm:$0xff]  }
 0x224   :  { %4749 = vmatprep.subr.bf16.mxu1 %v6567_v20  ;;  %v6621_v20 = vld [vmem:[#allocation9 + $0x3cc] ss:$28 sps:$4 sm:$0xff]  }
 0x225   :  { %4625 = vmatpush1.bf16.msra.mxu0 %v6562_v11  ;;  %v6616_v11 = vld [vmem:[#allocation9 + $0xa88] ss:$28 sps:$4 sm:$0xff]  }
 0x226   :  { %4626 = vmatprep.subr.bf16.mxu0 %v6570_v60  ;;  %v6624_v60 = vld [vmem:[#allocation9 + $0xac4] ss:$28 sps:$4 sm:$0xff]  }
 0x227   :  { %4750 = vmatpush1.bf16.msra.mxu1 %v6565_v17  ;;  %v6619_v17 = vld [vmem:[#allocation9 + $0x3c8] ss:$28 sps:$4 sm:$0xff]  }
 0x228   :  { %4751 = vmatprep.subr.bf16.mxu1 %v6573_v18  ;;  %v6627_v18 = vld [vmem:[#allocation9 + $0x404] ss:$28 sps:$4 sm:$0xff]  }
 0x229   :  { %4627 = vmatpush1.bf16.msra.mxu0 %v6568_v48  ;;  %v6622_v48 = vld [vmem:[#allocation9 + $0xac0] ss:$28 sps:$4 sm:$0xff]  }
 0x22a   :  { %4628 = vmatprep.subr.bf16.mxu0 %v6576_v19  ;;  %v6630_v19 = vld [vmem:[#allocation9 + $0xafc] ss:$28 sps:$4 sm:$0xff]  }
 0x22b   :  { %4752 = vmatpush1.bf16.msra.mxu1 %v6571_v23  ;;  %v6625_v23 = vld [vmem:[#allocation9 + $0x400] ss:$28 sps:$4 sm:$0xff]  }
 0x22c   :  { %4753 = vmatprep.subr.bf16.mxu1 %v6579_v10  ;;  %v6633_v10 = vld [vmem:[#allocation9 + $0x43c] ss:$28 sps:$4 sm:$0xff]  }
 0x22d   :  { %4629 = vmatpush1.bf16.msra.mxu0 %v6574_v36  ;;  %v6628_v36 = vld [vmem:[#allocation9 + $0xaf8] ss:$28 sps:$4 sm:$0xff]  }
 0x22e   :  { %4630 = vmatprep.subr.bf16.mxu0 %v6582_v26  ;;  %v6636_v26 = vld [vmem:[#allocation9 + $0xb34] ss:$28 sps:$4 sm:$0xff]  }
 0x22f   :  { %4754 = vmatpush1.bf16.msra.mxu1 %v6577_v27  ;;  %v6631_v27 = vld [vmem:[#allocation9 + $0x438] ss:$28 sps:$4 sm:$0xff]  }
 0x230   :  { %4755 = vmatprep.subr.bf16.mxu1 %v6585_v28  ;;  %v6639_v28 = vld [vmem:[#allocation9 + $0x474] ss:$28 sps:$4 sm:$0xff]  }
 0x231   :  { %4631 = vmatpush1.bf16.msra.mxu0 %v6580_v30  ;;  %v6634_v30 = vld [vmem:[#allocation9 + $0xb30] ss:$28 sps:$4 sm:$0xff]  }
 0x232   :  { %4632 = vmatprep.subr.bf16.mxu0 %v6588_v31  ;;  %v6642_v31 = vld [vmem:[#allocation9 + $0xb6c] ss:$28 sps:$4 sm:$0xff]  }
 0x233   :  { %4756 = vmatpush1.bf16.msra.mxu1 %v6583_v33  ;;  %v6637_v33 = vld [vmem:[#allocation9 + $0x470] ss:$28 sps:$4 sm:$0xff]  }
 0x234   :  { %4757 = vmatprep.subr.bf16.mxu1 %v6591_v37  ;;  %v6645_v37 = vld [vmem:[#allocation9 + $0x4ac] ss:$28 sps:$4 sm:$0xff]  }
 0x235   :  { %4633 = vmatpush1.bf16.msra.mxu0 %v6586_v38  ;;  %v6640_v38 = vld [vmem:[#allocation9 + $0xb68] ss:$28 sps:$4 sm:$0xff]  }
 0x236   :  { %4634 = vmatprep.subr.bf16.mxu0 %v6594_v41  ;;  %v6648_v41 = vld [vmem:[#allocation9 + $0xba4] ss:$28 sps:$4 sm:$0xff]  }
 0x237   :  { %4758 = vmatpush1.bf16.msra.mxu1 %v6589_v43  ;;  %v6643_v43 = vld [vmem:[#allocation9 + $0x4a8] ss:$28 sps:$4 sm:$0xff]  }
 0x238   :  { %4759 = vmatprep.subr.bf16.mxu1 %v6597_v45  ;;  %v6651_v45 = vld [vmem:[#allocation9 + $0x4e4] ss:$28 sps:$4 sm:$0xff]  }
 0x239   :  { %4635 = vmatpush1.bf16.msra.mxu0 %v6592_v46  ;;  %v6646_v46 = vld [vmem:[#allocation9 + $0xba0] ss:$28 sps:$4 sm:$0xff]  }
 0x23a   :  { %4636 = vmatprep.subr.bf16.mxu0 %v6600_v14  ;;  %v6654_v14 = vld [vmem:[#allocation9 + $0xbdc] ss:$28 sps:$4 sm:$0xff]  }
 0x23b   :  { %4760 = vmatpush1.bf16.msra.mxu1 %v6595_v52 }
 0x23c   :  { %4761 = vmatprep.subr.bf16.mxu1 %v6603_v53  ;;  %v6649_v53 = vld [vmem:[#allocation9 + $0x4e0] ss:$28 sps:$4 sm:$0xff]  }
 0x23d   :  { %4637 = vmatpush1.bf16.msra.mxu0 %v6598_v54 }
 0x23e   :  { %4638 = vmatprep.subr.bf16.mxu0 %v6606_v56  ;;  %v6657_v56 = vld [vmem:[#allocation9 + $0x51c] ss:$28 sps:$4 sm:$0xff]  }
 0x23f   :  { %4762 = vmatpush1.bf16.msra.mxu1 %v6601_v57 }
 0x240   :  { %4763 = vmatprep.subr.bf16.mxu1 %v6609_v58  ;;  %v6652_v58 = vld [vmem:[#allocation9 + $0xbd8] ss:$28 sps:$4 sm:$0xff]  }
 0x241   :  { %4639 = vmatpush1.bf16.msra.mxu0 %v6604_v59 }
 0x242   :  { %4640 = vmatprep.subr.bf16.mxu0 %v6612_v62  ;;  %v6660_v62 = vld [vmem:[#allocation9 + $0xc14] ss:$28 sps:$4 sm:$0xff]  }
 0x243   :  { %4764 = vmatpush1.bf16.msra.mxu1 %v6607_v1  ;;  %v6655_v1 = vld [vmem:[#allocation9 + $0x518] ss:$28 sps:$4 sm:$0xff]  }
 0x244   :  { %4774 = vmatprep.subr.bf16.mxu1 %v6615_v5  ;;  %v6663_v5 = vld [vmem:[#allocation9 + $0x554] ss:$28 sps:$4 sm:$0xff]  }
 0x245   :  { %4641 = vmatpush1.bf16.msra.mxu0 %v6610_v6  ;;  %v6658_v6 = vld [vmem:[#allocation9 + $0xc10] ss:$28 sps:$4 sm:$0xff]  }
 0x246   :  { %5870 = vmatmul.mubr.msk.bf16.vlgmr.msra.gmra.mrb[12].mxu1 %vm7477_vm3, %v7473_v63  ;;  %4651 = vmatprep.subr.bf16.mxu0 %v6618_v7  ;;  %v6666_v7 = vld [vmem:[#allocation9 + $0xc4c] ss:$28 sps:$4 sm:$0xff]  }
 0x247   :  { %4775 = vmatpush1.bf16.msra.mxu1 %v6613_v8  ;;  %5873 = vmatprep.mubr.msk.bf16.mxu1 %vm7503_vm5, %v7508_v50  ;;  %v6661_v8 = vld [vmem:[#allocation9 + $0x550] ss:$28 sps:$4 sm:$0xff]  }
 0x248   :  { %5854 = vmatmul.mubr.msk.bf16.vlgmr.msra.gmra.mrb[16].mxu0 %vm7597_vm0, %v7603_v15  ;;  %4776 = vmatprep.subr.bf16.mxu1 %v6621_v20  ;;  %v6669_v20 = vld [vmem:[#allocation9 + $0x58c] ss:$28 sps:$4 sm:$0xff]  }
 0x249   :  { %4652 = vmatpush1.bf16.msra.mxu0 %v6616_v11  ;;  %5857 = vmatprep.mubr.msk.bf16.mxu0 %vm7605_vm1, %v7601_v12  ;;  %v6664_v11 = vld [vmem:[#allocation9 + $0xc48] ss:$28 sps:$4 sm:$0xff]  }
 0x24a   :  { %4653 = vmatprep.subr.bf16.mxu0 %v6624_v60  ;;  %v6672_v60 = vld [vmem:[#allocation9 + $0xc84] ss:$28 sps:$4 sm:$0xff]  }
 0x24b   :  { %4777 = vmatpush1.bf16.msra.mxu1 %v6619_v17  ;;  %v6667_v17 = vld [vmem:[#allocation9 + $0x588] ss:$28 sps:$4 sm:$0xff]  }
 0x24c   :  { %4778 = vmatprep.subr.bf16.mxu1 %v6627_v18  ;;  %v6675_v18 = vld [vmem:[#allocation9 + $0x5c4] ss:$28 sps:$4 sm:$0xff]  }
 0x24d   :  { %4654 = vmatpush1.bf16.msra.mxu0 %v6622_v48  ;;  %v6670_v48 = vld [vmem:[#allocation9 + $0xc80] ss:$28 sps:$4 sm:$0xff]  }
 0x24e   :  { %4655 = vmatprep.subr.bf16.mxu0 %v6630_v19  ;;  %v6678_v19 = vld [vmem:[#allocation9 + $0xcbc] ss:$28 sps:$4 sm:$0xff]  }
 0x24f   :  { %4779 = vmatpush1.bf16.msra.mxu1 %v6625_v23  ;;  %v6673_v23 = vld [vmem:[#allocation9 + $0x5c0] ss:$28 sps:$4 sm:$0xff]  }
 0x250   :  { %4780 = vmatprep.subr.bf16.mxu1 %v6633_v10  ;;  %v6681_v10 = vld [vmem:[#allocation9 + $0x5fc] ss:$28 sps:$4 sm:$0xff]  }
 0x251   :  { %4656 = vmatpush1.bf16.msra.mxu0 %v6628_v36  ;;  %v6676_v36 = vld [vmem:[#allocation9 + $0xcb8] ss:$28 sps:$4 sm:$0xff]  }
 0x252   :  { %4657 = vmatprep.subr.bf16.mxu0 %v6636_v26  ;;  %v6684_v26 = vld [vmem:[#allocation9 + $0xcf4] ss:$28 sps:$4 sm:$0xff]  }
 0x253   :  { %4781 = vmatpush1.bf16.msra.mxu1 %v6631_v27  ;;  %v6679_v27 = vld [vmem:[#allocation9 + $0x5f8] ss:$28 sps:$4 sm:$0xff]  }
 0x254   :  { %4782 = vmatprep.subr.bf16.mxu1 %v6639_v28  ;;  %v6687_v28 = vld [vmem:[#allocation9 + $0x634] ss:$28 sps:$4 sm:$0xff]  }
 0x255   :  { %4658 = vmatpush1.bf16.msra.mxu0 %v6634_v30  ;;  %v6682_v30 = vld [vmem:[#allocation9 + $0xcf0] ss:$28 sps:$4 sm:$0xff]  }
 0x256   :  { %4659 = vmatprep.subr.bf16.mxu0 %v6642_v31  ;;  %v6690_v31 = vld [vmem:[#allocation9 + $0xd2c] ss:$28 sps:$4 sm:$0xff]  }
 0x257   :  { %4783 = vmatpush1.bf16.msra.mxu1 %v6637_v33  ;;  %v6685_v33 = vld [vmem:[#allocation9 + $0x630] ss:$28 sps:$4 sm:$0xff]  }
 0x258   :  { %4784 = vmatprep.subr.bf16.mxu1 %v6645_v37  ;;  %v6693_v37 = vld [vmem:[#allocation9 + $0x66c] ss:$28 sps:$4 sm:$0xff]  }
 0x259   :  { %4660 = vmatpush1.bf16.msra.mxu0 %v6640_v38  ;;  %v6688_v38 = vld [vmem:[#allocation9 + $0xd28] ss:$28 sps:$4 sm:$0xff]  }
 0x25a   :  { %4661 = vmatprep.subr.bf16.mxu0 %v6648_v41  ;;  %v6696_v41 = vld [vmem:[#allocation9 + $0xd64] ss:$28 sps:$4 sm:$0xff]  }
 0x25b   :  { %v7659_v52 = vpop.f32.mrb[12].mxu0  ;;  %4785 = vmatpush1.bf16.msra.mxu1 %v6643_v43  ;;  %v6691_v43 = vld [vmem:[#allocation9 + $0x668] ss:$28 sps:$4 sm:$0xff]  }
 0x25c   :  { %v7661_v54 = vpop.f32.mrb[13].mxu0  ;;  %4786 = vmatprep.subr.bf16.mxu1 %v6651_v45  ;;  %v6699_v45 = vld [vmem:[#allocation9 + $0x6a4] ss:$28 sps:$4 sm:$0xff]  }
 0x25d   :  { %4662 = vmatpush1.bf16.msra.mxu0 %v6646_v46  ;;  %v4525_v57 = vpop.f32.mrb[14].mxu0  ;;  %v6694_v46 = vld [vmem:[#allocation9 + $0xd60] ss:$28 sps:$4 sm:$0xff]  }
 0x25e   :  { %v4526_v59 = vpop.f32.mrb[15].mxu0  ;;  %4663 = vmatprep.subr.bf16.mxu0 %v6654_v14  ;;  %v6702_v14 = vld [vmem:[#allocation9 + $0xd9c] ss:$28 sps:$4 sm:$0xff]  }
 0x25f   :  { %4787 = vmatpush1.bf16.msra.mxu1 %v6649_v53  ;;  %v6697_v53 = vld [vmem:[#allocation9 + $0x6a0] ss:$28 sps:$4 sm:$0xff]   ;;  %v6700_v57 = vld [vmem:[#allocation9 + $0xd98] ss:$28 sps:$4 sm:$0xff]  }
 0x260   :  { %4788 = vmatprep.subr.bf16.mxu1 %v6657_v56  ;;  %v6705_v56 = vld [vmem:[#allocation9 + $0x6dc] ss:$28 sps:$4 sm:$0xff]  }
 0x261   :  { %4664 = vmatpush1.bf16.msra.mxu0 %v6652_v58  ;;  %v6708_v58 = vld [vmem:[#allocation9 + $0xdd4] ss:$28 sps:$4 sm:$0xff]  }
 0x262   :  { %4665 = vmatprep.subr.bf16.mxu0 %v6660_v62  ;;  %v6703_v59 = vld [vmem:[#allocation9 + $0x6d8] ss:$28 sps:$4 sm:$0xff]  }
 0x263   :  { %4789 = vmatpush1.bf16.msra.mxu1 %v6655_v1  ;;  %v6711_v62 = vld [vmem:[#allocation9 + $0x714] ss:$28 sps:$4 sm:$0xff]  }
 0x264   :  { %4790 = vmatprep.subr.bf16.mxu1 %v6663_v5  ;;  %v6706_v1 = vld [vmem:[#allocation9 + $0xdd0] ss:$28 sps:$4 sm:$0xff]  }
 0x265   :  { %4666 = vmatpush1.bf16.msra.mxu0 %v6658_v6  ;;  %v6714_v5 = vld [vmem:[#allocation9 + $0xe0c] ss:$28 sps:$4 sm:$0xff]  }
 0x266   :  { %4667 = vmatprep.subr.bf16.mxu0 %v6666_v7  ;;  %v6709_v6 = vld [vmem:[#allocation9 + $0x710] ss:$28 sps:$4 sm:$0xff]  }
 0x267   :  { %4791 = vmatpush1.bf16.msra.mxu1 %v6661_v8  ;;  %v6717_v7 = vld [vmem:[#allocation9 + $0x74c] ss:$28 sps:$4 sm:$0xff]  }
 0x268   :  { %4792 = vmatprep.subr.bf16.mxu1 %v6669_v20  ;;  %v6712_v8 = vld [vmem:[#allocation9 + $0xe08] ss:$28 sps:$4 sm:$0xff]  }
 0x269   :  { %4668 = vmatpush1.bf16.msra.mxu0 %v6664_v11  ;;  %v6720_v20 = vld [vmem:[#allocation9 + $0xe44] ss:$28 sps:$4 sm:$0xff]  }
 0x26a   :  { %4669 = vmatprep.subr.bf16.mxu0 %v6672_v60  ;;  %v6715_v11 = vld [vmem:[#allocation9 + $0x748] ss:$28 sps:$4 sm:$0xff]  }
 0x26b   :  { %4793 = vmatpush1.bf16.msra.mxu1 %v6667_v17  ;;  %v6723_v60 = vld [vmem:[#allocation9 + $0x784] ss:$28 sps:$4 sm:$0xff]  }
 0x26c   :  { %4794 = vmatprep.subr.bf16.mxu1 %v6675_v18  ;;  %v6718_v17 = vld [vmem:[#allocation9 + $0xe40] ss:$28 sps:$4 sm:$0xff]  }
 0x26d   :  { %4670 = vmatpush1.bf16.msra.mxu0 %v6670_v48  ;;  %v6726_v18 = vld [vmem:[#allocation9 + $0xe7c] ss:$28 sps:$4 sm:$0xff]  }
 0x26e   :  { %4671 = vmatprep.subr.bf16.mxu0 %v6678_v19  ;;  %v6721_v48 = vld [vmem:[#allocation9 + $0x780] ss:$28 sps:$4 sm:$0xff]  }
 0x26f   :  { %4795 = vmatpush1.bf16.msra.mxu1 %v6673_v23  ;;  %v6729_v19 = vld [vmem:[#allocation9 + $0x7bc] ss:$28 sps:$4 sm:$0xff]  }
 0x270   :  { %4796 = vmatprep.subr.bf16.mxu1 %v6681_v10  ;;  %v6724_v23 = vld [vmem:[#allocation9 + $0xe78] ss:$28 sps:$4 sm:$0xff]  }
 0x271   :  { %4672 = vmatpush1.bf16.msra.mxu0 %v6676_v36  ;;  %v6732_v10 = vld [vmem:[#allocation9 + $0xeb4] ss:$28 sps:$4 sm:$0xff]  }
 0x272   :  { %4673 = vmatprep.subr.bf16.mxu0 %v6684_v26  ;;  %v6727_v36 = vld [vmem:[#allocation9 + $0x7b8] ss:$28 sps:$4 sm:$0xff]  }
 0x273   :  { %4797 = vmatpush1.bf16.msra.mxu1 %v6679_v27  ;;  %v6735_v26 = vld [vmem:[#allocation9 + $0x7f4] ss:$28 sps:$4 sm:$0xff]  }
 0x274   :  { %4798 = vmatprep.subr.bf16.mxu1 %v6687_v28  ;;  %v6730_v27 = vld [vmem:[#allocation9 + $0xeb0] ss:$28 sps:$4 sm:$0xff]  }
 0x275   :  { %4674 = vmatpush1.bf16.msra.mxu0 %v6682_v30  ;;  %v6738_v28 = vld [vmem:[#allocation9 + $0xeec] ss:$28 sps:$4 sm:$0xff]  }
 0x276   :  { %4675 = vmatprep.subr.bf16.mxu0 %v6690_v31  ;;  %v6733_v30 = vld [vmem:[#allocation9 + $0x7f0] ss:$28 sps:$4 sm:$0xff]  }
 0x277   :  { %4799 = vmatpush1.bf16.msra.mxu1 %v6685_v33  ;;  %v6741_v31 = vld [vmem:[#allocation9 + $0x82c] ss:$28 sps:$4 sm:$0xff]  }
 0x278   :  { %4800 = vmatprep.subr.bf16.mxu1 %v6693_v37  ;;  %v6736_v33 = vld [vmem:[#allocation9 + $0xee8] ss:$28 sps:$4 sm:$0xff]  }
 0x279   :  { %4676 = vmatpush1.bf16.msra.mxu0 %v6688_v38  ;;  %v6744_v37 = vld [vmem:[#allocation9 + $0xf24] ss:$28 sps:$4 sm:$0xff]  }
 0x27a   :  { %4677 = vmatprep.subr.bf16.mxu0 %v6696_v41  ;;  %v6739_v38 = vld [vmem:[#allocation9 + $0x828] ss:$28 sps:$4 sm:$0xff]  }
 0x27b   :  { %4801 = vmatpush1.bf16.msra.mxu1 %v6691_v43  ;;  %v6747_v41 = vld [vmem:[#allocation9 + $0x864] ss:$28 sps:$4 sm:$0xff]  }
 0x27c   :  { %4802 = vmatprep.subr.bf16.mxu1 %v6699_v45  ;;  %v6742_v43 = vld [vmem:[#allocation9 + $0xf20] ss:$28 sps:$4 sm:$0xff]  }
 0x27d   :  { %4678 = vmatpush1.bf16.msra.mxu0 %v6694_v46  ;;  %v6750_v45 = vld [vmem:[#allocation9 + $0xf5c] ss:$28 sps:$4 sm:$0xff]  }
 0x27e   :  { %4679 = vmatprep.subr.bf16.mxu0 %v6702_v14  ;;  %v6745_v46 = vld [vmem:[#allocation9 + $0x860] ss:$28 sps:$4 sm:$0xff]  }
 0x27f   :  { %4803 = vmatpush1.bf16.msra.mxu1 %v6697_v53  ;;  %v6753_v14 = vld [vmem:[#allocation9 + $0x89c] ss:$28 sps:$4 sm:$0xff]  }
 0x280   :  { %4804 = vmatprep.subr.bf16.mxu1 %v6705_v56  ;;  %v6748_v53 = vld [vmem:[#allocation9 + $0xf58] ss:$28 sps:$4 sm:$0xff]  }
 0x281   :  { %4680 = vmatpush1.bf16.msra.mxu0 %v6700_v57  ;;  %v6756_v56 = vld [vmem:[#allocation9 + $0xf94] ss:$28 sps:$4 sm:$0xff]  }
 0x282   :  { %4681 = vmatprep.subr.bf16.mxu0 %v6708_v58  ;;  %v6751_v57 = vld [vmem:[#allocation9 + $0x898] ss:$28 sps:$4 sm:$0xff]  }
 0x283   :  { %4805 = vmatpush1.bf16.msra.mxu1 %v6703_v59  ;;  %v6759_v58 = vld [vmem:[#allocation9 + $0x8d4] ss:$28 sps:$4 sm:$0xff]  }
 0x284   :  { %4815 = vmatprep.subr.bf16.mxu1 %v6711_v62  ;;  %v6754_v59 = vld [vmem:[#allocation9 + $0xf90] ss:$28 sps:$4 sm:$0xff]  }
 0x285   :  { %4682 = vmatpush1.bf16.msra.mxu0 %v6706_v1  ;;  %v6762_v62 = vld [vmem:[#allocation9 + $0xfcc] ss:$28 sps:$4 sm:$0xff]  }
 0x286   :  { %5876 = vmatmul.mubr.msk.bf16.vlgmr.msra.gmra.mrb[12].mxu1 %vm7547_vm9, %v7542_v29  ;;  %4692 = vmatprep.subr.bf16.mxu0 %v6714_v5  ;;  %v6757_v1 = vld [vmem:[#allocation9 + $0x8d0] ss:$28 sps:$4 sm:$0xff]  }
 0x287   :  { %4816 = vmatpush1.bf16.msra.mxu1 %v6709_v6  ;;  %5879 = vmatprep.mubr.msk.bf16.mxu1 %vm7553_vm11, %v7559_v24  ;;  %v6765_v5 = vld [vmem:[#allocation9 + $0x90c] ss:$28 sps:$4 sm:$0xff]  }
 0x288   :  { %5860 = vmatmul.mubr.msk.bf16.vlgmr.msra.gmra.mrb[16].mxu0 %vm7631_vm6, %v7629_v51  ;;  %4817 = vmatprep.subr.bf16.mxu1 %v6717_v7  ;;  %v6760_v6 = vld [vmem:[#allocation9 + $0xfc8] ss:$28 sps:$4 sm:$0xff]  }
 0x289   :  { %4693 = vmatpush1.bf16.msra.mxu0 %v6712_v8  ;;  %5861 = vmatprep.mubr.msk.bf16.mxu0 %vm4319_vm12, %v7557_v35  ;;  %v6768_v7 = vld [vmem:[#allocation9 + $0x1004] ss:$28 sps:$4 sm:$0xff]  }
 0x28a   :  { %4694 = vmatprep.subr.bf16.mxu0 %v6720_v20  ;;  %v6763_v8 = vld [vmem:[#allocation9 + $0x908] ss:$28 sps:$4 sm:$0xff]  }
 0x28b   :  { %4818 = vmatpush1.bf16.msra.mxu1 %v6715_v11  ;;  %v6771_v20 = vld [vmem:[#allocation9 + $0x944] ss:$28 sps:$4 sm:$0xff]  }
 0x28c   :  { %4819 = vmatprep.subr.bf16.mxu1 %v6723_v60  ;;  %v6766_v11 = vld [vmem:[#allocation9 + $0x1000] ss:$28 sps:$4 sm:$0xff]  }
 0x28d   :  { %4695 = vmatpush1.bf16.msra.mxu0 %v6718_v17  ;;  %v6774_v60 = vld [vmem:[#allocation9 + $0x103c] ss:$28 sps:$4 sm:$0xff]  }
 0x28e   :  { %4696 = vmatprep.subr.bf16.mxu0 %v6726_v18  ;;  %v6769_v17 = vld [vmem:[#allocation9 + $0x940] ss:$28 sps:$4 sm:$0xff]  }
 0x28f   :  { %4820 = vmatpush1.bf16.msra.mxu1 %v6721_v48  ;;  %v6777_v18 = vld [vmem:[#allocation9 + $0x97c] ss:$28 sps:$4 sm:$0xff]  }
 0x290   :  { %4821 = vmatprep.subr.bf16.mxu1 %v6729_v19  ;;  %v6772_v48 = vld [vmem:[#allocation9 + $0x1038] ss:$28 sps:$4 sm:$0xff]  }
 0x291   :  { %4697 = vmatpush1.bf16.msra.mxu0 %v6724_v23  ;;  %v6778_v19 = vld [vmem:[#allocation9 + $0x1d8] ss:$28 sps:$4 sm:$0xff]  }
 0x292   :  { %4698 = vmatprep.subr.bf16.mxu0 %v6732_v10  ;;  %v6775_v23 = vld [vmem:[#allocation9 + $0x978] ss:$28 sps:$4 sm:$0xff]  }
 0x293   :  { %4822 = vmatpush1.bf16.msra.mxu1 %v6727_v36  ;;  %v6782_v10 = vld [vmem:[#allocation9 + $0x9b4] ss:$28 sps:$4 sm:$0xff]  }
 0x294   :  { %4823 = vmatprep.subr.bf16.mxu1 %v6735_v26  ;;  %v6779_v36 = vld [vmem:[#allocation9 + $0x18] ss:$28 sps:$4 sm:$0xff]   ;;  %v6783_v26 = vld [vmem:[#allocation9 + $0x210] ss:$28 sps:$4 sm:$0xff]  }
 0x295   :  { %4699 = vmatpush1.bf16.msra.mxu0 %v6730_v27  ;;  %v6780_v27 = vld [vmem:[#allocation9 + $0x9b0] ss:$28 sps:$4 sm:$0xff]  }
 0x296   :  { %4700 = vmatprep.subr.bf16.mxu0 %v6738_v28  ;;  %v6787_v28 = vld [vmem:[#allocation9 + $0x9ec] ss:$28 sps:$4 sm:$0xff]  }
 0x297   :  { %4824 = vmatpush1.bf16.msra.mxu1 %v6733_v30  ;;  %v6784_v30 = vld [vmem:[#allocation9 + $0x50] ss:$28 sps:$4 sm:$0xff]  }
 0x298   :  { %4825 = vmatprep.subr.bf16.mxu1 %v6741_v31  ;;  %v6788_v31 = vld [vmem:[#allocation9 + $0x248] ss:$28 sps:$4 sm:$0xff]  }
 0x299   :  { %4701 = vmatpush1.bf16.msra.mxu0 %v6736_v33  ;;  %v6785_v33 = vld [vmem:[#allocation9 + $0x9e8] ss:$28 sps:$4 sm:$0xff]  }
 0x29a   :  { %4702 = vmatprep.subr.bf16.mxu0 %v6744_v37  ;;  %v6792_v37 = vld [vmem:[#allocation9 + $0xa24] ss:$28 sps:$4 sm:$0xff]  }
 0x29b   :  { %4826 = vmatpush1.bf16.msra.mxu1 %v6739_v38  ;;  %v6789_v38 = vld [vmem:[#allocation9 + $0x88] ss:$28 sps:$4 sm:$0xff]  }
 0x29c   :  { %4827 = vmatprep.subr.bf16.mxu1 %v6747_v41  ;;  %v6793_v41 = vld [vmem:[#allocation9 + $0x280] ss:$28 sps:$4 sm:$0xff]  }
 0x29d   :  { %4703 = vmatpush1.bf16.msra.mxu0 %v6742_v43  ;;  %v6790_v43 = vld [vmem:[#allocation9 + $0xa20] ss:$28 sps:$4 sm:$0xff]  }
 0x29e   :  { %4704 = vmatprep.subr.bf16.mxu0 %v6750_v45  ;;  %v6797_v45 = vld [vmem:[#allocation9 + $0xa5c] ss:$28 sps:$4 sm:$0xff]  }
 0x29f   :  { %4828 = vmatpush1.bf16.msra.mxu1 %v6745_v46  ;;  %v6794_v46 = vld [vmem:[#allocation9 + $0xc0] ss:$28 sps:$4 sm:$0xff]  }
 0x2a0   :  { %4829 = vmatprep.subr.bf16.mxu1 %v6753_v14  ;;  %v6802_v14 = vld [vmem:[#allocation9 + $0xa94] ss:$28 sps:$4 sm:$0xff]  }
 0x2a1   :  { %4705 = vmatpush1.bf16.msra.mxu0 %v6748_v53  ;;  %v6799_v53 = vld [vmem:[#allocation9 + $0xf8] ss:$28 sps:$4 sm:$0xff]  }
 0x2a2   :  { %4706 = vmatprep.subr.bf16.mxu0 %v6756_v56  ;;  %v6803_v56 = vld [vmem:[#allocation9 + $0x2f0] ss:$28 sps:$4 sm:$0xff]  }
 0x2a3   :  { %4830 = vmatpush1.bf16.msra.mxu1 %v6751_v57  ;;  %v6800_v57 = vld [vmem:[#allocation9 + $0xa90] ss:$28 sps:$4 sm:$0xff]  }
 0x2a4   :  { %4831 = vmatprep.subr.bf16.mxu1 %v6759_v58  ;;  %v6807_v58 = vld [vmem:[#allocation9 + $0xacc] ss:$28 sps:$4 sm:$0xff]  }
 0x2a5   :  { %4707 = vmatpush1.bf16.msra.mxu0 %v6754_v59  ;;  %v6804_v59 = vld [vmem:[#allocation9 + $0x130] ss:$28 sps:$4 sm:$0xff]  }
 0x2a6   :  { %4708 = vmatprep.subr.bf16.mxu0 %v6762_v62  ;;  %v6808_v62 = vld [vmem:[#allocation9 + $0x328] ss:$28 sps:$4 sm:$0xff]  }
 0x2a7   :  { %4832 = vmatpush1.bf16.msra.mxu1 %v6757_v1  ;;  %v6805_v1 = vld [vmem:[#allocation9 + $0xac8] ss:$28 sps:$4 sm:$0xff]  }
 0x2a8   :  { %4833 = vmatprep.subr.bf16.mxu1 %v6765_v5  ;;  %v6812_v5 = vld [vmem:[#allocation9 + $0xb04] ss:$28 sps:$4 sm:$0xff]  }
 0x2a9   :  { %4709 = vmatpush1.bf16.msra.mxu0 %v6760_v6  ;;  %v6809_v6 = vld [vmem:[#allocation9 + $0x168] ss:$28 sps:$4 sm:$0xff]  }
 0x2aa   :  { %4710 = vmatprep.subr.bf16.mxu0 %v6768_v7  ;;  %v6813_v7 = vld [vmem:[#allocation9 + $0x360] ss:$28 sps:$4 sm:$0xff]  }
 0x2ab   :  { %4834 = vmatpush1.bf16.msra.mxu1 %v6763_v8  ;;  %v6810_v8 = vld [vmem:[#allocation9 + $0xb00] ss:$28 sps:$4 sm:$0xff]  }
 0x2ac   :  { %4835 = vmatprep.subr.bf16.mxu1 %v6771_v20  ;;  %v6817_v20 = vld [vmem:[#allocation9 + $0xb3c] ss:$28 sps:$4 sm:$0xff]  }
 0x2ad   :  { %4711 = vmatpush1.bf16.msra.mxu0 %v6766_v11  ;;  %v6814_v11 = vld [vmem:[#allocation9 + $0x1a0] ss:$28 sps:$4 sm:$0xff]  }
 0x2ae   :  { %4712 = vmatprep.subr.bf16.mxu0 %v6774_v60  ;;  %v6818_v60 = vld [vmem:[#allocation9 + $0x558] ss:$28 sps:$4 sm:$0xff]  }
 0x2af   :  { %4836 = vmatpush1.bf16.msra.mxu1 %v6769_v17  ;;  %v6815_v17 = vld [vmem:[#allocation9 + $0xb38] ss:$28 sps:$4 sm:$0xff]  }
 0x2b0   :  { %4837 = vmatprep.subr.bf16.mxu1 %v6777_v18  ;;  %v6822_v18 = vld [vmem:[#allocation9 + $0xb74] ss:$28 sps:$4 sm:$0xff]  }
 0x2b1   :  { %4713 = vmatpush1.bf16.msra.mxu0 %v6772_v48  ;;  %v6819_v48 = vld [vmem:[#allocation9 + $0x398] ss:$28 sps:$4 sm:$0xff]  }
 0x2b2   :  { %5928 = vmatprep.subr.bf16.mxu0 %v6778_v19  ;;  %v6823_v19 = vld [vmem:[#allocation9 + $0x590] ss:$28 sps:$4 sm:$0xff]  }
 0x2b3   :  { %4838 = vmatpush1.bf16.msra.mxu1 %v6775_v23  ;;  %v6820_v23 = vld [vmem:[#allocation9 + $0xb70] ss:$28 sps:$4 sm:$0xff]  }
 0x2b4   :  { %5864 = vmatmul.mubr.msk.bf16.vlgmr.msra.gmra.mrb[16].mxu0 %vm7561_vm13, %v7565_v40  ;;  %4839 = vmatprep.subr.bf16.mxu1 %v6782_v10  ;;  %v7686_v10 = vld [vmem:[#allocation10] sm:$0xff] }
 0x2b5   :  { %5929 = vmatpush3.bf16.msra.mxu0 %v6779_v36  ;;  %5895 = vmatprep.mubr.msk.bf16.mxu0 %vm7469_vm2, %v7475_v3  ;;  %v6795_v3 = vld [vmem:[#allocation9 + $0xa58] ss:$28 sps:$4 sm:$0xff]   ;;  %v6827_v36 = vld [vmem:[#allocation9 + $0xbac] ss:$28 sps:$4 sm:$0xff]  }
 0x2b6   :  { %5930 = vmatprep.subr.bf16.mxu0 %v6783_v26  ;;  %v6824_v26 = vld [vmem:[#allocation9 + $0x3d0] ss:$28 sps:$4 sm:$0xff]  }
 0x2b7   :  { %4840 = vmatpush1.bf16.msra.mxu1 %v6780_v27  ;;  %v1587_v27 = vrot.slane %v7686_v10, %v7458_v47 }
 0x2b8   :  { %4841 = vmatprep.subr.bf16.mxu1 %v6787_v28  ;;  %v6828_v28 = vld [vmem:[#allocation9 + $0x5c8] ss:$28 sps:$4 sm:$0xff]  }
 0x2b9   :  { %5931 = vmatpush3.bf16.msra.mxu0 %v6784_v30  ;;  %v1591_v30 = vrot.slane %v7686_v10, %v7463_v49 }
 0x2ba   :  { %5932 = vmatprep.subr.bf16.mxu0 %v6788_v31  ;;  %v6825_v31 = vld [vmem:[#allocation9 + $0xba8] ss:$28 sps:$4 sm:$0xff]  }
 0x2bb   :  { %4842 = vmatpush1.bf16.msra.mxu1 %v6785_v33  ;;  %v6829_v33 = vld [vmem:[#allocation9 + $0x408] ss:$28 sps:$4 sm:$0xff]  }
 0x2bc   :  { %4843 = vmatprep.subr.bf16.mxu1 %v6792_v37 }
 0x2bd   :  { %5933 = vmatpush3.bf16.msra.mxu0 %v6789_v38 }
 0x2be   :  { %5934 = vmatprep.subr.bf16.mxu0 %v6793_v41 }
 0x2bf   :  { %4844 = vmatpush1.bf16.msra.mxu1 %v6790_v43  ;;  %v6830_v43 = vld [vmem:[#allocation9 + $0xbe0] ss:$28 sps:$4 sm:$0xff]  }
 0x2c0   :  { %4845 = vmatprep.subr.bf16.mxu1 %v6797_v45 }
 0x2c1   :  { %5935 = vmatpush3.bf16.msra.mxu0 %v6794_v46  ;;  %v6837_v46 = vld [vmem:[#allocation9 + $0xc1c] ss:$28 sps:$4 sm:$0xff]  }
 0x2c2   :  { %5936 = vmatprep.subr.bf16.mxu0 %v6798_v61  ;;  %v6834_v61 = vld [vmem:[#allocation9 + $0x440] ss:$28 sps:$4 sm:$0xff]  }
 0x2c3   :  { %4846 = vmatpush1.bf16.msra.mxu1 %v6795_v3 }
 0x2c4   :  { %4856 = vmatprep.subr.bf16.mxu1 %v6802_v14  ;;  %v6838_v14 = vld [vmem:[#allocation9 + $0x638] ss:$28 sps:$4 sm:$0xff]  }
 0x2c5   :  { %5937 = vmatpush3.bf16.msra.mxu0 %v6799_v53 }
 0x2c6   :  { %5882 = vmatmul.mubr.msk.bf16.vlgmr.msra.gmra.mrb[12].mxu1 %vm7597_vm0, %v7603_v15  ;;  %5938 = vmatprep.subr.bf16.mxu0 %v6803_v56  ;;  %v6835_v56 = vld [vmem:[#allocation9 + $0xc18] ss:$28 sps:$4 sm:$0xff]  }
 0x2c7   :  { %4857 = vmatpush1.bf16.msra.mxu1 %v6800_v57  ;;  %5885 = vmatprep.mubr.msk.bf16.mxu1 %vm7605_vm1, %v7601_v12  ;;  %v6842_v57 = vld [vmem:[#allocation9 + $0xc54] ss:$28 sps:$4 sm:$0xff]  }
 0x2c8   :  { %4858 = vmatprep.subr.bf16.mxu1 %v6807_v58  ;;  %v6839_v58 = vld [vmem:[#allocation9 + $0x478] ss:$28 sps:$4 sm:$0xff]  }
 0x2c9   :  { %5939 = vmatpush3.bf16.msra.mxu0 %v6804_v59  ;;  %v6840_v59 = vld [vmem:[#allocation9 + $0xc50] ss:$28 sps:$4 sm:$0xff]  }
 0x2ca   :  { %5940 = vmatprep.subr.bf16.mxu0 %v6808_v62  ;;  %v6844_v62 = vld [vmem:[#allocation9 + $0x4b0] ss:$28 sps:$4 sm:$0xff]  }
 0x2cb   :  { %4859 = vmatpush1.bf16.msra.mxu1 %v6805_v1  ;;  %v6848_v1 = vld [vmem:[#allocation9 + $0x6a8] ss:$28 sps:$4 sm:$0xff]  }
 0x2cc   :  { %4860 = vmatprep.subr.bf16.mxu1 %v6812_v5  ;;  %v6845_v5 = vld [vmem:[#allocation9 + $0xc88] ss:$28 sps:$4 sm:$0xff]  }
 0x2cd   :  { %5941 = vmatpush3.bf16.msra.mxu0 %v6809_v6  ;;  %v6852_v6 = vld [vmem:[#allocation9 + $0xcc4] ss:$28 sps:$4 sm:$0xff]  }
 0x2ce   :  { %5942 = vmatprep.subr.bf16.mxu0 %v6813_v7  ;;  %v6849_v7 = vld [vmem:[#allocation9 + $0x4e8] ss:$28 sps:$4 sm:$0xff]  }
 0x2cf   :  { %4861 = vmatpush1.bf16.msra.mxu1 %v6810_v8 }
 0x2d0   :  { %4862 = vmatprep.subr.bf16.mxu1 %v6817_v20  ;;  %v6853_v20 = vld [vmem:[#allocation9 + $0x6e0] ss:$28 sps:$4 sm:$0xff]  }
 0x2d1   :  { %5943 = vmatpush3.bf16.msra.mxu0 %v6814_v11 }
 0x2d2   :  { %5950 = vmatprep.subr.bf16.mxu0 %v6818_v60 }
 0x2d3   :  { %4863 = vmatpush1.bf16.msra.mxu1 %v6815_v17  ;;  %v6850_v17 = vld [vmem:[#allocation9 + $0xcc0] ss:$28 sps:$4 sm:$0xff]  }
 0x2d4   :  { %5898 = vmatmul.mubr.msk.bf16.vlgmr.msra.gmra.mrb[20].mxu0 %vm7477_vm3, %v7473_v63  ;;  %4864 = vmatprep.subr.bf16.mxu1 %v6822_v18  ;;  %v6832_v63 = vld [vmem:[#allocation9 + $0xbe4] ss:$28 sps:$4 sm:$0xff]  }
 0x2d5   :  { %5951 = vmatpush3.bf16.msra.mxu0 %v6819_v48  ;;  %5901 = vmatprep.mubr.msk.bf16.mxu0 %vm7503_vm5, %v7508_v50  ;;  %v6857_v48 = vld [vmem:[#allocation9 + $0xcfc] ss:$28 sps:$4 sm:$0xff]  }
 0x2d6   :  { %5952 = vmatprep.subr.bf16.mxu0 %v6823_v19  ;;  %v6854_v19 = vld [vmem:[#allocation9 + $0x520] ss:$28 sps:$4 sm:$0xff]  }
 0x2d7   :  { %4865 = vmatpush1.bf16.msra.mxu1 %v6820_v23  ;;  %v6858_v23 = vld [vmem:[#allocation9 + $0x8d8] ss:$28 sps:$4 sm:$0xff]  }
 0x2d8   :  { %4866 = vmatprep.subr.bf16.mxu1 %v6827_v36  ;;  %v6855_v36 = vld [vmem:[#allocation9 + $0xcf8] ss:$28 sps:$4 sm:$0xff]  }
 0x2d9   :  { %5953 = vmatpush3.bf16.msra.mxu0 %v6824_v26  ;;  %v4480_v4 = vpop.f32.mrb[8].mxu1  ;;  %v6862_v26 = vld [vmem:[#allocation9 + $0xd34] ss:$28 sps:$4 sm:$0xff]  }
 0x2da   :  { %v6016_v37 = vadd.f32 %v4480_v4, %v1587_v27  ;;  %v4482_v38 = vpop.f32.mrb[9].mxu1  ;;  %5954 = vmatprep.subr.bf16.mxu0 %v6828_v28  ;;  %v6859_v27 = vld [vmem:[#allocation9 + $0x718] ss:$28 sps:$4 sm:$0xff]   ;;  %v6863_v28 = vld [vmem:[#allocation9 + $0x910] ss:$28 sps:$4 sm:$0xff]  }
 0x2db   :  { %v6018_v50 = vadd.f32 %v4482_v38, %v1591_v30  ;;  %v4484_v41 = vpop.f32.mrb[10].mxu1  ;;  %4867 = vmatpush1.bf16.msra.mxu1 %v6825_v31  ;;  %v6860_v30 = vld [vmem:[#allocation9 + $0xd30] ss:$28 sps:$4 sm:$0xff]   ;;  %v6868_v4 = vld [vmem:[#allocation9 + $0x948] ss:$28 sps:$4 sm:$0xff]  }
 0x2dc   :  { %v6017_v47 = vadd.f32 %v6016_v37, %v7659_v52  ;;  %v4485_v45 = vpop.f32.mrb[11].mxu1  ;;  %4868 = vmatprep.subr.bf16.mxu1 %v6832_v63  ;;  %v6843_v52 = vld [vmem:[#allocation9 + $0x670] ss:$28 sps:$4 sm:$0xff]   ;;  %v6865_v37 = vld [vmem:[#allocation9 + $0xd68] ss:$28 sps:$4 sm:$0xff]  }
 0x2dd   :  { %v6019_v49 = vadd.f32 %v6018_v50, %v7661_v54  ;;  %5955 = vmatpush3.bf16.msra.mxu0 %v6829_v33  ;;  %v6847_v54 = vld [vmem:[#allocation9 + $0xc8c] ss:$28 sps:$4 sm:$0xff]   ;;  %v6870_v50 = vld [vmem:[#allocation9 + $0xda0] ss:$28 sps:$4 sm:$0xff]   ;;  %v6878_v41 = vld [vmem:[#allocation9 + $0x9b8] ss:$28 sps:$4 sm:$0xff]  }
 0x2de   :  { %v5921_v3 = vmul.f32 -1.442695, %v6017_v47  ;;  %5956 = vmatprep.subr.bf16.mxu0 %v6833_v42  ;;  %v6867_v31 = vld [vmem:[#allocation9 + $0xd6c] ss:$28 sps:$4 sm:$0xff]   ;;  %v6872_v42 = vld [vmem:[#allocation9 + $0xda4] ss:$28 sps:$4 sm:$0xff]  }
 0x2df   :  { %v5922_v53 = vmul.f32 -1.442695, %v6019_v49  ;;  %4869 = vmatpush1.bf16.msra.mxu1 %v6830_v43  ;;  %v6864_v63 = vld [vmem:[#allocation9 + $0x750] ss:$28 sps:$4 sm:$0xff]   ;;  %v6875_v43 = vld [vmem:[#allocation9 + $0xdd8] ss:$28 sps:$4 sm:$0xff]  }
 0x2e0   :  { %6946 = vpow2.f32 %v5921_v3  ;;  %4870 = vmatprep.subr.bf16.mxu1 %v6837_v46  ;;  %v6882_v47 = vld [vmem:[#allocation9 + $0xe14] ss:$28 sps:$4 sm:$0xff]  }
 0x2e1   :  { %6948 = vpow2.f32 %v5922_v53  ;;  %5957 = vmatpush3.bf16.msra.mxu0 %v6834_v61  ;;  %v6879_v45 = vld [vmem:[#allocation9 + $0x7f8] ss:$28 sps:$4 sm:$0xff]   ;;  %v6883_v46 = vld [vmem:[#allocation9 + $0x9f0] ss:$28 sps:$4 sm:$0xff]   ;;  %v6885_v53 = vld [vmem:[#allocation9 + $0xe48] ss:$28 sps:$4 sm:$0xff]  }
 0x2e2   :  { %5958 = vmatprep.subr.bf16.mxu0 %v6838_v14  ;;  %v6880_v49 = vld [vmem:[#allocation9 + $0xe10] ss:$28 sps:$4 sm:$0xff]   ;;  %v6888_v14 = vld [vmem:[#allocation9 + $0xa28] ss:$28 sps:$4 sm:$0xff]  }
 0x2e3   :  { %4871 = vmatpush1.bf16.msra.mxu1 %v6835_v56  ;;  %v6887_v61 = vld [vmem:[#allocation9 + $0xe4c] ss:$28 sps:$4 sm:$0xff]   ;;  %v6892_v56 = vld [vmem:[#allocation9 + $0xe84] ss:$28 sps:$4 sm:$0xff]  }
 0x2e4   :  { %4872 = vmatprep.subr.bf16.mxu1 %v6842_v57  ;;  %v6884_v3 = vld [vmem:[#allocation9 + $0x830] ss:$28 sps:$4 sm:$0xff]   ;;  %v6889_v57 = vld [vmem:[#allocation9 + $0x868] ss:$28 sps:$4 sm:$0xff]  }
 0x2e5   :  { %5959 = vmatpush3.bf16.msra.mxu0 %v6839_v58  ;;  %v6893_v58 = vld [vmem:[#allocation9 + $0xa60] ss:$28 sps:$4 sm:$0xff]  }
 0x2e6   :  { %5960 = vmatprep.subr.bf16.mxu0 %v6843_v52  ;;  %v6890_v52 = vld [vmem:[#allocation9 + $0xe80] ss:$28 sps:$4 sm:$0xff]  }
 0x2e7   :  { %4873 = vmatpush1.bf16.msra.mxu1 %v6840_v59  ;;  %v6897_v59 = vld [vmem:[#allocation9 + $0xebc] ss:$28 sps:$4 sm:$0xff]  }
 0x2e8   :  { %4874 = vmatprep.subr.bf16.mxu1 %v6847_v54  ;;  %v6894_v54 = vld [vmem:[#allocation9 + $0x8a0] ss:$28 sps:$4 sm:$0xff]  }
 0x2e9   :  { %5961 = vmatpush3.bf16.msra.mxu0 %v6844_v62  ;;  %v6898_v62 = vld [vmem:[#allocation9 + $0xc58] ss:$28 sps:$4 sm:$0xff]  }
 0x2ea   :  { %v6947_v8 = vpop.eup %6946  ;;  %5962 = vmatprep.subr.bf16.mxu0 %v6848_v1  ;;  %v6895_v1 = vld [vmem:[#allocation9 + $0xeb8] ss:$28 sps:$4 sm:$0xff]  }
 0x2eb   :  { %v6949_v11 = vpop.eup %6948  ;;  %v5159_v60 = vadd.f32 1.0, %v6947_v8  ;;  %4875 = vmatpush1.bf16.msra.mxu1 %v6845_v5  ;;  %v6902_v5 = vld [vmem:[#allocation9 + $0xef4] ss:$28 sps:$4 sm:$0xff]  }
 0x2ec   :  { %v5160_v18 = vadd.f32 1.0, %v6949_v11  ;;  %4876 = vmatprep.subr.bf16.mxu1 %v6852_v6  ;;  %v6899_v6 = vld [vmem:[#allocation9 + $0xa98] ss:$28 sps:$4 sm:$0xff]   ;;  %v6900_v8 = vld [vmem:[#allocation9 + $0xef0] ss:$28 sps:$4 sm:$0xff]  }
 0x2ed   :  { %6950 = vrcp.f32 %v5159_v60  ;;  %5963 = vmatpush3.bf16.msra.mxu0 %v6849_v7  ;;  %v6903_v7 = vld [vmem:[#allocation9 + $0xc90] ss:$28 sps:$4 sm:$0xff]   ;;  %v6908_v60 = vld [vmem:[#allocation9 + $0xcc8] ss:$28 sps:$4 sm:$0xff]  }
 0x2ee   :  { %6952 = vrcp.f32 %v5160_v18  ;;  %5964 = vmatprep.subr.bf16.mxu0 %v6853_v20  ;;  %v6907_v20 = vld [vmem:[#allocation9 + $0xf2c] ss:$28 sps:$4 sm:$0xff]   ;;  %v6912_v18 = vld [vmem:[#allocation9 + $0xf64] ss:$28 sps:$4 sm:$0xff]  }
 0x2ef   :  { %4877 = vmatpush1.bf16.msra.mxu1 %v6850_v17  ;;  %v6904_v11 = vld [vmem:[#allocation9 + $0xad0] ss:$28 sps:$4 sm:$0xff]   ;;  %v6905_v17 = vld [vmem:[#allocation9 + $0xf28] ss:$28 sps:$4 sm:$0xff]  }
 0x2f0   :  { %4878 = vmatprep.subr.bf16.mxu1 %v6857_v48  ;;  %v6909_v48 = vld [vmem:[#allocation9 + $0xb08] ss:$28 sps:$4 sm:$0xff]  }
 0x2f1   :  { %5965 = vmatpush3.bf16.msra.mxu0 %v6854_v19  ;;  %v6913_v19 = vld [vmem:[#allocation9 + $0xd00] ss:$28 sps:$4 sm:$0xff]  }
 0x2f2   :  { %5972 = vmatprep.subr.bf16.mxu0 %v6858_v23  ;;  %v6914_v23 = vld [vmem:[#allocation9 + $0xb40] ss:$28 sps:$4 sm:$0xff]  }
 0x2f3   :  { %4879 = vmatpush1.bf16.msra.mxu1 %v6855_v36  ;;  %v6922_v36 = vld [vmem:[#allocation9 + $0xfd4] ss:$28 sps:$4 sm:$0xff]  }
 0x2f4   :  { %5904 = vmatmul.mubr.msk.bf16.vlgmr.msra.gmra.mrb[24].mxu0 %vm7547_vm9, %v7542_v29  ;;  %4880 = vmatprep.subr.bf16.mxu1 %v6862_v26  ;;  %v6869_v29 = vld [vmem:[#allocation9 + $0x788] ss:$28 sps:$4 sm:$0xff]   ;;  %v6919_v26 = vld [vmem:[#allocation9 + $0xb78] ss:$28 sps:$4 sm:$0xff]  }
 0x2f5   :  { %5973 = vmatpush3.bf16.msra.mxu0 %v6859_v27  ;;  %5907 = vmatprep.mubr.msk.bf16.mxu0 %vm7553_vm11, %v7559_v24  ;;  %v6874_v24 = vld [vmem:[#allocation9 + $0x7c0] ss:$28 sps:$4 sm:$0xff]   ;;  %v6923_v27 = vld [vmem:[#allocation9 + $0xd70] ss:$28 sps:$4 sm:$0xff]  }
 0x2f6   :  { %5974 = vmatprep.subr.bf16.mxu0 %v6863_v28  ;;  %v6920_v28 = vld [vmem:[#allocation9 + $0xfd0] ss:$28 sps:$4 sm:$0xff]  }
 0x2f7   :  { %v6951_v33 = vpop.eup %6950  ;;  %4881 = vmatpush1.bf16.msra.mxu1 %v6860_v30  ;;  %v6927_v30 = vld [vmem:[#allocation9 + $0x100c] ss:$28 sps:$4 sm:$0xff]  }
 0x2f8   :  { %v6953_v38 = vpop.eup %6952  ;;  %5180 = vst [vmem:[#allocation12] sm:$0xff] %v6951_v33  ;;  %4882 = vmatprep.subr.bf16.mxu1 %v6867_v31  ;;  %v6924_v31 = vld [vmem:[#allocation9 + $0xbb0] ss:$28 sps:$4 sm:$0xff]   ;;  %v6932_v33 = vld [vmem:[#allocation9 + $0x1044] ss:$28 sps:$4 sm:$0xff]  }
 0x2f9   :  { %5181 = vst [vmem:[#allocation12 + $0x8] sm:$0xff] %v6953_v38  ;;  %5975 = vmatpush3.bf16.msra.mxu0 %v6864_v63  ;;  %v6928_v63 = vld [vmem:[#allocation9 + $0xda8] ss:$28 sps:$4 sm:$0xff]   ;;  %v6933_v38 = vld [vmem:[#allocation9 + $0xde0] ss:$28 sps:$4 sm:$0xff]  }
 0x2fa   :  { %5976 = vmatprep.subr.bf16.mxu0 %v6868_v4  ;;  %v6925_v4 = vld [vmem:[#allocation9 + $0x1008] ss:$28 sps:$4 sm:$0xff]  }
 0x2fb   :  { %4883 = vmatpush1.bf16.msra.mxu1 %v6865_v37  ;;  %v6929_v37 = vld [vmem:[#allocation9 + $0xbe8] ss:$28 sps:$4 sm:$0xff]  }
 0x2fc   :  { %4884 = vmatprep.subr.bf16.mxu1 %v6872_v42  ;;  %v6930_v42 = vld [vmem:[#allocation9 + $0x1040] ss:$28 sps:$4 sm:$0xff]  }
 0x2fd   :  { %5977 = vmatpush3.bf16.msra.mxu0 %v6869_v29  ;;  %v6934_v29 = vld [vmem:[#allocation9 + $0xc20] ss:$28 sps:$4 sm:$0xff]  }
 0x2fe   :  { %5978 = vmatprep.subr.bf16.mxu0 %v6873_v32  ;;  %v6935_v32 = vld [vmem:[#allocation9 + $0xe18] ss:$28 sps:$4 sm:$0xff]  }
 0x2ff   :  { %4885 = vmatpush1.bf16.msra.mxu1 %v6870_v50  ;;  %v6936_v50 = vld [vmem:[#allocation9 + $0xe50] ss:$28 sps:$4 sm:$0xff]  }
 0x300   :  { %4886 = vmatprep.subr.bf16.mxu1 %v6877_v2  ;;  %v6937_v2 = vld [vmem:[#allocation9 + $0xe88] ss:$28 sps:$4 sm:$0xff]  }
 0x301   :  { %5979 = vmatpush3.bf16.msra.mxu0 %v6874_v24  ;;  %v6938_v24 = vld [vmem:[#allocation9 + $0xec0] ss:$28 sps:$4 sm:$0xff]  }
 0x302   :  { %5980 = vmatprep.subr.bf16.mxu0 %v6878_v41  ;;  %v6939_v41 = vld [vmem:[#allocation9 + $0xef8] ss:$28 sps:$4 sm:$0xff]  }
 0x303   :  { %4887 = vmatpush1.bf16.msra.mxu1 %v6875_v43  ;;  %v6943_v43 = vld [vmem:[#allocation9 + $0xfd8] ss:$28 sps:$4 sm:$0xff]  }
 0x304   :  { %4897 = vmatprep.subr.bf16.mxu1 %v6882_v47  ;;  %v6944_v47 = vld [vmem:[#allocation9 + $0x1010] ss:$28 sps:$4 sm:$0xff]  }
 0x305   :  { %5981 = vmatpush3.bf16.msra.mxu0 %v6879_v45  ;;  %v6945_v45 = vld [vmem:[#allocation9 + $0x1048] ss:$28 sps:$4 sm:$0xff]  }
 0x306   :  { %5888 = vmatmul.mubr.msk.bf16.vlgmr.msra.gmra.mrb[12].mxu1 %vm7631_vm6, %v7629_v51  ;;  %5982 = vmatprep.subr.bf16.mxu0 %v6883_v46  ;;  %v1595_v46 = vrot.slane %v7686_v10, %v168_v44 }
 0x307   :  { %4898 = vmatpush1.bf16.msra.mxu1 %v6880_v49  ;;  %5889 = vmatprep.mubr.msk.bf16.mxu1 %vm4319_vm12, %v7557_v35  ;;  %v1599_v49 = vrot.slane %v7686_v10, %v172_v25 }
 0x308   :  { %4899 = vmatprep.subr.bf16.mxu1 %v6887_v61 }
 0x309   :  { %5983 = vmatpush3.bf16.msra.mxu0 %v6884_v3 }
 0x30a   :  { %5984 = vmatprep.subr.bf16.mxu0 %v6888_v14 }
 0x30b   :  { %4900 = vmatpush1.bf16.msra.mxu1 %v6885_v53 }
 0x30c   :  { %4901 = vmatprep.subr.bf16.mxu1 %v6892_v56 }
 0x30d   :  { %5985 = vmatpush3.bf16.msra.mxu0 %v6889_v57 }
 0x30e   :  { %5986 = vmatprep.subr.bf16.mxu0 %v6893_v58 }
 0x30f   :  { %4902 = vmatpush1.bf16.msra.mxu1 %v6890_v52 }
 0x310   :  { %4903 = vmatprep.subr.bf16.mxu1 %v6897_v59 }
 0x311   :  { %5987 = vmatpush3.bf16.msra.mxu0 %v6894_v54 }
 0x312   :  { %5994 = vmatprep.subr.bf16.mxu0 %v6898_v62 }
 0x313   :  { %4904 = vmatpush1.bf16.msra.mxu1 %v6895_v1 }
 0x314   :  { %5910 = vmatmul.mubr.msk.bf16.vlgmr.msra.gmra.mrb[28].mxu0 %vm7597_vm0, %v7603_v15  ;;  %4905 = vmatprep.subr.bf16.mxu1 %v6902_v5  ;;  %v6917_v15 = vld [vmem:[#allocation9 + $0xf9c] ss:$28 sps:$4 sm:$0xff]  }
 0x315   :  { %5995 = vmatpush3.bf16.msra.mxu0 %v6899_v6  ;;  %5913 = vmatprep.mubr.msk.bf16.mxu0 %vm7605_vm1, %v7601_v12  ;;  %v6915_v12 = vld [vmem:[#allocation9 + $0xf98] ss:$28 sps:$4 sm:$0xff]  }
 0x316   :  { %5996 = vmatprep.subr.bf16.mxu0 %v6903_v7  ;;  %v1611_v7 = vrot.slane %v7686_v10, %v184_v16  ;;  %v1607_v16 = vrot.slane %v7686_v10, %v180_v55 }
 0x317   :  { %4906 = vmatpush1.bf16.msra.mxu1 %v6900_v8 }
 0x318   :  { %4907 = vmatprep.subr.bf16.mxu1 %v6907_v20 }
 0x319   :  { %5997 = vmatpush3.bf16.msra.mxu0 %v6904_v11 }
 0x31a   :  { %5998 = vmatprep.subr.bf16.mxu0 %v6908_v60 }
 0x31b   :  { %4908 = vmatpush1.bf16.msra.mxu1 %v6905_v17 }
 0x31c   :  { %4909 = vmatprep.subr.bf16.mxu1 %v6912_v18 }
 0x31d   :  { %5999 = vmatpush3.bf16.msra.mxu0 %v6909_v48 }
 0x31e   :  { %6000 = vmatprep.subr.bf16.mxu0 %v6913_v19 }
 0x31f   :  { %4910 = vmatpush1.bf16.msra.mxu1 %v6910_v9 }
 0x320   :  { %4911 = vmatprep.subr.bf16.mxu1 %v6917_v15 }
 0x321   :  { %6001 = vmatpush3.bf16.msra.mxu0 %v6914_v23 }
 0x322   :  { %6002 = vmatprep.subr.bf16.mxu0 %v6918_v21 }
 0x323   :  { %4912 = vmatpush1.bf16.msra.mxu1 %v6915_v12 }
 0x324   :  { %4913 = vmatprep.subr.bf16.mxu1 %v6922_v36  ;;  %v1603_v36 = vrot.slane %v7686_v10, %v176_v34 }
 0x325   :  { %6003 = vmatpush3.bf16.msra.mxu0 %v6919_v26 }
 0x326   :  { %6004 = vmatprep.subr.bf16.mxu0 %v6923_v27 }
 0x327   :  { %4914 = vmatpush1.bf16.msra.mxu1 %v6920_v28 }
 0x328   :  { %4915 = vmatprep.subr.bf16.mxu1 %v6927_v30 }
 0x329   :  { %6005 = vmatpush3.bf16.msra.mxu0 %v6924_v31 }
 0x32a   :  { %6006 = vmatprep.subr.bf16.mxu0 %v6928_v63 }
 0x32b   :  { %4916 = vmatpush1.bf16.msra.mxu1 %v6925_v4 }
 0x32c   :  { %4917 = vmatprep.subr.bf16.mxu1 %v6932_v33 }
 0x32d   :  { %6007 = vmatpush3.bf16.msra.mxu0 %v6929_v37 }
 0x32e   :  { %6008 = vmatprep.subr.bf16.mxu0 %v6933_v38 }
 0x32f   :  { %4918 = vmatpush1.bf16.msra.mxu1 %v6930_v42 }
 0x331   :  { %6009 = vmatpush3.bf16.msra.mxu0 %v6934_v29 }
 0x332   :  { %5892 = vmatmul.mubr.msk.bf16.vlgmr.msra.gmra.mrb[12].mxu1 %vm7561_vm13, %v7565_v40  ;;  %5098 = vmatprep.subr.bf16.mxu0 %v7099_v0 }
 0x334   :  { %5916 = vmatmul.mubr.msk.bf16.vlgmr.msra.gmra.mrb[32].mxu0 %vm7631_vm6, %v7629_v51  ;;  %v6940_v51 = vld [vmem:[#allocation9 + $0xf30] ss:$28 sps:$4 sm:$0xff]  }
 0x335   :  { %5099 = vmatpush1.bf16.msra.mxu0 %v6935_v32  ;;  %5917 = vmatprep.mubr.msk.bf16.mxu0 %vm4319_vm12, %v7557_v35  ;;  %v6941_v35 = vld [vmem:[#allocation9 + $0xf68] ss:$28 sps:$4 sm:$0xff]  }
 0x336   :  { %5100 = vmatprep.subr.bf16.mxu0 %v7099_v0 }
 0x339   :  { %5101 = vmatpush1.bf16.msra.mxu0 %v6936_v50 }
 0x33a   :  { %5102 = vmatprep.subr.bf16.mxu0 %v7099_v0 }
 0x33d   :  { %5103 = vmatpush1.bf16.msra.mxu0 %v6937_v2 }
 0x33e   :  { %5104 = vmatprep.subr.bf16.mxu0 %v7099_v0 }
 0x341   :  { %5105 = vmatpush1.bf16.msra.mxu0 %v6938_v24 }
 0x342   :  { %5106 = vmatprep.subr.bf16.mxu0 %v7099_v0 }
 0x345   :  { %5107 = vmatpush1.bf16.msra.mxu0 %v6939_v41 }
 0x346   :  { %5108 = vmatprep.subr.bf16.mxu0 %v7099_v0 }
 0x349   :  { %5109 = vmatpush1.bf16.msra.mxu0 %v6940_v51 }
 0x34a   :  { %5110 = vmatprep.subr.bf16.mxu0 %v7099_v0 }
 0x34d   :  { %5111 = vmatpush1.bf16.msra.mxu0 %v6941_v35 }
 0x34e   :  { %5112 = vmatprep.subr.bf16.mxu0 %v7099_v0 }
 0x351   :  { %5113 = vmatpush1.bf16.msra.mxu0 %v6942_v22 }
 0x352   :  { %5114 = vmatprep.subr.bf16.mxu0 %v7099_v0 }
 0x355   :  { %5115 = vmatpush1.bf16.msra.mxu0 %v6943_v43 }
 0x356   :  { %5116 = vmatprep.subr.bf16.mxu0 %v7099_v0 }
 0x359   :  { %5117 = vmatpush1.bf16.msra.mxu0 %v6944_v47 }
 0x35a   :  { %5118 = vmatprep.subr.bf16.mxu0 %v7099_v0 }
 0x35d   :  { %5119 = vmatpush1.bf16.msra.mxu0 %v6945_v45 }
 0x360   :  { %5920 = vmatmul.mubr.msk.bf16.vlgmr.msra.gmra.mrb[36].mxu0 %vm7561_vm13, %v7565_v40 }
 0x387   :  { %v4726_v61 = vpop.f32.mrb[16].mxu0 }
 0x388   :  { %v6020_v3 = vadd.f32 %v4726_v61, %v1595_v46  ;;  %v4728_v14 = vpop.f32.mrb[17].mxu0 }
 0x389   :  { %v6021_v53 = vadd.f32 %v4728_v14, %v1599_v49  ;;  %v4730_v56 = vpop.f32.mrb[18].mxu0 }
 0x38a   :  { %v5923_v57 = vmul.f32 -1.442695, %v6020_v3  ;;  %v4731_v0 = vpop.f32.mrb[19].mxu0 }
 0x38b   :  { %v5924_v58 = vmul.f32 -1.442695, %v6021_v53 }
 0x38c   :  { %6954 = vpow2.f32 %v5923_v57 }
 0x38d   :  { %6956 = vpow2.f32 %v5924_v58 }
 0x396   :  { %v6955_v39 = vpop.eup %6954 }
 0x397   :  { %v6957_v40 = vpop.eup %6956  ;;  %v5161_v52 = vadd.f32 1.0, %v6955_v39 }
 0x398   :  { %v5162_v59 = vadd.f32 1.0, %v6957_v40 }
 0x399   :  { %6958 = vrcp.f32 %v5161_v52 }
 0x39a   :  { %6960 = vrcp.f32 %v5162_v59 }
 0x3a3   :  { %v6959_v44 = vpop.eup %6958 }
 0x3a4   :  { %v6961_v54 = vpop.eup %6960  ;;  %5182 = vst [vmem:[#allocation12 + $0x10] sm:$0xff] %v6959_v44 }
 0x3a5   :  { %5183 = vst [vmem:[#allocation12 + $0x18] sm:$0xff] %v6961_v54 }
 0x3a7   :  { %v5944_v25 = vpop.f32.mrb[20].mxu0 }
 0x3a8   :  { %v5945_v62 = vpop.f32.mrb[21].mxu0 }
 0x3a9   :  { %v5946_v1 = vadd.f32 %v5945_v62, %v5944_v25  ;;  %v5947_v5 = vpop.f32.mrb[22].mxu0 }
 0x3aa   :  { %v5948_v6 = vpop.f32.mrb[23].mxu0 }
 0x3ab   :  { %v4973_v11 = vadd.f32 %v5946_v1, %v1611_v7 }
 0x3c7   :  { %v5966_v8 = vpop.f32.mrb[24].mxu0 }
 0x3c8   :  { %v5967_v20 = vpop.f32.mrb[25].mxu0 }
 0x3c9   :  { %v5968_v60 = vadd.f32 %v5967_v20, %v5966_v8  ;;  %v5969_v17 = vpop.f32.mrb[26].mxu0 }
 0x3ca   :  { %v5970_v18 = vpop.f32.mrb[27].mxu0 }
 0x3cb   :  { %v5013_v48 = vadd.f32 %v5968_v60, %v4973_v11 }
 0x3e7   :  { %v5988_v19 = vpop.f32.mrb[28].mxu0 }
 0x3e8   :  { %v5989_v9 = vpop.f32.mrb[29].mxu0 }
 0x3e9   :  { %v5990_v15 = vadd.f32 %v5989_v9, %v5988_v19  ;;  %v5991_v23 = vpop.f32.mrb[30].mxu0 }
 0x3ea   :  { %v5992_v21 = vpop.f32.mrb[31].mxu0 }
 0x3eb   :  { %v5053_v12 = vadd.f32 %v5990_v15, %v5013_v48 }
 0x405   :  { %v4931_v26 = vpop.f32.mrb[12].mxu1 }
 0x406   :  { %v6022_v27 = vadd.f32 %v4931_v26, %v1603_v36  ;;  %v4933_v28 = vpop.f32.mrb[13].mxu1 }
 0x407   :  { %v6023_v30 = vadd.f32 %v4933_v28, %v1607_v16  ;;  %v6010_v31 = vpop.f32.mrb[32].mxu0  ;;  %v4935_v63 = vpop.f32.mrb[14].mxu1 }
 0x408   :  { %v5925_v4 = vmul.f32 -1.442695, %v6022_v27  ;;  %v6011_v33 = vpop.f32.mrb[33].mxu0  ;;  %v4936_v37 = vpop.f32.mrb[15].mxu1 }
 0x409   :  { %v5926_v38 = vmul.f32 -1.442695, %v6023_v30  ;;  %v6012_v42 = vadd.f32 %v6011_v33, %v6010_v31  ;;  %v6013_v29 = vpop.f32.mrb[34].mxu0 }
 0x40a   :  { %6962 = vpow2.f32 %v5925_v4  ;;  %v6014_v32 = vpop.f32.mrb[35].mxu0 }
 0x40b   :  { %6964 = vpow2.f32 %v5926_v38  ;;  %v5093_v34 = vadd.f32 %v6012_v42, %v5053_v12 }
 0x414   :  { %v6963_v50 = vpop.eup %6962 }
 0x415   :  { %v6965_v13 = vpop.eup %6964  ;;  %v5163_v2 = vadd.f32 1.0, %v6963_v50 }
 0x416   :  { %v5164_v55 = vadd.f32 1.0, %v6965_v13 }
 0x417   :  { %6966 = vrcp.f32 %v5163_v2 }
 0x418   :  { %6968 = vrcp.f32 %v5164_v55 }
 0x421   :  { %v6967_v10 = vpop.eup %6966 }
 0x422   :  { %v6969_v24 = vpop.eup %6968  ;;  %5184 = vst [vmem:[#allocation12 + $0x20] sm:$0xff] %v6967_v10 }
 0x423   :  { %5185 = vst [vmem:[#allocation12 + $0x28] sm:$0xff] %v6969_v24 }
 0x433   :  { %v5132_v41 = vpop.f32.mrb[36].mxu0 }
 0x434   :  { %v5133_v51 = vadd.f32 %v5132_v41, %v5093_v34  ;;  %v5134_v35 = vpop.f32.mrb[37].mxu0 }
 0x435   :  { %v5135_v22 = vpop.f32.mrb[38].mxu0 }
 0x436   :  { %v5927_v43 = vmul.f32 -1.442695, %v5133_v51  ;;  %v5136_v47 = vpop.f32.mrb[39].mxu0 }
 0x438   :  { %6970 = vpow2.f32 %v5927_v43 }
 0x442   :  { %v6971_v45 = vpop.eup %6970 }
 0x443   :  { %v5165_v46 = vadd.f32 1.0, %v6971_v45 }
 0x445   :  { %6972 = vrcp.f32 %v5165_v46 }
 0x44f   :  { %v6973_v49 = vpop.eup %6972 }
 0x450   :  { %5186 = vst [vmem:[#allocation12 + $0x30] sm:$0xff] %v6973_v49 }
 0x451   :  { %7074 = shalt.err (!%p7071_p8)
}
 0x452   :  { %s7075_s4 = scalar_lea.hbm %s7772_s6, 896 }
 0x453   :  { %p7076_p9 = scmp.ne.s32.totalorder %s7772_s6, %s7075_s4  ;;  %p7079_p10 = scmp.lt.u32.totalorder %s7075_s4, %s7772_s6 }
 0x455   :  { %p7081_p11 = pnand %p7079_p10, %p7076_p9 }
 0x457   :  { %7084 = shalt.err (!%p7081_p11)
}
 0x458   :  { %5196 = dma.vmem_to_hbm [thread:$0]  %s5194_s15, 896, %s7772_s6, [#allocation6]  }
 0x459   :  { %7091 = dma.done.wait [#allocation6], 896  }
 0x45a   :  { %7092 = vsyncadd [#allocation6], 4294966400 }
 0x45b   :  { %5200 = vsyncpa [#allocation5], 1 }
 0x45c   :  { %5201 = vsyncpa [#allocation8], 1 }
 0x45d   :  { %5202 = vsyncpa [#allocation11], 1 }
 0x45e   :  { %5203 = vsyncpa [#allocation6], 1 }

</bundles_post_ra>
